<compile_context>
chip_gen: v7x
topology: tpu7x:2x2x1
jax: 0.10.0
libtpu: 0.0.40
codegen_flags: <defaults>
</compile_context>

<pallas_src>
import functools

import jax
import jax.numpy as jnp
import numpy as np
from jax.experimental import pallas as pl
from jax.experimental.pallas import tpu as pltpu

# ---- problem sizes (consistent with the module) ----
B = 2          # batch
C = 16         # out_ch (conv channels)
L = 128        # sequence length
K = 15         # conv kernel size
P = 7          # padding
NEG_SLOPE = 0.2

LP = 256       # lane-aligned padded length per batch (needs >= L + 2P = 142)


def _attention_block_kernel(x_ref, w_ref, b_ref, out_ref, pad_ref, *, nb):
    """Processes `nb` batch elements per grid step.

    x_ref   : (nb, C, L)        input activations
    w_ref   : (4, K, C, C)      w_ref[i, k, co, ci] = w_i[co, ci, k]
    b_ref   : (4, C, 1)         biases
    out_ref : (4, nb, C, L)     stacked [emb1, emb2, beta, 1 - beta]
    pad_ref : (nb, C, LP) f32   zero-padded activations, lane-aligned per batch
    """
    # Zero only the padding halos; interiors are always overwritten before reads.
    zhalo = jnp.zeros((C, P), jnp.float32)
    for b in range(nb):
        pad_ref[b, :, 0:P] = zhalo
        pad_ref[b, :, P + L:P + L + P] = zhalo

    def write_interior(vals):                 # vals: list of nb (C, L) f32 values
        for b in range(nb):
            pad_ref[b, :, P:P + L] = vals[b]

    def conv(i):                              # K accumulated (C,C)x(C,L) MXU dots
        bias = jnp.zeros((C, L), jnp.float32) + b_ref[i]
        accs = [bias for _ in range(nb)]
        for k in range(K):                    # static unroll
            wk = w_ref[i, k]                  # (C, C), aligned tile load
            for b in range(nb):
                accs[b] = accs[b] + jnp.dot(
                    wk, pad_ref[b, :, k:k + L],
                    preferred_element_type=jnp.float32)
        return accs

    def lrelu(vals):
        return [jnp.where(a > 0, a, NEG_SLOPE * a) for a in vals]

    x_in = [x_ref[b].astype(jnp.float32) for b in range(nb)]
    write_interior(x_in)

    h = lrelu(conv(0)); write_interior(h)     # conv1 + act
    h = lrelu(conv(1)); write_interior(h)     # conv2 + act
    h = lrelu(conv(2)); write_interior(h)     # conv3 + act (gated activation)
    feature = conv(3)                         # conv4

    for b in range(nb):
        beta = jax.nn.sigmoid(feature[b])
        emb1 = beta * h[b]
        out_ref[0, b] = emb1.astype(out_ref.dtype)
        out_ref[1, b] = (x_in[b] - emb1).astype(out_ref.dtype)
        out_ref[2, b] = beta.astype(out_ref.dtype)
        out_ref[3, b] = (1.0 - beta).astype(out_ref.dtype)


def pack_params(params):
    """One-time packing: (4, K, C, C) weights ([i,k,co,ci]) and (4, C, 1) biases."""
    w = jnp.stack(
        [jnp.transpose(params[f"w{i}"], (2, 0, 1)) for i in (1, 2, 3, 4)], axis=0)
    b = jnp.stack([params[f"b{i}"].reshape(C, 1) for i in (1, 2, 3, 4)], axis=0)
    return w, b


def _default_batch_per_step():
    """v7x has 2 TensorCores -> one batch per grid step; v5e/v6e -> whole batch."""
    try:
        kind = jax.devices()[0].device_kind.lower()
    except Exception:
        return B
    if "v7" in kind or "7x" in kind:
        return 1
    return B


def make_attention_block(batch_per_step):
    nb = int(batch_per_step)
    assert B % nb == 0
    grid = (B // nb,)
    kernel = functools.partial(_attention_block_kernel, nb=nb)

    x_spec = pl.BlockSpec((nb, C, L), lambda i: (i, 0, 0))
    w_spec = pl.BlockSpec((4, K, C, C), lambda i: (0, 0, 0, 0))
    b_spec = pl.BlockSpec((4, C, 1), lambda i: (0, 0, 0))
    out_spec = pl.BlockSpec((4, nb, C, L), lambda i: (0, i, 0, 0))

    grid_spec = pltpu.PrefetchScalarGridSpec(
        num_scalar_prefetch=0,
        grid=grid,
        in_specs=[x_spec, w_spec, b_spec],
        out_specs=out_spec,
        scratch_shapes=[pltpu.VMEM((nb, C, LP), jnp.float32)],
    )

    @jax.jit
    def run(x, w_packed, b_packed):
        out = pl.pallas_call(
            kernel,
            out_shape=jax.ShapeDtypeStruct((4, B, C, L), x.dtype),
            grid_spec=grid_spec,
            compiler_params=pltpu.CompilerParams(
                dimension_semantics=("parallel",)),
        )(x, w_packed, b_packed)
        return out[0], out[1], out[2], out[3]

    return run


# ---------------- pure-JAX reference (for correctness check) ----------------
def _conv1d_ref(x, w, b):
    # x: (B, C_in, L), w: (C_out, C_in, K), b: (C_out,)
    y = jax.lax.conv_general_dilated(
        x, w, window_strides=(1,), padding=[(P, P)],
        dimension_numbers=("NCH", "OIH", "NCH"))
    return y + b[None, :, None]


def attention_block_ref(x, params):
    lrelu = lambda a: jnp.where(a > 0, a, NEG_SLOPE * a)
    h = lrelu(_conv1d_ref(x, params["w1"], params["b1"]))
    h = lrelu(_conv1d_ref(h, params["w2"], params["b2"]))
    h = lrelu(_conv1d_ref(h, params["w3"], params["b3"]))
    feature = _conv1d_ref(h, params["w4"], params["b4"])
    beta = jax.nn.sigmoid(feature)
    emb1 = beta * h
    return emb1, x - emb1, beta, 1.0 - beta


if __name__ == "__main__":
    key = jax.random.PRNGKey(0)
    keys = jax.random.split(key, 9)

    # Deterministic synthetic parameters (Conv1d(out_ch, out_ch, 15, padding=7) x4).
    scale = 1.0 / np.sqrt(C * K)
    params = {}
    for i in (1, 2, 3, 4):
        params[f"w{i}"] = scale * jax.random.normal(
            keys[2 * i - 2], (C, C, K), dtype=jnp.float32)
        params[f"b{i}"] = 0.1 * jax.random.normal(
            keys[2 * i - 1], (C,), dtype=jnp.float32)

    x = jax.random.normal(keys[8], (B, C, L), dtype=jnp.float32)

    # Pack weights/biases once (outside the per-call path).
    w_packed, b_packed = pack_params(params)

    attention_block = make_attention_block(_default_batch_per_step())
    outs = attention_block(x, w_packed, b_packed)
    outs = jax.block_until_ready(outs)

    refs = attention_block_ref(x, params)
    for o, r in zip(outs, refs):
        np.testing.assert_allclose(np.asarray(o), np.asarray(r),
                                   rtol=1e-4, atol=1e-4)

    print("KERNEL_OK")
</pallas_src>

<mosaic_0001>
module attributes {stable_mosaic.version = 11 : i64} {
  func.func @_attention_block_kernel(%arg0: i32, %arg1: memref<2x16x128xf32, #tpu.memory_space<vmem>>, %arg2: memref<4x15x16x16xf32, #tpu.memory_space<vmem>>, %arg3: memref<4x16x1xf32, #tpu.memory_space<vmem>>, %arg4: memref<4x2x16x128xf32, #tpu.memory_space<vmem>>, %arg5: memref<2x16x256xf32, #tpu.memory_space<vmem>>) attributes {dimension_semantics = [#tpu.dimension_semantics<parallel>], iteration_bounds = array<i64: 1>, scalar_prefetch = 0 : i64, scratch_operands = 1 : i64, tpu.core_type = #tpu.core_type<tc>, window_params = [{transform_indices = @transform_0, window_bounds = array<i64: 2, 16, 128>}, {pipeline_mode = #tpu.pipeline_mode<synchronous>, transform_indices = @transform_1, window_bounds = array<i64: 4, 15, 16, 16>}, {pipeline_mode = #tpu.pipeline_mode<synchronous>, transform_indices = @transform_2, window_bounds = array<i64: 4, 16, 1>}, {transform_indices = @transform_3, window_bounds = array<i64: 4, 2, 16, 128>}]} {
    %cst = arith.constant 0.000000e+00 : f32
    %0 = vector.broadcast %cst : f32 to vector<16x7xf32>
    %c0 = arith.constant 0 : index
    %c0_0 = arith.constant 0 : index
    %c0_1 = arith.constant 0 : index
    %1 = vector.load %arg5[%c0, %c0_0, %c0_1] : memref<2x16x256xf32, #tpu.memory_space<vmem>>, vector<1x16x7xf32>
    %2 = vector.shape_cast %1 : vector<1x16x7xf32> to vector<16x7xf32>
    %3 = vector.shape_cast %0 : vector<16x7xf32> to vector<1x16x7xf32>
    tpu.vector_store %arg5[%c0, %c0_0, %c0_1], %3 {strides = array<i32>} : memref<2x16x256xf32, #tpu.memory_space<vmem>>, vector<1x16x7xf32>,
    %c0_2 = arith.constant 0 : index
    %c0_3 = arith.constant 0 : index
    %c135 = arith.constant 135 : index
    %4 = vector.load %arg5[%c0_2, %c0_3, %c135] : memref<2x16x256xf32, #tpu.memory_space<vmem>>, vector<1x16x7xf32>
    %5 = vector.shape_cast %4 : vector<1x16x7xf32> to vector<16x7xf32>
    %6 = vector.shape_cast %0 : vector<16x7xf32> to vector<1x16x7xf32>
    tpu.vector_store %arg5[%c0_2, %c0_3, %c135], %6 {strides = array<i32>} : memref<2x16x256xf32, #tpu.memory_space<vmem>>, vector<1x16x7xf32>,
    %c1 = arith.constant 1 : index
    %c0_4 = arith.constant 0 : index
    %c0_5 = arith.constant 0 : index
    %7 = vector.load %arg5[%c1, %c0_4, %c0_5] : memref<2x16x256xf32, #tpu.memory_space<vmem>>, vector<1x16x7xf32>
    %8 = vector.shape_cast %7 : vector<1x16x7xf32> to vector<16x7xf32>
    %9 = vector.shape_cast %0 : vector<16x7xf32> to vector<1x16x7xf32>
    tpu.vector_store %arg5[%c1, %c0_4, %c0_5], %9 {strides = array<i32>} : memref<2x16x256xf32, #tpu.memory_space<vmem>>, vector<1x16x7xf32>,
    %c1_6 = arith.constant 1 : index
    %c0_7 = arith.constant 0 : index
    %c135_8 = arith.constant 135 : index
    %10 = vector.load %arg5[%c1_6, %c0_7, %c135_8] : memref<2x16x256xf32, #tpu.memory_space<vmem>>, vector<1x16x7xf32>
    %11 = vector.shape_cast %10 : vector<1x16x7xf32> to vector<16x7xf32>
    %12 = vector.shape_cast %0 : vector<16x7xf32> to vector<1x16x7xf32>
    tpu.vector_store %arg5[%c1_6, %c0_7, %c135_8], %12 {strides = array<i32>} : memref<2x16x256xf32, #tpu.memory_space<vmem>>, vector<1x16x7xf32>,
    %c0_9 = arith.constant 0 : index
    %c0_10 = arith.constant 0 : index
    %c0_11 = arith.constant 0 : index
    %13 = vector.load %arg1[%c0_9, %c0_10, %c0_11] : memref<2x16x128xf32, #tpu.memory_space<vmem>>, vector<1x16x128xf32>
    %14 = vector.shape_cast %13 : vector<1x16x128xf32> to vector<16x128xf32>
    %c1_12 = arith.constant 1 : index
    %c0_13 = arith.constant 0 : index
    %c0_14 = arith.constant 0 : index
    %15 = vector.load %arg1[%c1_12, %c0_13, %c0_14] : memref<2x16x128xf32, #tpu.memory_space<vmem>>, vector<1x16x128xf32>
    %16 = vector.shape_cast %15 : vector<1x16x128xf32> to vector<16x128xf32>
    %c0_15 = arith.constant 0 : index
    %c0_16 = arith.constant 0 : index
    %c7 = arith.constant 7 : index
    %17 = vector.load %arg5[%c0_15, %c0_16, %c7] : memref<2x16x256xf32, #tpu.memory_space<vmem>>, vector<1x16x128xf32>
    %18 = vector.shape_cast %17 : vector<1x16x128xf32> to vector<16x128xf32>
    %19 = vector.shape_cast %14 : vector<16x128xf32> to vector<1x16x128xf32>
    tpu.vector_store %arg5[%c0_15, %c0_16, %c7], %19 {strides = array<i32>} : memref<2x16x256xf32, #tpu.memory_space<vmem>>, vector<1x16x128xf32>,
    %c1_17 = arith.constant 1 : index
    %c0_18 = arith.constant 0 : index
    %c7_19 = arith.constant 7 : index
    %20 = vector.load %arg5[%c1_17, %c0_18, %c7_19] : memref<2x16x256xf32, #tpu.memory_space<vmem>>, vector<1x16x128xf32>
    %21 = vector.shape_cast %20 : vector<1x16x128xf32> to vector<16x128xf32>
    %22 = vector.shape_cast %16 : vector<16x128xf32> to vector<1x16x128xf32>
    tpu.vector_store %arg5[%c1_17, %c0_18, %c7_19], %22 {strides = array<i32>} : memref<2x16x256xf32, #tpu.memory_space<vmem>>, vector<1x16x128xf32>,
    %cst_20 = arith.constant 0.000000e+00 : f32
    %23 = vector.broadcast %cst_20 : f32 to vector<16x128xf32>
    %c0_21 = arith.constant 0 : index
    %c0_22 = arith.constant 0 : index
    %c0_23 = arith.constant 0 : index
    %24 = vector.load %arg3[%c0_21, %c0_22, %c0_23] : memref<4x16x1xf32, #tpu.memory_space<vmem>>, vector<1x16x1xf32>
    %25 = vector.shape_cast %24 : vector<1x16x1xf32> to vector<16x1xf32>
    %26 = vector.broadcast %25 : vector<16x1xf32> to vector<16x128xf32>
    %27 = arith.addf %23, %26 : vector<16x128xf32>
    %c0_24 = arith.constant 0 : index
    %c0_25 = arith.constant 0 : index
    %c0_26 = arith.constant 0 : index
    %c0_27 = arith.constant 0 : index
    %28 = vector.load %arg2[%c0_24, %c0_25, %c0_26, %c0_27] : memref<4x15x16x16xf32, #tpu.memory_space<vmem>>, vector<1x1x16x16xf32>
    %29 = vector.shape_cast %28 : vector<1x1x16x16xf32> to vector<16x16xf32>
    %c0_28 = arith.constant 0 : index
    %c0_29 = arith.constant 0 : index
    %c0_30 = arith.constant 0 : index
    %30 = vector.load %arg5[%c0_28, %c0_29, %c0_30] : memref<2x16x256xf32, #tpu.memory_space<vmem>>, vector<1x16x128xf32>
    %31 = vector.shape_cast %30 : vector<1x16x128xf32> to vector<16x128xf32>
    %cst_31 = arith.constant dense<0.000000e+00> : vector<16x128xf32>
    %32 = tpu.matmul %29, %31, %cst_31 {dimension_numbers = #tpu.dot_dimension_numbers<[1], [0], [0], [1], [0, 0, 1, 1], [], []>} : vector<16x16xf32>, vector<16x128xf32>, vector<16x128xf32> -> vector<16x128xf32>
    %33 = arith.addf %27, %32 : vector<16x128xf32>
    %c1_32 = arith.constant 1 : index
    %c0_33 = arith.constant 0 : index
    %c0_34 = arith.constant 0 : index
    %34 = vector.load %arg5[%c1_32, %c0_33, %c0_34] : memref<2x16x256xf32, #tpu.memory_space<vmem>>, vector<1x16x128xf32>
    %35 = vector.shape_cast %34 : vector<1x16x128xf32> to vector<16x128xf32>
    %cst_35 = arith.constant dense<0.000000e+00> : vector<16x128xf32>
    %36 = tpu.matmul %29, %35, %cst_35 {dimension_numbers = #tpu.dot_dimension_numbers<[1], [0], [0], [1], [0, 0, 1, 1], [], []>} : vector<16x16xf32>, vector<16x128xf32>, vector<16x128xf32> -> vector<16x128xf32>
    %37 = arith.addf %27, %36 : vector<16x128xf32>
    %c0_36 = arith.constant 0 : index
    %c1_37 = arith.constant 1 : index
    %c0_38 = arith.constant 0 : index
    %c0_39 = arith.constant 0 : index
    %38 = vector.load %arg2[%c0_36, %c1_37, %c0_38, %c0_39] : memref<4x15x16x16xf32, #tpu.memory_space<vmem>>, vector<1x1x16x16xf32>
    %39 = vector.shape_cast %38 : vector<1x1x16x16xf32> to vector<16x16xf32>
    %c0_40 = arith.constant 0 : index
    %c0_41 = arith.constant 0 : index
    %c1_42 = arith.constant 1 : index
    %40 = vector.load %arg5[%c0_40, %c0_41, %c1_42] : memref<2x16x256xf32, #tpu.memory_space<vmem>>, vector<1x16x128xf32>
    %41 = vector.shape_cast %40 : vector<1x16x128xf32> to vector<16x128xf32>
    %cst_43 = arith.constant dense<0.000000e+00> : vector<16x128xf32>
    %42 = tpu.matmul %39, %41, %cst_43 {dimension_numbers = #tpu.dot_dimension_numbers<[1], [0], [0], [1], [0, 0, 1, 1], [], []>} : vector<16x16xf32>, vector<16x128xf32>, vector<16x128xf32> -> vector<16x128xf32>
    %43 = arith.addf %33, %42 : vector<16x128xf32>
    %c1_44 = arith.constant 1 : index
    %c0_45 = arith.constant 0 : index
    %c1_46 = arith.constant 1 : index
    %44 = vector.load %arg5[%c1_44, %c0_45, %c1_46] : memref<2x16x256xf32, #tpu.memory_space<vmem>>, vector<1x16x128xf32>
    %45 = vector.shape_cast %44 : vector<1x16x128xf32> to vector<16x128xf32>
    %cst_47 = arith.constant dense<0.000000e+00> : vector<16x128xf32>
    %46 = tpu.matmul %39, %45, %cst_47 {dimension_numbers = #tpu.dot_dimension_numbers<[1], [0], [0], [1], [0, 0, 1, 1], [], []>} : vector<16x16xf32>, vector<16x128xf32>, vector<16x128xf32> -> vector<16x128xf32>
    %47 = arith.addf %37, %46 : vector<16x128xf32>
    %c0_48 = arith.constant 0 : index
    %c2 = arith.constant 2 : index
    %c0_49 = arith.constant 0 : index
    %c0_50 = arith.constant 0 : index
    %48 = vector.load %arg2[%c0_48, %c2, %c0_49, %c0_50] : memref<4x15x16x16xf32, #tpu.memory_space<vmem>>, vector<1x1x16x16xf32>
    %49 = vector.shape_cast %48 : vector<1x1x16x16xf32> to vector<16x16xf32>
    %c0_51 = arith.constant 0 : index
    %c0_52 = arith.constant 0 : index
    %c2_53 = arith.constant 2 : index
    %50 = vector.load %arg5[%c0_51, %c0_52, %c2_53] : memref<2x16x256xf32, #tpu.memory_space<vmem>>, vector<1x16x128xf32>
    %51 = vector.shape_cast %50 : vector<1x16x128xf32> to vector<16x128xf32>
    %cst_54 = arith.constant dense<0.000000e+00> : vector<16x128xf32>
    %52 = tpu.matmul %49, %51, %cst_54 {dimension_numbers = #tpu.dot_dimension_numbers<[1], [0], [0], [1], [0, 0, 1, 1], [], []>} : vector<16x16xf32>, vector<16x128xf32>, vector<16x128xf32> -> vector<16x128xf32>
    %53 = arith.addf %43, %52 : vector<16x128xf32>
    %c1_55 = arith.constant 1 : index
    %c0_56 = arith.constant 0 : index
    %c2_57 = arith.constant 2 : index
    %54 = vector.load %arg5[%c1_55, %c0_56, %c2_57] : memref<2x16x256xf32, #tpu.memory_space<vmem>>, vector<1x16x128xf32>
    %55 = vector.shape_cast %54 : vector<1x16x128xf32> to vector<16x128xf32>
    %cst_58 = arith.constant dense<0.000000e+00> : vector<16x128xf32>
    %56 = tpu.matmul %49, %55, %cst_58 {dimension_numbers = #tpu.dot_dimension_numbers<[1], [0], [0], [1], [0, 0, 1, 1], [], []>} : vector<16x16xf32>, vector<16x128xf32>, vector<16x128xf32> -> vector<16x128xf32>
    %57 = arith.addf %47, %56 : vector<16x128xf32>
    %c0_59 = arith.constant 0 : index
    %c3 = arith.constant 3 : index
    %c0_60 = arith.constant 0 : index
    %c0_61 = arith.constant 0 : index
    %58 = vector.load %arg2[%c0_59, %c3, %c0_60, %c0_61] : memref<4x15x16x16xf32, #tpu.memory_space<vmem>>, vector<1x1x16x16xf32>
    %59 = vector.shape_cast %58 : vector<1x1x16x16xf32> to vector<16x16xf32>
    %c0_62 = arith.constant 0 : index
    %c0_63 = arith.constant 0 : index
    %c3_64 = arith.constant 3 : index
    %60 = vector.load %arg5[%c0_62, %c0_63, %c3_64] : memref<2x16x256xf32, #tpu.memory_space<vmem>>, vector<1x16x128xf32>
    %61 = vector.shape_cast %60 : vector<1x16x128xf32> to vector<16x128xf32>
    %cst_65 = arith.constant dense<0.000000e+00> : vector<16x128xf32>
    %62 = tpu.matmul %59, %61, %cst_65 {dimension_numbers = #tpu.dot_dimension_numbers<[1], [0], [0], [1], [0, 0, 1, 1], [], []>} : vector<16x16xf32>, vector<16x128xf32>, vector<16x128xf32> -> vector<16x128xf32>
    %63 = arith.addf %53, %62 : vector<16x128xf32>
    %c1_66 = arith.constant 1 : index
    %c0_67 = arith.constant 0 : index
    %c3_68 = arith.constant 3 : index
    %64 = vector.load %arg5[%c1_66, %c0_67, %c3_68] : memref<2x16x256xf32, #tpu.memory_space<vmem>>, vector<1x16x128xf32>
    %65 = vector.shape_cast %64 : vector<1x16x128xf32> to vector<16x128xf32>
    %cst_69 = arith.constant dense<0.000000e+00> : vector<16x128xf32>
    %66 = tpu.matmul %59, %65, %cst_69 {dimension_numbers = #tpu.dot_dimension_numbers<[1], [0], [0], [1], [0, 0, 1, 1], [], []>} : vector<16x16xf32>, vector<16x128xf32>, vector<16x128xf32> -> vector<16x128xf32>
    %67 = arith.addf %57, %66 : vector<16x128xf32>
    %c0_70 = arith.constant 0 : index
    %c4 = arith.constant 4 : index
    %c0_71 = arith.constant 0 : index
    %c0_72 = arith.constant 0 : index
    %68 = vector.load %arg2[%c0_70, %c4, %c0_71, %c0_72] : memref<4x15x16x16xf32, #tpu.memory_space<vmem>>, vector<1x1x16x16xf32>
    %69 = vector.shape_cast %68 : vector<1x1x16x16xf32> to vector<16x16xf32>
    %c0_73 = arith.constant 0 : index
    %c0_74 = arith.constant 0 : index
    %c4_75 = arith.constant 4 : index
    %70 = vector.load %arg5[%c0_73, %c0_74, %c4_75] : memref<2x16x256xf32, #tpu.memory_space<vmem>>, vector<1x16x128xf32>
    %71 = vector.shape_cast %70 : vector<1x16x128xf32> to vector<16x128xf32>
    %cst_76 = arith.constant dense<0.000000e+00> : vector<16x128xf32>
    %72 = tpu.matmul %69, %71, %cst_76 {dimension_numbers = #tpu.dot_dimension_numbers<[1], [0], [0], [1], [0, 0, 1, 1], [], []>} : vector<16x16xf32>, vector<16x128xf32>, vector<16x128xf32> -> vector<16x128xf32>
    %73 = arith.addf %63, %72 : vector<16x128xf32>
    %c1_77 = arith.constant 1 : index
    %c0_78 = arith.constant 0 : index
    %c4_79 = arith.constant 4 : index
    %74 = vector.load %arg5[%c1_77, %c0_78, %c4_79] : memref<2x16x256xf32, #tpu.memory_space<vmem>>, vector<1x16x128xf32>
    %75 = vector.shape_cast %74 : vector<1x16x128xf32> to vector<16x128xf32>
    %cst_80 = arith.constant dense<0.000000e+00> : vector<16x128xf32>
    %76 = tpu.matmul %69, %75, %cst_80 {dimension_numbers = #tpu.dot_dimension_numbers<[1], [0], [0], [1], [0, 0, 1, 1], [], []>} : vector<16x16xf32>, vector<16x128xf32>, vector<16x128xf32> -> vector<16x128xf32>
    %77 = arith.addf %67, %76 : vector<16x128xf32>
    %c0_81 = arith.constant 0 : index
    %c5 = arith.constant 5 : index
    %c0_82 = arith.constant 0 : index
    %c0_83 = arith.constant 0 : index
    %78 = vector.load %arg2[%c0_81, %c5, %c0_82, %c0_83] : memref<4x15x16x16xf32, #tpu.memory_space<vmem>>, vector<1x1x16x16xf32>
    %79 = vector.shape_cast %78 : vector<1x1x16x16xf32> to vector<16x16xf32>
    %c0_84 = arith.constant 0 : index
    %c0_85 = arith.constant 0 : index
    %c5_86 = arith.constant 5 : index
    %80 = vector.load %arg5[%c0_84, %c0_85, %c5_86] : memref<2x16x256xf32, #tpu.memory_space<vmem>>, vector<1x16x128xf32>
    %81 = vector.shape_cast %80 : vector<1x16x128xf32> to vector<16x128xf32>
    %cst_87 = arith.constant dense<0.000000e+00> : vector<16x128xf32>
    %82 = tpu.matmul %79, %81, %cst_87 {dimension_numbers = #tpu.dot_dimension_numbers<[1], [0], [0], [1], [0, 0, 1, 1], [], []>} : vector<16x16xf32>, vector<16x128xf32>, vector<16x128xf32> -> vector<16x128xf32>
    %83 = arith.addf %73, %82 : vector<16x128xf32>
    %c1_88 = arith.constant 1 : index
    %c0_89 = arith.constant 0 : index
    %c5_90 = arith.constant 5 : index
    %84 = vector.load %arg5[%c1_88, %c0_89, %c5_90] : memref<2x16x256xf32, #tpu.memory_space<vmem>>, vector<1x16x128xf32>
    %85 = vector.shape_cast %84 : vector<1x16x128xf32> to vector<16x128xf32>
    %cst_91 = arith.constant dense<0.000000e+00> : vector<16x128xf32>
    %86 = tpu.matmul %79, %85, %cst_91 {dimension_numbers = #tpu.dot_dimension_numbers<[1], [0], [0], [1], [0, 0, 1, 1], [], []>} : vector<16x16xf32>, vector<16x128xf32>, vector<16x128xf32> -> vector<16x128xf32>
    %87 = arith.addf %77, %86 : vector<16x128xf32>
    %c0_92 = arith.constant 0 : index
    %c6 = arith.constant 6 : index
    %c0_93 = arith.constant 0 : index
    %c0_94 = arith.constant 0 : index
    %88 = vector.load %arg2[%c0_92, %c6, %c0_93, %c0_94] : memref<4x15x16x16xf32, #tpu.memory_space<vmem>>, vector<1x1x16x16xf32>
    %89 = vector.shape_cast %88 : vector<1x1x16x16xf32> to vector<16x16xf32>
    %c0_95 = arith.constant 0 : index
    %c0_96 = arith.constant 0 : index
    %c6_97 = arith.constant 6 : index
    %90 = vector.load %arg5[%c0_95, %c0_96, %c6_97] : memref<2x16x256xf32, #tpu.memory_space<vmem>>, vector<1x16x128xf32>
    %91 = vector.shape_cast %90 : vector<1x16x128xf32> to vector<16x128xf32>
    %cst_98 = arith.constant dense<0.000000e+00> : vector<16x128xf32>
    %92 = tpu.matmul %89, %91, %cst_98 {dimension_numbers = #tpu.dot_dimension_numbers<[1], [0], [0], [1], [0, 0, 1, 1], [], []>} : vector<16x16xf32>, vector<16x128xf32>, vector<16x128xf32> -> vector<16x128xf32>
    %93 = arith.addf %83, %92 : vector<16x128xf32>
    %c1_99 = arith.constant 1 : index
    %c0_100 = arith.constant 0 : index
    %c6_101 = arith.constant 6 : index
    %94 = vector.load %arg5[%c1_99, %c0_100, %c6_101] : memref<2x16x256xf32, #tpu.memory_space<vmem>>, vector<1x16x128xf32>
    %95 = vector.shape_cast %94 : vector<1x16x128xf32> to vector<16x128xf32>
    %cst_102 = arith.constant dense<0.000000e+00> : vector<16x128xf32>
    %96 = tpu.matmul %89, %95, %cst_102 {dimension_numbers = #tpu.dot_dimension_numbers<[1], [0], [0], [1], [0, 0, 1, 1], [], []>} : vector<16x16xf32>, vector<16x128xf32>, vector<16x128xf32> -> vector<16x128xf32>
    %97 = arith.addf %87, %96 : vector<16x128xf32>
    %c0_103 = arith.constant 0 : index
    %c7_104 = arith.constant 7 : index
    %c0_105 = arith.constant 0 : index
    %c0_106 = arith.constant 0 : index
    %98 = vector.load %arg2[%c0_103, %c7_104, %c0_105, %c0_106] : memref<4x15x16x16xf32, #tpu.memory_space<vmem>>, vector<1x1x16x16xf32>
    %99 = vector.shape_cast %98 : vector<1x1x16x16xf32> to vector<16x16xf32>
    %c0_107 = arith.constant 0 : index
    %c0_108 = arith.constant 0 : index
    %c7_109 = arith.constant 7 : index
    %100 = vector.load %arg5[%c0_107, %c0_108, %c7_109] : memref<2x16x256xf32, #tpu.memory_space<vmem>>, vector<1x16x128xf32>
    %101 = vector.shape_cast %100 : vector<1x16x128xf32> to vector<16x128xf32>
    %cst_110 = arith.constant dense<0.000000e+00> : vector<16x128xf32>
    %102 = tpu.matmul %99, %101, %cst_110 {dimension_numbers = #tpu.dot_dimension_numbers<[1], [0], [0], [1], [0, 0, 1, 1], [], []>} : vector<16x16xf32>, vector<16x128xf32>, vector<16x128xf32> -> vector<16x128xf32>
    %103 = arith.addf %93, %102 : vector<16x128xf32>
    %c1_111 = arith.constant 1 : index
    %c0_112 = arith.constant 0 : index
    %c7_113 = arith.constant 7 : index
    %104 = vector.load %arg5[%c1_111, %c0_112, %c7_113] : memref<2x16x256xf32, #tpu.memory_space<vmem>>, vector<1x16x128xf32>
    %105 = vector.shape_cast %104 : vector<1x16x128xf32> to vector<16x128xf32>
    %cst_114 = arith.constant dense<0.000000e+00> : vector<16x128xf32>
    %106 = tpu.matmul %99, %105, %cst_114 {dimension_numbers = #tpu.dot_dimension_numbers<[1], [0], [0], [1], [0, 0, 1, 1], [], []>} : vector<16x16xf32>, vector<16x128xf32>, vector<16x128xf32> -> vector<16x128xf32>
    %107 = arith.addf %97, %106 : vector<16x128xf32>
    %c0_115 = arith.constant 0 : index
    %c8 = arith.constant 8 : index
    %c0_116 = arith.constant 0 : index
    %c0_117 = arith.constant 0 : index
    %108 = vector.load %arg2[%c0_115, %c8, %c0_116, %c0_117] : memref<4x15x16x16xf32, #tpu.memory_space<vmem>>, vector<1x1x16x16xf32>
    %109 = vector.shape_cast %108 : vector<1x1x16x16xf32> to vector<16x16xf32>
    %c0_118 = arith.constant 0 : index
    %c0_119 = arith.constant 0 : index
    %c8_120 = arith.constant 8 : index
    %110 = vector.load %arg5[%c0_118, %c0_119, %c8_120] : memref<2x16x256xf32, #tpu.memory_space<vmem>>, vector<1x16x128xf32>
    %111 = vector.shape_cast %110 : vector<1x16x128xf32> to vector<16x128xf32>
    %cst_121 = arith.constant dense<0.000000e+00> : vector<16x128xf32>
    %112 = tpu.matmul %109, %111, %cst_121 {dimension_numbers = #tpu.dot_dimension_numbers<[1], [0], [0], [1], [0, 0, 1, 1], [], []>} : vector<16x16xf32>, vector<16x128xf32>, vector<16x128xf32> -> vector<16x128xf32>
    %113 = arith.addf %103, %112 : vector<16x128xf32>
    %c1_122 = arith.constant 1 : index
    %c0_123 = arith.constant 0 : index
    %c8_124 = arith.constant 8 : index
    %114 = vector.load %arg5[%c1_122, %c0_123, %c8_124] : memref<2x16x256xf32, #tpu.memory_space<vmem>>, vector<1x16x128xf32>
    %115 = vector.shape_cast %114 : vector<1x16x128xf32> to vector<16x128xf32>
    %cst_125 = arith.constant dense<0.000000e+00> : vector<16x128xf32>
    %116 = tpu.matmul %109, %115, %cst_125 {dimension_numbers = #tpu.dot_dimension_numbers<[1], [0], [0], [1], [0, 0, 1, 1], [], []>} : vector<16x16xf32>, vector<16x128xf32>, vector<16x128xf32> -> vector<16x128xf32>
    %117 = arith.addf %107, %116 : vector<16x128xf32>
    %c0_126 = arith.constant 0 : index
    %c9 = arith.constant 9 : index
    %c0_127 = arith.constant 0 : index
    %c0_128 = arith.constant 0 : index
    %118 = vector.load %arg2[%c0_126, %c9, %c0_127, %c0_128] : memref<4x15x16x16xf32, #tpu.memory_space<vmem>>, vector<1x1x16x16xf32>
    %119 = vector.shape_cast %118 : vector<1x1x16x16xf32> to vector<16x16xf32>
    %c0_129 = arith.constant 0 : index
    %c0_130 = arith.constant 0 : index
    %c9_131 = arith.constant 9 : index
    %120 = vector.load %arg5[%c0_129, %c0_130, %c9_131] : memref<2x16x256xf32, #tpu.memory_space<vmem>>, vector<1x16x128xf32>
    %121 = vector.shape_cast %120 : vector<1x16x128xf32> to vector<16x128xf32>
    %cst_132 = arith.constant dense<0.000000e+00> : vector<16x128xf32>
    %122 = tpu.matmul %119, %121, %cst_132 {dimension_numbers = #tpu.dot_dimension_numbers<[1], [0], [0], [1], [0, 0, 1, 1], [], []>} : vector<16x16xf32>, vector<16x128xf32>, vector<16x128xf32> -> vector<16x128xf32>
    %123 = arith.addf %113, %122 : vector<16x128xf32>
    %c1_133 = arith.constant 1 : index
    %c0_134 = arith.constant 0 : index
    %c9_135 = arith.constant 9 : index
    %124 = vector.load %arg5[%c1_133, %c0_134, %c9_135] : memref<2x16x256xf32, #tpu.memory_space<vmem>>, vector<1x16x128xf32>
    %125 = vector.shape_cast %124 : vector<1x16x128xf32> to vector<16x128xf32>
    %cst_136 = arith.constant dense<0.000000e+00> : vector<16x128xf32>
    %126 = tpu.matmul %119, %125, %cst_136 {dimension_numbers = #tpu.dot_dimension_numbers<[1], [0], [0], [1], [0, 0, 1, 1], [], []>} : vector<16x16xf32>, vector<16x128xf32>, vector<16x128xf32> -> vector<16x128xf32>
    %127 = arith.addf %117, %126 : vector<16x128xf32>
    %c0_137 = arith.constant 0 : index
    %c10 = arith.constant 10 : index
    %c0_138 = arith.constant 0 : index
    %c0_139 = arith.constant 0 : index
    %128 = vector.load %arg2[%c0_137, %c10, %c0_138, %c0_139] : memref<4x15x16x16xf32, #tpu.memory_space<vmem>>, vector<1x1x16x16xf32>
    %129 = vector.shape_cast %128 : vector<1x1x16x16xf32> to vector<16x16xf32>
    %c0_140 = arith.constant 0 : index
    %c0_141 = arith.constant 0 : index
    %c10_142 = arith.constant 10 : index
    %130 = vector.load %arg5[%c0_140, %c0_141, %c10_142] : memref<2x16x256xf32, #tpu.memory_space<vmem>>, vector<1x16x128xf32>
    %131 = vector.shape_cast %130 : vector<1x16x128xf32> to vector<16x128xf32>
    %cst_143 = arith.constant dense<0.000000e+00> : vector<16x128xf32>
    %132 = tpu.matmul %129, %131, %cst_143 {dimension_numbers = #tpu.dot_dimension_numbers<[1], [0], [0], [1], [0, 0, 1, 1], [], []>} : vector<16x16xf32>, vector<16x128xf32>, vector<16x128xf32> -> vector<16x128xf32>
    %133 = arith.addf %123, %132 : vector<16x128xf32>
    %c1_144 = arith.constant 1 : index
    %c0_145 = arith.constant 0 : index
    %c10_146 = arith.constant 10 : index
    %134 = vector.load %arg5[%c1_144, %c0_145, %c10_146] : memref<2x16x256xf32, #tpu.memory_space<vmem>>, vector<1x16x128xf32>
    %135 = vector.shape_cast %134 : vector<1x16x128xf32> to vector<16x128xf32>
    %cst_147 = arith.constant dense<0.000000e+00> : vector<16x128xf32>
    %136 = tpu.matmul %129, %135, %cst_147 {dimension_numbers = #tpu.dot_dimension_numbers<[1], [0], [0], [1], [0, 0, 1, 1], [], []>} : vector<16x16xf32>, vector<16x128xf32>, vector<16x128xf32> -> vector<16x128xf32>
    %137 = arith.addf %127, %136 : vector<16x128xf32>
    %c0_148 = arith.constant 0 : index
    %c11 = arith.constant 11 : index
    %c0_149 = arith.constant 0 : index
    %c0_150 = arith.constant 0 : index
    %138 = vector.load %arg2[%c0_148, %c11, %c0_149, %c0_150] : memref<4x15x16x16xf32, #tpu.memory_space<vmem>>, vector<1x1x16x16xf32>
    %139 = vector.shape_cast %138 : vector<1x1x16x16xf32> to vector<16x16xf32>
    %c0_151 = arith.constant 0 : index
    %c0_152 = arith.constant 0 : index
    %c11_153 = arith.constant 11 : index
    %140 = vector.load %arg5[%c0_151, %c0_152, %c11_153] : memref<2x16x256xf32, #tpu.memory_space<vmem>>, vector<1x16x128xf32>
    %141 = vector.shape_cast %140 : vector<1x16x128xf32> to vector<16x128xf32>
    %cst_154 = arith.constant dense<0.000000e+00> : vector<16x128xf32>
    %142 = tpu.matmul %139, %141, %cst_154 {dimension_numbers = #tpu.dot_dimension_numbers<[1], [0], [0], [1], [0, 0, 1, 1], [], []>} : vector<16x16xf32>, vector<16x128xf32>, vector<16x128xf32> -> vector<16x128xf32>
    %143 = arith.addf %133, %142 : vector<16x128xf32>
    %c1_155 = arith.constant 1 : index
    %c0_156 = arith.constant 0 : index
    %c11_157 = arith.constant 11 : index
    %144 = vector.load %arg5[%c1_155, %c0_156, %c11_157] : memref<2x16x256xf32, #tpu.memory_space<vmem>>, vector<1x16x128xf32>
    %145 = vector.shape_cast %144 : vector<1x16x128xf32> to vector<16x128xf32>
    %cst_158 = arith.constant dense<0.000000e+00> : vector<16x128xf32>
    %146 = tpu.matmul %139, %145, %cst_158 {dimension_numbers = #tpu.dot_dimension_numbers<[1], [0], [0], [1], [0, 0, 1, 1], [], []>} : vector<16x16xf32>, vector<16x128xf32>, vector<16x128xf32> -> vector<16x128xf32>
    %147 = arith.addf %137, %146 : vector<16x128xf32>
    %c0_159 = arith.constant 0 : index
    %c12 = arith.constant 12 : index
    %c0_160 = arith.constant 0 : index
    %c0_161 = arith.constant 0 : index
    %148 = vector.load %arg2[%c0_159, %c12, %c0_160, %c0_161] : memref<4x15x16x16xf32, #tpu.memory_space<vmem>>, vector<1x1x16x16xf32>
    %149 = vector.shape_cast %148 : vector<1x1x16x16xf32> to vector<16x16xf32>
    %c0_162 = arith.constant 0 : index
    %c0_163 = arith.constant 0 : index
    %c12_164 = arith.constant 12 : index
    %150 = vector.load %arg5[%c0_162, %c0_163, %c12_164] : memref<2x16x256xf32, #tpu.memory_space<vmem>>, vector<1x16x128xf32>
    %151 = vector.shape_cast %150 : vector<1x16x128xf32> to vector<16x128xf32>
    %cst_165 = arith.constant dense<0.000000e+00> : vector<16x128xf32>
    %152 = tpu.matmul %149, %151, %cst_165 {dimension_numbers = #tpu.dot_dimension_numbers<[1], [0], [0], [1], [0, 0, 1, 1], [], []>} : vector<16x16xf32>, vector<16x128xf32>, vector<16x128xf32> -> vector<16x128xf32>
    %153 = arith.addf %143, %152 : vector<16x128xf32>
    %c1_166 = arith.constant 1 : index
    %c0_167 = arith.constant 0 : index
    %c12_168 = arith.constant 12 : index
    %154 = vector.load %arg5[%c1_166, %c0_167, %c12_168] : memref<2x16x256xf32, #tpu.memory_space<vmem>>, vector<1x16x128xf32>
    %155 = vector.shape_cast %154 : vector<1x16x128xf32> to vector<16x128xf32>
    %cst_169 = arith.constant dense<0.000000e+00> : vector<16x128xf32>
    %156 = tpu.matmul %149, %155, %cst_169 {dimension_numbers = #tpu.dot_dimension_numbers<[1], [0], [0], [1], [0, 0, 1, 1], [], []>} : vector<16x16xf32>, vector<16x128xf32>, vector<16x128xf32> -> vector<16x128xf32>
    %157 = arith.addf %147, %156 : vector<16x128xf32>
    %c0_170 = arith.constant 0 : index
    %c13 = arith.constant 13 : index
    %c0_171 = arith.constant 0 : index
    %c0_172 = arith.constant 0 : index
    %158 = vector.load %arg2[%c0_170, %c13, %c0_171, %c0_172] : memref<4x15x16x16xf32, #tpu.memory_space<vmem>>, vector<1x1x16x16xf32>
    %159 = vector.shape_cast %158 : vector<1x1x16x16xf32> to vector<16x16xf32>
    %c0_173 = arith.constant 0 : index
    %c0_174 = arith.constant 0 : index
    %c13_175 = arith.constant 13 : index
    %160 = vector.load %arg5[%c0_173, %c0_174, %c13_175] : memref<2x16x256xf32, #tpu.memory_space<vmem>>, vector<1x16x128xf32>
    %161 = vector.shape_cast %160 : vector<1x16x128xf32> to vector<16x128xf32>
    %cst_176 = arith.constant dense<0.000000e+00> : vector<16x128xf32>
    %162 = tpu.matmul %159, %161, %cst_176 {dimension_numbers = #tpu.dot_dimension_numbers<[1], [0], [0], [1], [0, 0, 1, 1], [], []>} : vector<16x16xf32>, vector<16x128xf32>, vector<16x128xf32> -> vector<16x128xf32>
    %163 = arith.addf %153, %162 : vector<16x128xf32>
    %c1_177 = arith.constant 1 : index
    %c0_178 = arith.constant 0 : index
    %c13_179 = arith.constant 13 : index
    %164 = vector.load %arg5[%c1_177, %c0_178, %c13_179] : memref<2x16x256xf32, #tpu.memory_space<vmem>>, vector<1x16x128xf32>
    %165 = vector.shape_cast %164 : vector<1x16x128xf32> to vector<16x128xf32>
    %cst_180 = arith.constant dense<0.000000e+00> : vector<16x128xf32>
    %166 = tpu.matmul %159, %165, %cst_180 {dimension_numbers = #tpu.dot_dimension_numbers<[1], [0], [0], [1], [0, 0, 1, 1], [], []>} : vector<16x16xf32>, vector<16x128xf32>, vector<16x128xf32> -> vector<16x128xf32>
    %167 = arith.addf %157, %166 : vector<16x128xf32>
    %c0_181 = arith.constant 0 : index
    %c14 = arith.constant 14 : index
    %c0_182 = arith.constant 0 : index
    %c0_183 = arith.constant 0 : index
    %168 = vector.load %arg2[%c0_181, %c14, %c0_182, %c0_183] : memref<4x15x16x16xf32, #tpu.memory_space<vmem>>, vector<1x1x16x16xf32>
    %169 = vector.shape_cast %168 : vector<1x1x16x16xf32> to vector<16x16xf32>
    %c0_184 = arith.constant 0 : index
    %c0_185 = arith.constant 0 : index
    %c14_186 = arith.constant 14 : index
    %170 = vector.load %arg5[%c0_184, %c0_185, %c14_186] : memref<2x16x256xf32, #tpu.memory_space<vmem>>, vector<1x16x128xf32>
    %171 = vector.shape_cast %170 : vector<1x16x128xf32> to vector<16x128xf32>
    %cst_187 = arith.constant dense<0.000000e+00> : vector<16x128xf32>
    %172 = tpu.matmul %169, %171, %cst_187 {dimension_numbers = #tpu.dot_dimension_numbers<[1], [0], [0], [1], [0, 0, 1, 1], [], []>} : vector<16x16xf32>, vector<16x128xf32>, vector<16x128xf32> -> vector<16x128xf32>
    %173 = arith.addf %163, %172 : vector<16x128xf32>
    %c1_188 = arith.constant 1 : index
    %c0_189 = arith.constant 0 : index
    %c14_190 = arith.constant 14 : index
    %174 = vector.load %arg5[%c1_188, %c0_189, %c14_190] : memref<2x16x256xf32, #tpu.memory_space<vmem>>, vector<1x16x128xf32>
    %175 = vector.shape_cast %174 : vector<1x16x128xf32> to vector<16x128xf32>
    %cst_191 = arith.constant dense<0.000000e+00> : vector<16x128xf32>
    %176 = tpu.matmul %169, %175, %cst_191 {dimension_numbers = #tpu.dot_dimension_numbers<[1], [0], [0], [1], [0, 0, 1, 1], [], []>} : vector<16x16xf32>, vector<16x128xf32>, vector<16x128xf32> -> vector<16x128xf32>
    %177 = arith.addf %167, %176 : vector<16x128xf32>
    %cst_192 = arith.constant 0.000000e+00 : f32
    %178 = vector.broadcast %cst_192 : f32 to vector<16x128xf32>
    %179 = arith.cmpf ogt, %173, %178 : vector<16x128xf32>
    %cst_193 = arith.constant 2.000000e-01 : f32
    %180 = vector.broadcast %cst_193 : f32 to vector<16x128xf32>
    %181 = arith.mulf %180, %173 : vector<16x128xf32>
    %182 = arith.select %179, %173, %181 : vector<16x128xi1>, vector<16x128xf32>
    %cst_194 = arith.constant 0.000000e+00 : f32
    %183 = vector.broadcast %cst_194 : f32 to vector<16x128xf32>
    %184 = arith.cmpf ogt, %177, %183 : vector<16x128xf32>
    %cst_195 = arith.constant 2.000000e-01 : f32
    %185 = vector.broadcast %cst_195 : f32 to vector<16x128xf32>
    %186 = arith.mulf %185, %177 : vector<16x128xf32>
    %187 = arith.select %184, %177, %186 : vector<16x128xi1>, vector<16x128xf32>
    %c0_196 = arith.constant 0 : index
    %c0_197 = arith.constant 0 : index
    %c7_198 = arith.constant 7 : index
    %188 = vector.load %arg5[%c0_196, %c0_197, %c7_198] : memref<2x16x256xf32, #tpu.memory_space<vmem>>, vector<1x16x128xf32>
    %189 = vector.shape_cast %188 : vector<1x16x128xf32> to vector<16x128xf32>
    %190 = vector.shape_cast %182 : vector<16x128xf32> to vector<1x16x128xf32>
    tpu.vector_store %arg5[%c0_196, %c0_197, %c7_198], %190 {strides = array<i32>} : memref<2x16x256xf32, #tpu.memory_space<vmem>>, vector<1x16x128xf32>,
    %c1_199 = arith.constant 1 : index
    %c0_200 = arith.constant 0 : index
    %c7_201 = arith.constant 7 : index
    %191 = vector.load %arg5[%c1_199, %c0_200, %c7_201] : memref<2x16x256xf32, #tpu.memory_space<vmem>>, vector<1x16x128xf32>
    %192 = vector.shape_cast %191 : vector<1x16x128xf32> to vector<16x128xf32>
    %193 = vector.shape_cast %187 : vector<16x128xf32> to vector<1x16x128xf32>
    tpu.vector_store %arg5[%c1_199, %c0_200, %c7_201], %193 {strides = array<i32>} : memref<2x16x256xf32, #tpu.memory_space<vmem>>, vector<1x16x128xf32>,
    %cst_202 = arith.constant 0.000000e+00 : f32
    %194 = vector.broadcast %cst_202 : f32 to vector<16x128xf32>
    %c1_203 = arith.constant 1 : index
    %c0_204 = arith.constant 0 : index
    %c0_205 = arith.constant 0 : index
    %195 = vector.load %arg3[%c1_203, %c0_204, %c0_205] : memref<4x16x1xf32, #tpu.memory_space<vmem>>, vector<1x16x1xf32>
    %196 = vector.shape_cast %195 : vector<1x16x1xf32> to vector<16x1xf32>
    %197 = vector.broadcast %196 : vector<16x1xf32> to vector<16x128xf32>
    %198 = arith.addf %194, %197 : vector<16x128xf32>
    %c1_206 = arith.constant 1 : index
    %c0_207 = arith.constant 0 : index
    %c0_208 = arith.constant 0 : index
    %c0_209 = arith.constant 0 : index
    %199 = vector.load %arg2[%c1_206, %c0_207, %c0_208, %c0_209] : memref<4x15x16x16xf32, #tpu.memory_space<vmem>>, vector<1x1x16x16xf32>
    %200 = vector.shape_cast %199 : vector<1x1x16x16xf32> to vector<16x16xf32>
    %c0_210 = arith.constant 0 : index
    %c0_211 = arith.constant 0 : index
    %c0_212 = arith.constant 0 : index
    %201 = vector.load %arg5[%c0_210, %c0_211, %c0_212] : memref<2x16x256xf32, #tpu.memory_space<vmem>>, vector<1x16x128xf32>
    %202 = vector.shape_cast %201 : vector<1x16x128xf32> to vector<16x128xf32>
    %cst_213 = arith.constant dense<0.000000e+00> : vector<16x128xf32>
    %203 = tpu.matmul %200, %202, %cst_213 {dimension_numbers = #tpu.dot_dimension_numbers<[1], [0], [0], [1], [0, 0, 1, 1], [], []>} : vector<16x16xf32>, vector<16x128xf32>, vector<16x128xf32> -> vector<16x128xf32>
    %204 = arith.addf %198, %203 : vector<16x128xf32>
    %c1_214 = arith.constant 1 : index
    %c0_215 = arith.constant 0 : index
    %c0_216 = arith.constant 0 : index
    %205 = vector.load %arg5[%c1_214, %c0_215, %c0_216] : memref<2x16x256xf32, #tpu.memory_space<vmem>>, vector<1x16x128xf32>
    %206 = vector.shape_cast %205 : vector<1x16x128xf32> to vector<16x128xf32>
    %cst_217 = arith.constant dense<0.000000e+00> : vector<16x128xf32>
    %207 = tpu.matmul %200, %206, %cst_217 {dimension_numbers = #tpu.dot_dimension_numbers<[1], [0], [0], [1], [0, 0, 1, 1], [], []>} : vector<16x16xf32>, vector<16x128xf32>, vector<16x128xf32> -> vector<16x128xf32>
    %208 = arith.addf %198, %207 : vector<16x128xf32>
    %c1_218 = arith.constant 1 : index
    %c1_219 = arith.constant 1 : index
    %c0_220 = arith.constant 0 : index
    %c0_221 = arith.constant 0 : index
    %209 = vector.load %arg2[%c1_218, %c1_219, %c0_220, %c0_221] : memref<4x15x16x16xf32, #tpu.memory_space<vmem>>, vector<1x1x16x16xf32>
    %210 = vector.shape_cast %209 : vector<1x1x16x16xf32> to vector<16x16xf32>
    %c0_222 = arith.constant 0 : index
    %c0_223 = arith.constant 0 : index
    %c1_224 = arith.constant 1 : index
    %211 = vector.load %arg5[%c0_222, %c0_223, %c1_224] : memref<2x16x256xf32, #tpu.memory_space<vmem>>, vector<1x16x128xf32>
    %212 = vector.shape_cast %211 : vector<1x16x128xf32> to vector<16x128xf32>
    %cst_225 = arith.constant dense<0.000000e+00> : vector<16x128xf32>
    %213 = tpu.matmul %210, %212, %cst_225 {dimension_numbers = #tpu.dot_dimension_numbers<[1], [0], [0], [1], [0, 0, 1, 1], [], []>} : vector<16x16xf32>, vector<16x128xf32>, vector<16x128xf32> -> vector<16x128xf32>
    %214 = arith.addf %204, %213 : vector<16x128xf32>
    %c1_226 = arith.constant 1 : index
    %c0_227 = arith.constant 0 : index
    %c1_228 = arith.constant 1 : index
    %215 = vector.load %arg5[%c1_226, %c0_227, %c1_228] : memref<2x16x256xf32, #tpu.memory_space<vmem>>, vector<1x16x128xf32>
    %216 = vector.shape_cast %215 : vector<1x16x128xf32> to vector<16x128xf32>
    %cst_229 = arith.constant dense<0.000000e+00> : vector<16x128xf32>
    %217 = tpu.matmul %210, %216, %cst_229 {dimension_numbers = #tpu.dot_dimension_numbers<[1], [0], [0], [1], [0, 0, 1, 1], [], []>} : vector<16x16xf32>, vector<16x128xf32>, vector<16x128xf32> -> vector<16x128xf32>
    %218 = arith.addf %208, %217 : vector<16x128xf32>
    %c1_230 = arith.constant 1 : index
    %c2_231 = arith.constant 2 : index
    %c0_232 = arith.constant 0 : index
    %c0_233 = arith.constant 0 : index
    %219 = vector.load %arg2[%c1_230, %c2_231, %c0_232, %c0_233] : memref<4x15x16x16xf32, #tpu.memory_space<vmem>>, vector<1x1x16x16xf32>
    %220 = vector.shape_cast %219 : vector<1x1x16x16xf32> to vector<16x16xf32>
    %c0_234 = arith.constant 0 : index
    %c0_235 = arith.constant 0 : index
    %c2_236 = arith.constant 2 : index
    %221 = vector.load %arg5[%c0_234, %c0_235, %c2_236] : memref<2x16x256xf32, #tpu.memory_space<vmem>>, vector<1x16x128xf32>
    %222 = vector.shape_cast %221 : vector<1x16x128xf32> to vector<16x128xf32>
    %cst_237 = arith.constant dense<0.000000e+00> : vector<16x128xf32>
    %223 = tpu.matmul %220, %222, %cst_237 {dimension_numbers = #tpu.dot_dimension_numbers<[1], [0], [0], [1], [0, 0, 1, 1], [], []>} : vector<16x16xf32>, vector<16x128xf32>, vector<16x128xf32> -> vector<16x128xf32>
    %224 = arith.addf %214, %223 : vector<16x128xf32>
    %c1_238 = arith.constant 1 : index
    %c0_239 = arith.constant 0 : index
    %c2_240 = arith.constant 2 : index
    %225 = vector.load %arg5[%c1_238, %c0_239, %c2_240] : memref<2x16x256xf32, #tpu.memory_space<vmem>>, vector<1x16x128xf32>
    %226 = vector.shape_cast %225 : vector<1x16x128xf32> to vector<16x128xf32>
    %cst_241 = arith.constant dense<0.000000e+00> : vector<16x128xf32>
    %227 = tpu.matmul %220, %226, %cst_241 {dimension_numbers = #tpu.dot_dimension_numbers<[1], [0], [0], [1], [0, 0, 1, 1], [], []>} : vector<16x16xf32>, vector<16x128xf32>, vector<16x128xf32> -> vector<16x128xf32>
    %228 = arith.addf %218, %227 : vector<16x128xf32>
    %c1_242 = arith.constant 1 : index
    %c3_243 = arith.constant 3 : index
    %c0_244 = arith.constant 0 : index
    %c0_245 = arith.constant 0 : index
    %229 = vector.load %arg2[%c1_242, %c3_243, %c0_244, %c0_245] : memref<4x15x16x16xf32, #tpu.memory_space<vmem>>, vector<1x1x16x16xf32>
    %230 = vector.shape_cast %229 : vector<1x1x16x16xf32> to vector<16x16xf32>
    %c0_246 = arith.constant 0 : index
    %c0_247 = arith.constant 0 : index
    %c3_248 = arith.constant 3 : index
    %231 = vector.load %arg5[%c0_246, %c0_247, %c3_248] : memref<2x16x256xf32, #tpu.memory_space<vmem>>, vector<1x16x128xf32>
    %232 = vector.shape_cast %231 : vector<1x16x128xf32> to vector<16x128xf32>
    %cst_249 = arith.constant dense<0.000000e+00> : vector<16x128xf32>
    %233 = tpu.matmul %230, %232, %cst_249 {dimension_numbers = #tpu.dot_dimension_numbers<[1], [0], [0], [1], [0, 0, 1, 1], [], []>} : vector<16x16xf32>, vector<16x128xf32>, vector<16x128xf32> -> vector<16x128xf32>
    %234 = arith.addf %224, %233 : vector<16x128xf32>
    %c1_250 = arith.constant 1 : index
    %c0_251 = arith.constant 0 : index
    %c3_252 = arith.constant 3 : index
    %235 = vector.load %arg5[%c1_250, %c0_251, %c3_252] : memref<2x16x256xf32, #tpu.memory_space<vmem>>, vector<1x16x128xf32>
    %236 = vector.shape_cast %235 : vector<1x16x128xf32> to vector<16x128xf32>
    %cst_253 = arith.constant dense<0.000000e+00> : vector<16x128xf32>
    %237 = tpu.matmul %230, %236, %cst_253 {dimension_numbers = #tpu.dot_dimension_numbers<[1], [0], [0], [1], [0, 0, 1, 1], [], []>} : vector<16x16xf32>, vector<16x128xf32>, vector<16x128xf32> -> vector<16x128xf32>
    %238 = arith.addf %228, %237 : vector<16x128xf32>
    %c1_254 = arith.constant 1 : index
    %c4_255 = arith.constant 4 : index
    %c0_256 = arith.constant 0 : index
    %c0_257 = arith.constant 0 : index
    %239 = vector.load %arg2[%c1_254, %c4_255, %c0_256, %c0_257] : memref<4x15x16x16xf32, #tpu.memory_space<vmem>>, vector<1x1x16x16xf32>
    %240 = vector.shape_cast %239 : vector<1x1x16x16xf32> to vector<16x16xf32>
    %c0_258 = arith.constant 0 : index
    %c0_259 = arith.constant 0 : index
    %c4_260 = arith.constant 4 : index
    %241 = vector.load %arg5[%c0_258, %c0_259, %c4_260] : memref<2x16x256xf32, #tpu.memory_space<vmem>>, vector<1x16x128xf32>
    %242 = vector.shape_cast %241 : vector<1x16x128xf32> to vector<16x128xf32>
    %cst_261 = arith.constant dense<0.000000e+00> : vector<16x128xf32>
    %243 = tpu.matmul %240, %242, %cst_261 {dimension_numbers = #tpu.dot_dimension_numbers<[1], [0], [0], [1], [0, 0, 1, 1], [], []>} : vector<16x16xf32>, vector<16x128xf32>, vector<16x128xf32> -> vector<16x128xf32>
    %244 = arith.addf %234, %243 : vector<16x128xf32>
    %c1_262 = arith.constant 1 : index
    %c0_263 = arith.constant 0 : index
    %c4_264 = arith.constant 4 : index
    %245 = vector.load %arg5[%c1_262, %c0_263, %c4_264] : memref<2x16x256xf32, #tpu.memory_space<vmem>>, vector<1x16x128xf32>
    %246 = vector.shape_cast %245 : vector<1x16x128xf32> to vector<16x128xf32>
    %cst_265 = arith.constant dense<0.000000e+00> : vector<16x128xf32>
    %247 = tpu.matmul %240, %246, %cst_265 {dimension_numbers = #tpu.dot_dimension_numbers<[1], [0], [0], [1], [0, 0, 1, 1], [], []>} : vector<16x16xf32>, vector<16x128xf32>, vector<16x128xf32> -> vector<16x128xf32>
    %248 = arith.addf %238, %247 : vector<16x128xf32>
    %c1_266 = arith.constant 1 : index
    %c5_267 = arith.constant 5 : index
    %c0_268 = arith.constant 0 : index
    %c0_269 = arith.constant 0 : index
    %249 = vector.load %arg2[%c1_266, %c5_267, %c0_268, %c0_269] : memref<4x15x16x16xf32, #tpu.memory_space<vmem>>, vector<1x1x16x16xf32>
    %250 = vector.shape_cast %249 : vector<1x1x16x16xf32> to vector<16x16xf32>
    %c0_270 = arith.constant 0 : index
    %c0_271 = arith.constant 0 : index
    %c5_272 = arith.constant 5 : index
    %251 = vector.load %arg5[%c0_270, %c0_271, %c5_272] : memref<2x16x256xf32, #tpu.memory_space<vmem>>, vector<1x16x128xf32>
    %252 = vector.shape_cast %251 : vector<1x16x128xf32> to vector<16x128xf32>
    %cst_273 = arith.constant dense<0.000000e+00> : vector<16x128xf32>
    %253 = tpu.matmul %250, %252, %cst_273 {dimension_numbers = #tpu.dot_dimension_numbers<[1], [0], [0], [1], [0, 0, 1, 1], [], []>} : vector<16x16xf32>, vector<16x128xf32>, vector<16x128xf32> -> vector<16x128xf32>
    %254 = arith.addf %244, %253 : vector<16x128xf32>
    %c1_274 = arith.constant 1 : index
    %c0_275 = arith.constant 0 : index
    %c5_276 = arith.constant 5 : index
    %255 = vector.load %arg5[%c1_274, %c0_275, %c5_276] : memref<2x16x256xf32, #tpu.memory_space<vmem>>, vector<1x16x128xf32>
    %256 = vector.shape_cast %255 : vector<1x16x128xf32> to vector<16x128xf32>
    %cst_277 = arith.constant dense<0.000000e+00> : vector<16x128xf32>
    %257 = tpu.matmul %250, %256, %cst_277 {dimension_numbers = #tpu.dot_dimension_numbers<[1], [0], [0], [1], [0, 0, 1, 1], [], []>} : vector<16x16xf32>, vector<16x128xf32>, vector<16x128xf32> -> vector<16x128xf32>
    %258 = arith.addf %248, %257 : vector<16x128xf32>
    %c1_278 = arith.constant 1 : index
    %c6_279 = arith.constant 6 : index
    %c0_280 = arith.constant 0 : index
    %c0_281 = arith.constant 0 : index
    %259 = vector.load %arg2[%c1_278, %c6_279, %c0_280, %c0_281] : memref<4x15x16x16xf32, #tpu.memory_space<vmem>>, vector<1x1x16x16xf32>
    %260 = vector.shape_cast %259 : vector<1x1x16x16xf32> to vector<16x16xf32>
    %c0_282 = arith.constant 0 : index
    %c0_283 = arith.constant 0 : index
    %c6_284 = arith.constant 6 : index
    %261 = vector.load %arg5[%c0_282, %c0_283, %c6_284] : memref<2x16x256xf32, #tpu.memory_space<vmem>>, vector<1x16x128xf32>
    %262 = vector.shape_cast %261 : vector<1x16x128xf32> to vector<16x128xf32>
    %cst_285 = arith.constant dense<0.000000e+00> : vector<16x128xf32>
    %263 = tpu.matmul %260, %262, %cst_285 {dimension_numbers = #tpu.dot_dimension_numbers<[1], [0], [0], [1], [0, 0, 1, 1], [], []>} : vector<16x16xf32>, vector<16x128xf32>, vector<16x128xf32> -> vector<16x128xf32>
    %264 = arith.addf %254, %263 : vector<16x128xf32>
    %c1_286 = arith.constant 1 : index
    %c0_287 = arith.constant 0 : index
    %c6_288 = arith.constant 6 : index
    %265 = vector.load %arg5[%c1_286, %c0_287, %c6_288] : memref<2x16x256xf32, #tpu.memory_space<vmem>>, vector<1x16x128xf32>
    %266 = vector.shape_cast %265 : vector<1x16x128xf32> to vector<16x128xf32>
    %cst_289 = arith.constant dense<0.000000e+00> : vector<16x128xf32>
    %267 = tpu.matmul %260, %266, %cst_289 {dimension_numbers = #tpu.dot_dimension_numbers<[1], [0], [0], [1], [0, 0, 1, 1], [], []>} : vector<16x16xf32>, vector<16x128xf32>, vector<16x128xf32> -> vector<16x128xf32>
    %268 = arith.addf %258, %267 : vector<16x128xf32>
    %c1_290 = arith.constant 1 : index
    %c7_291 = arith.constant 7 : index
    %c0_292 = arith.constant 0 : index
    %c0_293 = arith.constant 0 : index
    %269 = vector.load %arg2[%c1_290, %c7_291, %c0_292, %c0_293] : memref<4x15x16x16xf32, #tpu.memory_space<vmem>>, vector<1x1x16x16xf32>
    %270 = vector.shape_cast %269 : vector<1x1x16x16xf32> to vector<16x16xf32>
    %c0_294 = arith.constant 0 : index
    %c0_295 = arith.constant 0 : index
    %c7_296 = arith.constant 7 : index
    %271 = vector.load %arg5[%c0_294, %c0_295, %c7_296] : memref<2x16x256xf32, #tpu.memory_space<vmem>>, vector<1x16x128xf32>
    %272 = vector.shape_cast %271 : vector<1x16x128xf32> to vector<16x128xf32>
    %cst_297 = arith.constant dense<0.000000e+00> : vector<16x128xf32>
    %273 = tpu.matmul %270, %272, %cst_297 {dimension_numbers = #tpu.dot_dimension_numbers<[1], [0], [0], [1], [0, 0, 1, 1], [], []>} : vector<16x16xf32>, vector<16x128xf32>, vector<16x128xf32> -> vector<16x128xf32>
    %274 = arith.addf %264, %273 : vector<16x128xf32>
    %c1_298 = arith.constant 1 : index
    %c0_299 = arith.constant 0 : index
    %c7_300 = arith.constant 7 : index
    %275 = vector.load %arg5[%c1_298, %c0_299, %c7_300] : memref<2x16x256xf32, #tpu.memory_space<vmem>>, vector<1x16x128xf32>
    %276 = vector.shape_cast %275 : vector<1x16x128xf32> to vector<16x128xf32>
    %cst_301 = arith.constant dense<0.000000e+00> : vector<16x128xf32>
    %277 = tpu.matmul %270, %276, %cst_301 {dimension_numbers = #tpu.dot_dimension_numbers<[1], [0], [0], [1], [0, 0, 1, 1], [], []>} : vector<16x16xf32>, vector<16x128xf32>, vector<16x128xf32> -> vector<16x128xf32>
    %278 = arith.addf %268, %277 : vector<16x128xf32>
    %c1_302 = arith.constant 1 : index
    %c8_303 = arith.constant 8 : index
    %c0_304 = arith.constant 0 : index
    %c0_305 = arith.constant 0 : index
    %279 = vector.load %arg2[%c1_302, %c8_303, %c0_304, %c0_305] : memref<4x15x16x16xf32, #tpu.memory_space<vmem>>, vector<1x1x16x16xf32>
    %280 = vector.shape_cast %279 : vector<1x1x16x16xf32> to vector<16x16xf32>
    %c0_306 = arith.constant 0 : index
    %c0_307 = arith.constant 0 : index
    %c8_308 = arith.constant 8 : index
    %281 = vector.load %arg5[%c0_306, %c0_307, %c8_308] : memref<2x16x256xf32, #tpu.memory_space<vmem>>, vector<1x16x128xf32>
    %282 = vector.shape_cast %281 : vector<1x16x128xf32> to vector<16x128xf32>
    %cst_309 = arith.constant dense<0.000000e+00> : vector<16x128xf32>
    %283 = tpu.matmul %280, %282, %cst_309 {dimension_numbers = #tpu.dot_dimension_numbers<[1], [0], [0], [1], [0, 0, 1, 1], [], []>} : vector<16x16xf32>, vector<16x128xf32>, vector<16x128xf32> -> vector<16x128xf32>
    %284 = arith.addf %274, %283 : vector<16x128xf32>
    %c1_310 = arith.constant 1 : index
    %c0_311 = arith.constant 0 : index
    %c8_312 = arith.constant 8 : index
    %285 = vector.load %arg5[%c1_310, %c0_311, %c8_312] : memref<2x16x256xf32, #tpu.memory_space<vmem>>, vector<1x16x128xf32>
    %286 = vector.shape_cast %285 : vector<1x16x128xf32> to vector<16x128xf32>
    %cst_313 = arith.constant dense<0.000000e+00> : vector<16x128xf32>
    %287 = tpu.matmul %280, %286, %cst_313 {dimension_numbers = #tpu.dot_dimension_numbers<[1], [0], [0], [1], [0, 0, 1, 1], [], []>} : vector<16x16xf32>, vector<16x128xf32>, vector<16x128xf32> -> vector<16x128xf32>
    %288 = arith.addf %278, %287 : vector<16x128xf32>
    %c1_314 = arith.constant 1 : index
    %c9_315 = arith.constant 9 : index
    %c0_316 = arith.constant 0 : index
    %c0_317 = arith.constant 0 : index
    %289 = vector.load %arg2[%c1_314, %c9_315, %c0_316, %c0_317] : memref<4x15x16x16xf32, #tpu.memory_space<vmem>>, vector<1x1x16x16xf32>
    %290 = vector.shape_cast %289 : vector<1x1x16x16xf32> to vector<16x16xf32>
    %c0_318 = arith.constant 0 : index
    %c0_319 = arith.constant 0 : index
    %c9_320 = arith.constant 9 : index
    %291 = vector.load %arg5[%c0_318, %c0_319, %c9_320] : memref<2x16x256xf32, #tpu.memory_space<vmem>>, vector<1x16x128xf32>
    %292 = vector.shape_cast %291 : vector<1x16x128xf32> to vector<16x128xf32>
    %cst_321 = arith.constant dense<0.000000e+00> : vector<16x128xf32>
    %293 = tpu.matmul %290, %292, %cst_321 {dimension_numbers = #tpu.dot_dimension_numbers<[1], [0], [0], [1], [0, 0, 1, 1], [], []>} : vector<16x16xf32>, vector<16x128xf32>, vector<16x128xf32> -> vector<16x128xf32>
    %294 = arith.addf %284, %293 : vector<16x128xf32>
    %c1_322 = arith.constant 1 : index
    %c0_323 = arith.constant 0 : index
    %c9_324 = arith.constant 9 : index
    %295 = vector.load %arg5[%c1_322, %c0_323, %c9_324] : memref<2x16x256xf32, #tpu.memory_space<vmem>>, vector<1x16x128xf32>
    %296 = vector.shape_cast %295 : vector<1x16x128xf32> to vector<16x128xf32>
    %cst_325 = arith.constant dense<0.000000e+00> : vector<16x128xf32>
    %297 = tpu.matmul %290, %296, %cst_325 {dimension_numbers = #tpu.dot_dimension_numbers<[1], [0], [0], [1], [0, 0, 1, 1], [], []>} : vector<16x16xf32>, vector<16x128xf32>, vector<16x128xf32> -> vector<16x128xf32>
    %298 = arith.addf %288, %297 : vector<16x128xf32>
    %c1_326 = arith.constant 1 : index
    %c10_327 = arith.constant 10 : index
    %c0_328 = arith.constant 0 : index
    %c0_329 = arith.constant 0 : index
    %299 = vector.load %arg2[%c1_326, %c10_327, %c0_328, %c0_329] : memref<4x15x16x16xf32, #tpu.memory_space<vmem>>, vector<1x1x16x16xf32>
    %300 = vector.shape_cast %299 : vector<1x1x16x16xf32> to vector<16x16xf32>
    %c0_330 = arith.constant 0 : index
    %c0_331 = arith.constant 0 : index
    %c10_332 = arith.constant 10 : index
    %301 = vector.load %arg5[%c0_330, %c0_331, %c10_332] : memref<2x16x256xf32, #tpu.memory_space<vmem>>, vector<1x16x128xf32>
    %302 = vector.shape_cast %301 : vector<1x16x128xf32> to vector<16x128xf32>
    %cst_333 = arith.constant dense<0.000000e+00> : vector<16x128xf32>
    %303 = tpu.matmul %300, %302, %cst_333 {dimension_numbers = #tpu.dot_dimension_numbers<[1], [0], [0], [1], [0, 0, 1, 1], [], []>} : vector<16x16xf32>, vector<16x128xf32>, vector<16x128xf32> -> vector<16x128xf32>
    %304 = arith.addf %294, %303 : vector<16x128xf32>
    %c1_334 = arith.constant 1 : index
    %c0_335 = arith.constant 0 : index
    %c10_336 = arith.constant 10 : index
    %305 = vector.load %arg5[%c1_334, %c0_335, %c10_336] : memref<2x16x256xf32, #tpu.memory_space<vmem>>, vector<1x16x128xf32>
    %306 = vector.shape_cast %305 : vector<1x16x128xf32> to vector<16x128xf32>
    %cst_337 = arith.constant dense<0.000000e+00> : vector<16x128xf32>
    %307 = tpu.matmul %300, %306, %cst_337 {dimension_numbers = #tpu.dot_dimension_numbers<[1], [0], [0], [1], [0, 0, 1, 1], [], []>} : vector<16x16xf32>, vector<16x128xf32>, vector<16x128xf32> -> vector<16x128xf32>
    %308 = arith.addf %298, %307 : vector<16x128xf32>
    %c1_338 = arith.constant 1 : index
    %c11_339 = arith.constant 11 : index
    %c0_340 = arith.constant 0 : index
    %c0_341 = arith.constant 0 : index
    %309 = vector.load %arg2[%c1_338, %c11_339, %c0_340, %c0_341] : memref<4x15x16x16xf32, #tpu.memory_space<vmem>>, vector<1x1x16x16xf32>
    %310 = vector.shape_cast %309 : vector<1x1x16x16xf32> to vector<16x16xf32>
    %c0_342 = arith.constant 0 : index
    %c0_343 = arith.constant 0 : index
    %c11_344 = arith.constant 11 : index
    %311 = vector.load %arg5[%c0_342, %c0_343, %c11_344] : memref<2x16x256xf32, #tpu.memory_space<vmem>>, vector<1x16x128xf32>
    %312 = vector.shape_cast %311 : vector<1x16x128xf32> to vector<16x128xf32>
    %cst_345 = arith.constant dense<0.000000e+00> : vector<16x128xf32>
    %313 = tpu.matmul %310, %312, %cst_345 {dimension_numbers = #tpu.dot_dimension_numbers<[1], [0], [0], [1], [0, 0, 1, 1], [], []>} : vector<16x16xf32>, vector<16x128xf32>, vector<16x128xf32> -> vector<16x128xf32>
    %314 = arith.addf %304, %313 : vector<16x128xf32>
    %c1_346 = arith.constant 1 : index
    %c0_347 = arith.constant 0 : index
    %c11_348 = arith.constant 11 : index
    %315 = vector.load %arg5[%c1_346, %c0_347, %c11_348] : memref<2x16x256xf32, #tpu.memory_space<vmem>>, vector<1x16x128xf32>
    %316 = vector.shape_cast %315 : vector<1x16x128xf32> to vector<16x128xf32>
    %cst_349 = arith.constant dense<0.000000e+00> : vector<16x128xf32>
    %317 = tpu.matmul %310, %316, %cst_349 {dimension_numbers = #tpu.dot_dimension_numbers<[1], [0], [0], [1], [0, 0, 1, 1], [], []>} : vector<16x16xf32>, vector<16x128xf32>, vector<16x128xf32> -> vector<16x128xf32>
    %318 = arith.addf %308, %317 : vector<16x128xf32>
    %c1_350 = arith.constant 1 : index
    %c12_351 = arith.constant 12 : index
    %c0_352 = arith.constant 0 : index
    %c0_353 = arith.constant 0 : index
    %319 = vector.load %arg2[%c1_350, %c12_351, %c0_352, %c0_353] : memref<4x15x16x16xf32, #tpu.memory_space<vmem>>, vector<1x1x16x16xf32>
    %320 = vector.shape_cast %319 : vector<1x1x16x16xf32> to vector<16x16xf32>
    %c0_354 = arith.constant 0 : index
    %c0_355 = arith.constant 0 : index
    %c12_356 = arith.constant 12 : index
    %321 = vector.load %arg5[%c0_354, %c0_355, %c12_356] : memref<2x16x256xf32, #tpu.memory_space<vmem>>, vector<1x16x128xf32>
    %322 = vector.shape_cast %321 : vector<1x16x128xf32> to vector<16x128xf32>
    %cst_357 = arith.constant dense<0.000000e+00> : vector<16x128xf32>
    %323 = tpu.matmul %320, %322, %cst_357 {dimension_numbers = #tpu.dot_dimension_numbers<[1], [0], [0], [1], [0, 0, 1, 1], [], []>} : vector<16x16xf32>, vector<16x128xf32>, vector<16x128xf32> -> vector<16x128xf32>
    %324 = arith.addf %314, %323 : vector<16x128xf32>
    %c1_358 = arith.constant 1 : index
    %c0_359 = arith.constant 0 : index
    %c12_360 = arith.constant 12 : index
    %325 = vector.load %arg5[%c1_358, %c0_359, %c12_360] : memref<2x16x256xf32, #tpu.memory_space<vmem>>, vector<1x16x128xf32>
    %326 = vector.shape_cast %325 : vector<1x16x128xf32> to vector<16x128xf32>
    %cst_361 = arith.constant dense<0.000000e+00> : vector<16x128xf32>
    %327 = tpu.matmul %320, %326, %cst_361 {dimension_numbers = #tpu.dot_dimension_numbers<[1], [0], [0], [1], [0, 0, 1, 1], [], []>} : vector<16x16xf32>, vector<16x128xf32>, vector<16x128xf32> -> vector<16x128xf32>
    %328 = arith.addf %318, %327 : vector<16x128xf32>
    %c1_362 = arith.constant 1 : index
    %c13_363 = arith.constant 13 : index
    %c0_364 = arith.constant 0 : index
    %c0_365 = arith.constant 0 : index
    %329 = vector.load %arg2[%c1_362, %c13_363, %c0_364, %c0_365] : memref<4x15x16x16xf32, #tpu.memory_space<vmem>>, vector<1x1x16x16xf32>
    %330 = vector.shape_cast %329 : vector<1x1x16x16xf32> to vector<16x16xf32>
    %c0_366 = arith.constant 0 : index
    %c0_367 = arith.constant 0 : index
    %c13_368 = arith.constant 13 : index
    %331 = vector.load %arg5[%c0_366, %c0_367, %c13_368] : memref<2x16x256xf32, #tpu.memory_space<vmem>>, vector<1x16x128xf32>
    %332 = vector.shape_cast %331 : vector<1x16x128xf32> to vector<16x128xf32>
    %cst_369 = arith.constant dense<0.000000e+00> : vector<16x128xf32>
    %333 = tpu.matmul %330, %332, %cst_369 {dimension_numbers = #tpu.dot_dimension_numbers<[1], [0], [0], [1], [0, 0, 1, 1], [], []>} : vector<16x16xf32>, vector<16x128xf32>, vector<16x128xf32> -> vector<16x128xf32>
    %334 = arith.addf %324, %333 : vector<16x128xf32>
    %c1_370 = arith.constant 1 : index
    %c0_371 = arith.constant 0 : index
    %c13_372 = arith.constant 13 : index
    %335 = vector.load %arg5[%c1_370, %c0_371, %c13_372] : memref<2x16x256xf32, #tpu.memory_space<vmem>>, vector<1x16x128xf32>
    %336 = vector.shape_cast %335 : vector<1x16x128xf32> to vector<16x128xf32>
    %cst_373 = arith.constant dense<0.000000e+00> : vector<16x128xf32>
    %337 = tpu.matmul %330, %336, %cst_373 {dimension_numbers = #tpu.dot_dimension_numbers<[1], [0], [0], [1], [0, 0, 1, 1], [], []>} : vector<16x16xf32>, vector<16x128xf32>, vector<16x128xf32> -> vector<16x128xf32>
    %338 = arith.addf %328, %337 : vector<16x128xf32>
    %c1_374 = arith.constant 1 : index
    %c14_375 = arith.constant 14 : index
    %c0_376 = arith.constant 0 : index
    %c0_377 = arith.constant 0 : index
    %339 = vector.load %arg2[%c1_374, %c14_375, %c0_376, %c0_377] : memref<4x15x16x16xf32, #tpu.memory_space<vmem>>, vector<1x1x16x16xf32>
    %340 = vector.shape_cast %339 : vector<1x1x16x16xf32> to vector<16x16xf32>
    %c0_378 = arith.constant 0 : index
    %c0_379 = arith.constant 0 : index
    %c14_380 = arith.constant 14 : index
    %341 = vector.load %arg5[%c0_378, %c0_379, %c14_380] : memref<2x16x256xf32, #tpu.memory_space<vmem>>, vector<1x16x128xf32>
    %342 = vector.shape_cast %341 : vector<1x16x128xf32> to vector<16x128xf32>
    %cst_381 = arith.constant dense<0.000000e+00> : vector<16x128xf32>
    %343 = tpu.matmul %340, %342, %cst_381 {dimension_numbers = #tpu.dot_dimension_numbers<[1], [0], [0], [1], [0, 0, 1, 1], [], []>} : vector<16x16xf32>, vector<16x128xf32>, vector<16x128xf32> -> vector<16x128xf32>
    %344 = arith.addf %334, %343 : vector<16x128xf32>
    %c1_382 = arith.constant 1 : index
    %c0_383 = arith.constant 0 : index
    %c14_384 = arith.constant 14 : index
    %345 = vector.load %arg5[%c1_382, %c0_383, %c14_384] : memref<2x16x256xf32, #tpu.memory_space<vmem>>, vector<1x16x128xf32>
    %346 = vector.shape_cast %345 : vector<1x16x128xf32> to vector<16x128xf32>
    %cst_385 = arith.constant dense<0.000000e+00> : vector<16x128xf32>
    %347 = tpu.matmul %340, %346, %cst_385 {dimension_numbers = #tpu.dot_dimension_numbers<[1], [0], [0], [1], [0, 0, 1, 1], [], []>} : vector<16x16xf32>, vector<16x128xf32>, vector<16x128xf32> -> vector<16x128xf32>
    %348 = arith.addf %338, %347 : vector<16x128xf32>
    %cst_386 = arith.constant 0.000000e+00 : f32
    %349 = vector.broadcast %cst_386 : f32 to vector<16x128xf32>
    %350 = arith.cmpf ogt, %344, %349 : vector<16x128xf32>
    %cst_387 = arith.constant 2.000000e-01 : f32
    %351 = vector.broadcast %cst_387 : f32 to vector<16x128xf32>
    %352 = arith.mulf %351, %344 : vector<16x128xf32>
    %353 = arith.select %350, %344, %352 : vector<16x128xi1>, vector<16x128xf32>
    %cst_388 = arith.constant 0.000000e+00 : f32
    %354 = vector.broadcast %cst_388 : f32 to vector<16x128xf32>
    %355 = arith.cmpf ogt, %348, %354 : vector<16x128xf32>
    %cst_389 = arith.constant 2.000000e-01 : f32
    %356 = vector.broadcast %cst_389 : f32 to vector<16x128xf32>
    %357 = arith.mulf %356, %348 : vector<16x128xf32>
    %358 = arith.select %355, %348, %357 : vector<16x128xi1>, vector<16x128xf32>
    %c0_390 = arith.constant 0 : index
    %c0_391 = arith.constant 0 : index
    %c7_392 = arith.constant 7 : index
    %359 = vector.load %arg5[%c0_390, %c0_391, %c7_392] : memref<2x16x256xf32, #tpu.memory_space<vmem>>, vector<1x16x128xf32>
    %360 = vector.shape_cast %359 : vector<1x16x128xf32> to vector<16x128xf32>
    %361 = vector.shape_cast %353 : vector<16x128xf32> to vector<1x16x128xf32>
    tpu.vector_store %arg5[%c0_390, %c0_391, %c7_392], %361 {strides = array<i32>} : memref<2x16x256xf32, #tpu.memory_space<vmem>>, vector<1x16x128xf32>,
    %c1_393 = arith.constant 1 : index
    %c0_394 = arith.constant 0 : index
    %c7_395 = arith.constant 7 : index
    %362 = vector.load %arg5[%c1_393, %c0_394, %c7_395] : memref<2x16x256xf32, #tpu.memory_space<vmem>>, vector<1x16x128xf32>
    %363 = vector.shape_cast %362 : vector<1x16x128xf32> to vector<16x128xf32>
    %364 = vector.shape_cast %358 : vector<16x128xf32> to vector<1x16x128xf32>
    tpu.vector_store %arg5[%c1_393, %c0_394, %c7_395], %364 {strides = array<i32>} : memref<2x16x256xf32, #tpu.memory_space<vmem>>, vector<1x16x128xf32>,
    %cst_396 = arith.constant 0.000000e+00 : f32
    %365 = vector.broadcast %cst_396 : f32 to vector<16x128xf32>
    %c2_397 = arith.constant 2 : index
    %c0_398 = arith.constant 0 : index
    %c0_399 = arith.constant 0 : index
    %366 = vector.load %arg3[%c2_397, %c0_398, %c0_399] : memref<4x16x1xf32, #tpu.memory_space<vmem>>, vector<1x16x1xf32>
    %367 = vector.shape_cast %366 : vector<1x16x1xf32> to vector<16x1xf32>
    %368 = vector.broadcast %367 : vector<16x1xf32> to vector<16x128xf32>
    %369 = arith.addf %365, %368 : vector<16x128xf32>
    %c2_400 = arith.constant 2 : index
    %c0_401 = arith.constant 0 : index
    %c0_402 = arith.constant 0 : index
    %c0_403 = arith.constant 0 : index
    %370 = vector.load %arg2[%c2_400, %c0_401, %c0_402, %c0_403] : memref<4x15x16x16xf32, #tpu.memory_space<vmem>>, vector<1x1x16x16xf32>
    %371 = vector.shape_cast %370 : vector<1x1x16x16xf32> to vector<16x16xf32>
    %c0_404 = arith.constant 0 : index
    %c0_405 = arith.constant 0 : index
    %c0_406 = arith.constant 0 : index
    %372 = vector.load %arg5[%c0_404, %c0_405, %c0_406] : memref<2x16x256xf32, #tpu.memory_space<vmem>>, vector<1x16x128xf32>
    %373 = vector.shape_cast %372 : vector<1x16x128xf32> to vector<16x128xf32>
    %cst_407 = arith.constant dense<0.000000e+00> : vector<16x128xf32>
    %374 = tpu.matmul %371, %373, %cst_407 {dimension_numbers = #tpu.dot_dimension_numbers<[1], [0], [0], [1], [0, 0, 1, 1], [], []>} : vector<16x16xf32>, vector<16x128xf32>, vector<16x128xf32> -> vector<16x128xf32>
    %375 = arith.addf %369, %374 : vector<16x128xf32>
    %c1_408 = arith.constant 1 : index
    %c0_409 = arith.constant 0 : index
    %c0_410 = arith.constant 0 : index
    %376 = vector.load %arg5[%c1_408, %c0_409, %c0_410] : memref<2x16x256xf32, #tpu.memory_space<vmem>>, vector<1x16x128xf32>
    %377 = vector.shape_cast %376 : vector<1x16x128xf32> to vector<16x128xf32>
    %cst_411 = arith.constant dense<0.000000e+00> : vector<16x128xf32>
    %378 = tpu.matmul %371, %377, %cst_411 {dimension_numbers = #tpu.dot_dimension_numbers<[1], [0], [0], [1], [0, 0, 1, 1], [], []>} : vector<16x16xf32>, vector<16x128xf32>, vector<16x128xf32> -> vector<16x128xf32>
    %379 = arith.addf %369, %378 : vector<16x128xf32>
    %c2_412 = arith.constant 2 : index
    %c1_413 = arith.constant 1 : index
    %c0_414 = arith.constant 0 : index
    %c0_415 = arith.constant 0 : index
    %380 = vector.load %arg2[%c2_412, %c1_413, %c0_414, %c0_415] : memref<4x15x16x16xf32, #tpu.memory_space<vmem>>, vector<1x1x16x16xf32>
    %381 = vector.shape_cast %380 : vector<1x1x16x16xf32> to vector<16x16xf32>
    %c0_416 = arith.constant 0 : index
    %c0_417 = arith.constant 0 : index
    %c1_418 = arith.constant 1 : index
    %382 = vector.load %arg5[%c0_416, %c0_417, %c1_418] : memref<2x16x256xf32, #tpu.memory_space<vmem>>, vector<1x16x128xf32>
    %383 = vector.shape_cast %382 : vector<1x16x128xf32> to vector<16x128xf32>
    %cst_419 = arith.constant dense<0.000000e+00> : vector<16x128xf32>
    %384 = tpu.matmul %381, %383, %cst_419 {dimension_numbers = #tpu.dot_dimension_numbers<[1], [0], [0], [1], [0, 0, 1, 1], [], []>} : vector<16x16xf32>, vector<16x128xf32>, vector<16x128xf32> -> vector<16x128xf32>
    %385 = arith.addf %375, %384 : vector<16x128xf32>
    %c1_420 = arith.constant 1 : index
    %c0_421 = arith.constant 0 : index
    %c1_422 = arith.constant 1 : index
    %386 = vector.load %arg5[%c1_420, %c0_421, %c1_422] : memref<2x16x256xf32, #tpu.memory_space<vmem>>, vector<1x16x128xf32>
    %387 = vector.shape_cast %386 : vector<1x16x128xf32> to vector<16x128xf32>
    %cst_423 = arith.constant dense<0.000000e+00> : vector<16x128xf32>
    %388 = tpu.matmul %381, %387, %cst_423 {dimension_numbers = #tpu.dot_dimension_numbers<[1], [0], [0], [1], [0, 0, 1, 1], [], []>} : vector<16x16xf32>, vector<16x128xf32>, vector<16x128xf32> -> vector<16x128xf32>
    %389 = arith.addf %379, %388 : vector<16x128xf32>
    %c2_424 = arith.constant 2 : index
    %c2_425 = arith.constant 2 : index
    %c0_426 = arith.constant 0 : index
    %c0_427 = arith.constant 0 : index
    %390 = vector.load %arg2[%c2_424, %c2_425, %c0_426, %c0_427] : memref<4x15x16x16xf32, #tpu.memory_space<vmem>>, vector<1x1x16x16xf32>
    %391 = vector.shape_cast %390 : vector<1x1x16x16xf32> to vector<16x16xf32>
    %c0_428 = arith.constant 0 : index
    %c0_429 = arith.constant 0 : index
    %c2_430 = arith.constant 2 : index
    %392 = vector.load %arg5[%c0_428, %c0_429, %c2_430] : memref<2x16x256xf32, #tpu.memory_space<vmem>>, vector<1x16x128xf32>
    %393 = vector.shape_cast %392 : vector<1x16x128xf32> to vector<16x128xf32>
    %cst_431 = arith.constant dense<0.000000e+00> : vector<16x128xf32>
    %394 = tpu.matmul %391, %393, %cst_431 {dimension_numbers = #tpu.dot_dimension_numbers<[1], [0], [0], [1], [0, 0, 1, 1], [], []>} : vector<16x16xf32>, vector<16x128xf32>, vector<16x128xf32> -> vector<16x128xf32>
    %395 = arith.addf %385, %394 : vector<16x128xf32>
    %c1_432 = arith.constant 1 : index
    %c0_433 = arith.constant 0 : index
    %c2_434 = arith.constant 2 : index
    %396 = vector.load %arg5[%c1_432, %c0_433, %c2_434] : memref<2x16x256xf32, #tpu.memory_space<vmem>>, vector<1x16x128xf32>
    %397 = vector.shape_cast %396 : vector<1x16x128xf32> to vector<16x128xf32>
    %cst_435 = arith.constant dense<0.000000e+00> : vector<16x128xf32>
    %398 = tpu.matmul %391, %397, %cst_435 {dimension_numbers = #tpu.dot_dimension_numbers<[1], [0], [0], [1], [0, 0, 1, 1], [], []>} : vector<16x16xf32>, vector<16x128xf32>, vector<16x128xf32> -> vector<16x128xf32>
    %399 = arith.addf %389, %398 : vector<16x128xf32>
    %c2_436 = arith.constant 2 : index
    %c3_437 = arith.constant 3 : index
    %c0_438 = arith.constant 0 : index
    %c0_439 = arith.constant 0 : index
    %400 = vector.load %arg2[%c2_436, %c3_437, %c0_438, %c0_439] : memref<4x15x16x16xf32, #tpu.memory_space<vmem>>, vector<1x1x16x16xf32>
    %401 = vector.shape_cast %400 : vector<1x1x16x16xf32> to vector<16x16xf32>
    %c0_440 = arith.constant 0 : index
    %c0_441 = arith.constant 0 : index
    %c3_442 = arith.constant 3 : index
    %402 = vector.load %arg5[%c0_440, %c0_441, %c3_442] : memref<2x16x256xf32, #tpu.memory_space<vmem>>, vector<1x16x128xf32>
    %403 = vector.shape_cast %402 : vector<1x16x128xf32> to vector<16x128xf32>
    %cst_443 = arith.constant dense<0.000000e+00> : vector<16x128xf32>
    %404 = tpu.matmul %401, %403, %cst_443 {dimension_numbers = #tpu.dot_dimension_numbers<[1], [0], [0], [1], [0, 0, 1, 1], [], []>} : vector<16x16xf32>, vector<16x128xf32>, vector<16x128xf32> -> vector<16x128xf32>
    %405 = arith.addf %395, %404 : vector<16x128xf32>
    %c1_444 = arith.constant 1 : index
    %c0_445 = arith.constant 0 : index
    %c3_446 = arith.constant 3 : index
    %406 = vector.load %arg5[%c1_444, %c0_445, %c3_446] : memref<2x16x256xf32, #tpu.memory_space<vmem>>, vector<1x16x128xf32>
    %407 = vector.shape_cast %406 : vector<1x16x128xf32> to vector<16x128xf32>
    %cst_447 = arith.constant dense<0.000000e+00> : vector<16x128xf32>
    %408 = tpu.matmul %401, %407, %cst_447 {dimension_numbers = #tpu.dot_dimension_numbers<[1], [0], [0], [1], [0, 0, 1, 1], [], []>} : vector<16x16xf32>, vector<16x128xf32>, vector<16x128xf32> -> vector<16x128xf32>
    %409 = arith.addf %399, %408 : vector<16x128xf32>
    %c2_448 = arith.constant 2 : index
    %c4_449 = arith.constant 4 : index
    %c0_450 = arith.constant 0 : index
    %c0_451 = arith.constant 0 : index
    %410 = vector.load %arg2[%c2_448, %c4_449, %c0_450, %c0_451] : memref<4x15x16x16xf32, #tpu.memory_space<vmem>>, vector<1x1x16x16xf32>
    %411 = vector.shape_cast %410 : vector<1x1x16x16xf32> to vector<16x16xf32>
    %c0_452 = arith.constant 0 : index
    %c0_453 = arith.constant 0 : index
    %c4_454 = arith.constant 4 : index
    %412 = vector.load %arg5[%c0_452, %c0_453, %c4_454] : memref<2x16x256xf32, #tpu.memory_space<vmem>>, vector<1x16x128xf32>
    %413 = vector.shape_cast %412 : vector<1x16x128xf32> to vector<16x128xf32>
    %cst_455 = arith.constant dense<0.000000e+00> : vector<16x128xf32>
    %414 = tpu.matmul %411, %413, %cst_455 {dimension_numbers = #tpu.dot_dimension_numbers<[1], [0], [0], [1], [0, 0, 1, 1], [], []>} : vector<16x16xf32>, vector<16x128xf32>, vector<16x128xf32> -> vector<16x128xf32>
    %415 = arith.addf %405, %414 : vector<16x128xf32>
    %c1_456 = arith.constant 1 : index
    %c0_457 = arith.constant 0 : index
    %c4_458 = arith.constant 4 : index
    %416 = vector.load %arg5[%c1_456, %c0_457, %c4_458] : memref<2x16x256xf32, #tpu.memory_space<vmem>>, vector<1x16x128xf32>
    %417 = vector.shape_cast %416 : vector<1x16x128xf32> to vector<16x128xf32>
    %cst_459 = arith.constant dense<0.000000e+00> : vector<16x128xf32>
    %418 = tpu.matmul %411, %417, %cst_459 {dimension_numbers = #tpu.dot_dimension_numbers<[1], [0], [0], [1], [0, 0, 1, 1], [], []>} : vector<16x16xf32>, vector<16x128xf32>, vector<16x128xf32> -> vector<16x128xf32>
    %419 = arith.addf %409, %418 : vector<16x128xf32>
    %c2_460 = arith.constant 2 : index
    %c5_461 = arith.constant 5 : index
    %c0_462 = arith.constant 0 : index
    %c0_463 = arith.constant 0 : index
    %420 = vector.load %arg2[%c2_460, %c5_461, %c0_462, %c0_463] : memref<4x15x16x16xf32, #tpu.memory_space<vmem>>, vector<1x1x16x16xf32>
    %421 = vector.shape_cast %420 : vector<1x1x16x16xf32> to vector<16x16xf32>
    %c0_464 = arith.constant 0 : index
    %c0_465 = arith.constant 0 : index
    %c5_466 = arith.constant 5 : index
    %422 = vector.load %arg5[%c0_464, %c0_465, %c5_466] : memref<2x16x256xf32, #tpu.memory_space<vmem>>, vector<1x16x128xf32>
    %423 = vector.shape_cast %422 : vector<1x16x128xf32> to vector<16x128xf32>
    %cst_467 = arith.constant dense<0.000000e+00> : vector<16x128xf32>
    %424 = tpu.matmul %421, %423, %cst_467 {dimension_numbers = #tpu.dot_dimension_numbers<[1], [0], [0], [1], [0, 0, 1, 1], [], []>} : vector<16x16xf32>, vector<16x128xf32>, vector<16x128xf32> -> vector<16x128xf32>
    %425 = arith.addf %415, %424 : vector<16x128xf32>
    %c1_468 = arith.constant 1 : index
    %c0_469 = arith.constant 0 : index
    %c5_470 = arith.constant 5 : index
    %426 = vector.load %arg5[%c1_468, %c0_469, %c5_470] : memref<2x16x256xf32, #tpu.memory_space<vmem>>, vector<1x16x128xf32>
    %427 = vector.shape_cast %426 : vector<1x16x128xf32> to vector<16x128xf32>
    %cst_471 = arith.constant dense<0.000000e+00> : vector<16x128xf32>
    %428 = tpu.matmul %421, %427, %cst_471 {dimension_numbers = #tpu.dot_dimension_numbers<[1], [0], [0], [1], [0, 0, 1, 1], [], []>} : vector<16x16xf32>, vector<16x128xf32>, vector<16x128xf32> -> vector<16x128xf32>
    %429 = arith.addf %419, %428 : vector<16x128xf32>
    %c2_472 = arith.constant 2 : index
    %c6_473 = arith.constant 6 : index
    %c0_474 = arith.constant 0 : index
    %c0_475 = arith.constant 0 : index
    %430 = vector.load %arg2[%c2_472, %c6_473, %c0_474, %c0_475] : memref<4x15x16x16xf32, #tpu.memory_space<vmem>>, vector<1x1x16x16xf32>
    %431 = vector.shape_cast %430 : vector<1x1x16x16xf32> to vector<16x16xf32>
    %c0_476 = arith.constant 0 : index
    %c0_477 = arith.constant 0 : index
    %c6_478 = arith.constant 6 : index
    %432 = vector.load %arg5[%c0_476, %c0_477, %c6_478] : memref<2x16x256xf32, #tpu.memory_space<vmem>>, vector<1x16x128xf32>
    %433 = vector.shape_cast %432 : vector<1x16x128xf32> to vector<16x128xf32>
    %cst_479 = arith.constant dense<0.000000e+00> : vector<16x128xf32>
    %434 = tpu.matmul %431, %433, %cst_479 {dimension_numbers = #tpu.dot_dimension_numbers<[1], [0], [0], [1], [0, 0, 1, 1], [], []>} : vector<16x16xf32>, vector<16x128xf32>, vector<16x128xf32> -> vector<16x128xf32>
    %435 = arith.addf %425, %434 : vector<16x128xf32>
    %c1_480 = arith.constant 1 : index
    %c0_481 = arith.constant 0 : index
    %c6_482 = arith.constant 6 : index
    %436 = vector.load %arg5[%c1_480, %c0_481, %c6_482] : memref<2x16x256xf32, #tpu.memory_space<vmem>>, vector<1x16x128xf32>
    %437 = vector.shape_cast %436 : vector<1x16x128xf32> to vector<16x128xf32>
    %cst_483 = arith.constant dense<0.000000e+00> : vector<16x128xf32>
    %438 = tpu.matmul %431, %437, %cst_483 {dimension_numbers = #tpu.dot_dimension_numbers<[1], [0], [0], [1], [0, 0, 1, 1], [], []>} : vector<16x16xf32>, vector<16x128xf32>, vector<16x128xf32> -> vector<16x128xf32>
    %439 = arith.addf %429, %438 : vector<16x128xf32>
    %c2_484 = arith.constant 2 : index
    %c7_485 = arith.constant 7 : index
    %c0_486 = arith.constant 0 : index
    %c0_487 = arith.constant 0 : index
    %440 = vector.load %arg2[%c2_484, %c7_485, %c0_486, %c0_487] : memref<4x15x16x16xf32, #tpu.memory_space<vmem>>, vector<1x1x16x16xf32>
    %441 = vector.shape_cast %440 : vector<1x1x16x16xf32> to vector<16x16xf32>
    %c0_488 = arith.constant 0 : index
    %c0_489 = arith.constant 0 : index
    %c7_490 = arith.constant 7 : index
    %442 = vector.load %arg5[%c0_488, %c0_489, %c7_490] : memref<2x16x256xf32, #tpu.memory_space<vmem>>, vector<1x16x128xf32>
    %443 = vector.shape_cast %442 : vector<1x16x128xf32> to vector<16x128xf32>
    %cst_491 = arith.constant dense<0.000000e+00> : vector<16x128xf32>
    %444 = tpu.matmul %441, %443, %cst_491 {dimension_numbers = #tpu.dot_dimension_numbers<[1], [0], [0], [1], [0, 0, 1, 1], [], []>} : vector<16x16xf32>, vector<16x128xf32>, vector<16x128xf32> -> vector<16x128xf32>
    %445 = arith.addf %435, %444 : vector<16x128xf32>
    %c1_492 = arith.constant 1 : index
    %c0_493 = arith.constant 0 : index
    %c7_494 = arith.constant 7 : index
    %446 = vector.load %arg5[%c1_492, %c0_493, %c7_494] : memref<2x16x256xf32, #tpu.memory_space<vmem>>, vector<1x16x128xf32>
    %447 = vector.shape_cast %446 : vector<1x16x128xf32> to vector<16x128xf32>
    %cst_495 = arith.constant dense<0.000000e+00> : vector<16x128xf32>
    %448 = tpu.matmul %441, %447, %cst_495 {dimension_numbers = #tpu.dot_dimension_numbers<[1], [0], [0], [1], [0, 0, 1, 1], [], []>} : vector<16x16xf32>, vector<16x128xf32>, vector<16x128xf32> -> vector<16x128xf32>
    %449 = arith.addf %439, %448 : vector<16x128xf32>
    %c2_496 = arith.constant 2 : index
    %c8_497 = arith.constant 8 : index
    %c0_498 = arith.constant 0 : index
    %c0_499 = arith.constant 0 : index
    %450 = vector.load %arg2[%c2_496, %c8_497, %c0_498, %c0_499] : memref<4x15x16x16xf32, #tpu.memory_space<vmem>>, vector<1x1x16x16xf32>
    %451 = vector.shape_cast %450 : vector<1x1x16x16xf32> to vector<16x16xf32>
    %c0_500 = arith.constant 0 : index
    %c0_501 = arith.constant 0 : index
    %c8_502 = arith.constant 8 : index
    %452 = vector.load %arg5[%c0_500, %c0_501, %c8_502] : memref<2x16x256xf32, #tpu.memory_space<vmem>>, vector<1x16x128xf32>
    %453 = vector.shape_cast %452 : vector<1x16x128xf32> to vector<16x128xf32>
    %cst_503 = arith.constant dense<0.000000e+00> : vector<16x128xf32>
    %454 = tpu.matmul %451, %453, %cst_503 {dimension_numbers = #tpu.dot_dimension_numbers<[1], [0], [0], [1], [0, 0, 1, 1], [], []>} : vector<16x16xf32>, vector<16x128xf32>, vector<16x128xf32> -> vector<16x128xf32>
    %455 = arith.addf %445, %454 : vector<16x128xf32>
    %c1_504 = arith.constant 1 : index
    %c0_505 = arith.constant 0 : index
    %c8_506 = arith.constant 8 : index
    %456 = vector.load %arg5[%c1_504, %c0_505, %c8_506] : memref<2x16x256xf32, #tpu.memory_space<vmem>>, vector<1x16x128xf32>
    %457 = vector.shape_cast %456 : vector<1x16x128xf32> to vector<16x128xf32>
    %cst_507 = arith.constant dense<0.000000e+00> : vector<16x128xf32>
    %458 = tpu.matmul %451, %457, %cst_507 {dimension_numbers = #tpu.dot_dimension_numbers<[1], [0], [0], [1], [0, 0, 1, 1], [], []>} : vector<16x16xf32>, vector<16x128xf32>, vector<16x128xf32> -> vector<16x128xf32>
    %459 = arith.addf %449, %458 : vector<16x128xf32>
    %c2_508 = arith.constant 2 : index
    %c9_509 = arith.constant 9 : index
    %c0_510 = arith.constant 0 : index
    %c0_511 = arith.constant 0 : index
    %460 = vector.load %arg2[%c2_508, %c9_509, %c0_510, %c0_511] : memref<4x15x16x16xf32, #tpu.memory_space<vmem>>, vector<1x1x16x16xf32>
    %461 = vector.shape_cast %460 : vector<1x1x16x16xf32> to vector<16x16xf32>
    %c0_512 = arith.constant 0 : index
    %c0_513 = arith.constant 0 : index
    %c9_514 = arith.constant 9 : index
    %462 = vector.load %arg5[%c0_512, %c0_513, %c9_514] : memref<2x16x256xf32, #tpu.memory_space<vmem>>, vector<1x16x128xf32>
    %463 = vector.shape_cast %462 : vector<1x16x128xf32> to vector<16x128xf32>
    %cst_515 = arith.constant dense<0.000000e+00> : vector<16x128xf32>
    %464 = tpu.matmul %461, %463, %cst_515 {dimension_numbers = #tpu.dot_dimension_numbers<[1], [0], [0], [1], [0, 0, 1, 1], [], []>} : vector<16x16xf32>, vector<16x128xf32>, vector<16x128xf32> -> vector<16x128xf32>
    %465 = arith.addf %455, %464 : vector<16x128xf32>
    %c1_516 = arith.constant 1 : index
    %c0_517 = arith.constant 0 : index
    %c9_518 = arith.constant 9 : index
    %466 = vector.load %arg5[%c1_516, %c0_517, %c9_518] : memref<2x16x256xf32, #tpu.memory_space<vmem>>, vector<1x16x128xf32>
    %467 = vector.shape_cast %466 : vector<1x16x128xf32> to vector<16x128xf32>
    %cst_519 = arith.constant dense<0.000000e+00> : vector<16x128xf32>
    %468 = tpu.matmul %461, %467, %cst_519 {dimension_numbers = #tpu.dot_dimension_numbers<[1], [0], [0], [1], [0, 0, 1, 1], [], []>} : vector<16x16xf32>, vector<16x128xf32>, vector<16x128xf32> -> vector<16x128xf32>
    %469 = arith.addf %459, %468 : vector<16x128xf32>
    %c2_520 = arith.constant 2 : index
    %c10_521 = arith.constant 10 : index
    %c0_522 = arith.constant 0 : index
    %c0_523 = arith.constant 0 : index
    %470 = vector.load %arg2[%c2_520, %c10_521, %c0_522, %c0_523] : memref<4x15x16x16xf32, #tpu.memory_space<vmem>>, vector<1x1x16x16xf32>
    %471 = vector.shape_cast %470 : vector<1x1x16x16xf32> to vector<16x16xf32>
    %c0_524 = arith.constant 0 : index
    %c0_525 = arith.constant 0 : index
    %c10_526 = arith.constant 10 : index
    %472 = vector.load %arg5[%c0_524, %c0_525, %c10_526] : memref<2x16x256xf32, #tpu.memory_space<vmem>>, vector<1x16x128xf32>
    %473 = vector.shape_cast %472 : vector<1x16x128xf32> to vector<16x128xf32>
    %cst_527 = arith.constant dense<0.000000e+00> : vector<16x128xf32>
    %474 = tpu.matmul %471, %473, %cst_527 {dimension_numbers = #tpu.dot_dimension_numbers<[1], [0], [0], [1], [0, 0, 1, 1], [], []>} : vector<16x16xf32>, vector<16x128xf32>, vector<16x128xf32> -> vector<16x128xf32>
    %475 = arith.addf %465, %474 : vector<16x128xf32>
    %c1_528 = arith.constant 1 : index
    %c0_529 = arith.constant 0 : index
    %c10_530 = arith.constant 10 : index
    %476 = vector.load %arg5[%c1_528, %c0_529, %c10_530] : memref<2x16x256xf32, #tpu.memory_space<vmem>>, vector<1x16x128xf32>
    %477 = vector.shape_cast %476 : vector<1x16x128xf32> to vector<16x128xf32>
    %cst_531 = arith.constant dense<0.000000e+00> : vector<16x128xf32>
    %478 = tpu.matmul %471, %477, %cst_531 {dimension_numbers = #tpu.dot_dimension_numbers<[1], [0], [0], [1], [0, 0, 1, 1], [], []>} : vector<16x16xf32>, vector<16x128xf32>, vector<16x128xf32> -> vector<16x128xf32>
    %479 = arith.addf %469, %478 : vector<16x128xf32>
    %c2_532 = arith.constant 2 : index
    %c11_533 = arith.constant 11 : index
    %c0_534 = arith.constant 0 : index
    %c0_535 = arith.constant 0 : index
    %480 = vector.load %arg2[%c2_532, %c11_533, %c0_534, %c0_535] : memref<4x15x16x16xf32, #tpu.memory_space<vmem>>, vector<1x1x16x16xf32>
    %481 = vector.shape_cast %480 : vector<1x1x16x16xf32> to vector<16x16xf32>
    %c0_536 = arith.constant 0 : index
    %c0_537 = arith.constant 0 : index
    %c11_538 = arith.constant 11 : index
    %482 = vector.load %arg5[%c0_536, %c0_537, %c11_538] : memref<2x16x256xf32, #tpu.memory_space<vmem>>, vector<1x16x128xf32>
    %483 = vector.shape_cast %482 : vector<1x16x128xf32> to vector<16x128xf32>
    %cst_539 = arith.constant dense<0.000000e+00> : vector<16x128xf32>
    %484 = tpu.matmul %481, %483, %cst_539 {dimension_numbers = #tpu.dot_dimension_numbers<[1], [0], [0], [1], [0, 0, 1, 1], [], []>} : vector<16x16xf32>, vector<16x128xf32>, vector<16x128xf32> -> vector<16x128xf32>
    %485 = arith.addf %475, %484 : vector<16x128xf32>
    %c1_540 = arith.constant 1 : index
    %c0_541 = arith.constant 0 : index
    %c11_542 = arith.constant 11 : index
    %486 = vector.load %arg5[%c1_540, %c0_541, %c11_542] : memref<2x16x256xf32, #tpu.memory_space<vmem>>, vector<1x16x128xf32>
    %487 = vector.shape_cast %486 : vector<1x16x128xf32> to vector<16x128xf32>
    %cst_543 = arith.constant dense<0.000000e+00> : vector<16x128xf32>
    %488 = tpu.matmul %481, %487, %cst_543 {dimension_numbers = #tpu.dot_dimension_numbers<[1], [0], [0], [1], [0, 0, 1, 1], [], []>} : vector<16x16xf32>, vector<16x128xf32>, vector<16x128xf32> -> vector<16x128xf32>
    %489 = arith.addf %479, %488 : vector<16x128xf32>
    %c2_544 = arith.constant 2 : index
    %c12_545 = arith.constant 12 : index
    %c0_546 = arith.constant 0 : index
    %c0_547 = arith.constant 0 : index
    %490 = vector.load %arg2[%c2_544, %c12_545, %c0_546, %c0_547] : memref<4x15x16x16xf32, #tpu.memory_space<vmem>>, vector<1x1x16x16xf32>
    %491 = vector.shape_cast %490 : vector<1x1x16x16xf32> to vector<16x16xf32>
    %c0_548 = arith.constant 0 : index
    %c0_549 = arith.constant 0 : index
    %c12_550 = arith.constant 12 : index
    %492 = vector.load %arg5[%c0_548, %c0_549, %c12_550] : memref<2x16x256xf32, #tpu.memory_space<vmem>>, vector<1x16x128xf32>
    %493 = vector.shape_cast %492 : vector<1x16x128xf32> to vector<16x128xf32>
    %cst_551 = arith.constant dense<0.000000e+00> : vector<16x128xf32>
    %494 = tpu.matmul %491, %493, %cst_551 {dimension_numbers = #tpu.dot_dimension_numbers<[1], [0], [0], [1], [0, 0, 1, 1], [], []>} : vector<16x16xf32>, vector<16x128xf32>, vector<16x128xf32> -> vector<16x128xf32>
    %495 = arith.addf %485, %494 : vector<16x128xf32>
    %c1_552 = arith.constant 1 : index
    %c0_553 = arith.constant 0 : index
    %c12_554 = arith.constant 12 : index
    %496 = vector.load %arg5[%c1_552, %c0_553, %c12_554] : memref<2x16x256xf32, #tpu.memory_space<vmem>>, vector<1x16x128xf32>
    %497 = vector.shape_cast %496 : vector<1x16x128xf32> to vector<16x128xf32>
    %cst_555 = arith.constant dense<0.000000e+00> : vector<16x128xf32>
    %498 = tpu.matmul %491, %497, %cst_555 {dimension_numbers = #tpu.dot_dimension_numbers<[1], [0], [0], [1], [0, 0, 1, 1], [], []>} : vector<16x16xf32>, vector<16x128xf32>, vector<16x128xf32> -> vector<16x128xf32>
    %499 = arith.addf %489, %498 : vector<16x128xf32>
    %c2_556 = arith.constant 2 : index
    %c13_557 = arith.constant 13 : index
    %c0_558 = arith.constant 0 : index
    %c0_559 = arith.constant 0 : index
    %500 = vector.load %arg2[%c2_556, %c13_557, %c0_558, %c0_559] : memref<4x15x16x16xf32, #tpu.memory_space<vmem>>, vector<1x1x16x16xf32>
    %501 = vector.shape_cast %500 : vector<1x1x16x16xf32> to vector<16x16xf32>
    %c0_560 = arith.constant 0 : index
    %c0_561 = arith.constant 0 : index
    %c13_562 = arith.constant 13 : index
    %502 = vector.load %arg5[%c0_560, %c0_561, %c13_562] : memref<2x16x256xf32, #tpu.memory_space<vmem>>, vector<1x16x128xf32>
    %503 = vector.shape_cast %502 : vector<1x16x128xf32> to vector<16x128xf32>
    %cst_563 = arith.constant dense<0.000000e+00> : vector<16x128xf32>
    %504 = tpu.matmul %501, %503, %cst_563 {dimension_numbers = #tpu.dot_dimension_numbers<[1], [0], [0], [1], [0, 0, 1, 1], [], []>} : vector<16x16xf32>, vector<16x128xf32>, vector<16x128xf32> -> vector<16x128xf32>
    %505 = arith.addf %495, %504 : vector<16x128xf32>
    %c1_564 = arith.constant 1 : index
    %c0_565 = arith.constant 0 : index
    %c13_566 = arith.constant 13 : index
    %506 = vector.load %arg5[%c1_564, %c0_565, %c13_566] : memref<2x16x256xf32, #tpu.memory_space<vmem>>, vector<1x16x128xf32>
    %507 = vector.shape_cast %506 : vector<1x16x128xf32> to vector<16x128xf32>
    %cst_567 = arith.constant dense<0.000000e+00> : vector<16x128xf32>
    %508 = tpu.matmul %501, %507, %cst_567 {dimension_numbers = #tpu.dot_dimension_numbers<[1], [0], [0], [1], [0, 0, 1, 1], [], []>} : vector<16x16xf32>, vector<16x128xf32>, vector<16x128xf32> -> vector<16x128xf32>
    %509 = arith.addf %499, %508 : vector<16x128xf32>
    %c2_568 = arith.constant 2 : index
    %c14_569 = arith.constant 14 : index
    %c0_570 = arith.constant 0 : index
    %c0_571 = arith.constant 0 : index
    %510 = vector.load %arg2[%c2_568, %c14_569, %c0_570, %c0_571] : memref<4x15x16x16xf32, #tpu.memory_space<vmem>>, vector<1x1x16x16xf32>
    %511 = vector.shape_cast %510 : vector<1x1x16x16xf32> to vector<16x16xf32>
    %c0_572 = arith.constant 0 : index
    %c0_573 = arith.constant 0 : index
    %c14_574 = arith.constant 14 : index
    %512 = vector.load %arg5[%c0_572, %c0_573, %c14_574] : memref<2x16x256xf32, #tpu.memory_space<vmem>>, vector<1x16x128xf32>
    %513 = vector.shape_cast %512 : vector<1x16x128xf32> to vector<16x128xf32>
    %cst_575 = arith.constant dense<0.000000e+00> : vector<16x128xf32>
    %514 = tpu.matmul %511, %513, %cst_575 {dimension_numbers = #tpu.dot_dimension_numbers<[1], [0], [0], [1], [0, 0, 1, 1], [], []>} : vector<16x16xf32>, vector<16x128xf32>, vector<16x128xf32> -> vector<16x128xf32>
    %515 = arith.addf %505, %514 : vector<16x128xf32>
    %c1_576 = arith.constant 1 : index
    %c0_577 = arith.constant 0 : index
    %c14_578 = arith.constant 14 : index
    %516 = vector.load %arg5[%c1_576, %c0_577, %c14_578] : memref<2x16x256xf32, #tpu.memory_space<vmem>>, vector<1x16x128xf32>
    %517 = vector.shape_cast %516 : vector<1x16x128xf32> to vector<16x128xf32>
    %cst_579 = arith.constant dense<0.000000e+00> : vector<16x128xf32>
    %518 = tpu.matmul %511, %517, %cst_579 {dimension_numbers = #tpu.dot_dimension_numbers<[1], [0], [0], [1], [0, 0, 1, 1], [], []>} : vector<16x16xf32>, vector<16x128xf32>, vector<16x128xf32> -> vector<16x128xf32>
    %519 = arith.addf %509, %518 : vector<16x128xf32>
    %cst_580 = arith.constant 0.000000e+00 : f32
    %520 = vector.broadcast %cst_580 : f32 to vector<16x128xf32>
    %521 = arith.cmpf ogt, %515, %520 : vector<16x128xf32>
    %cst_581 = arith.constant 2.000000e-01 : f32
    %522 = vector.broadcast %cst_581 : f32 to vector<16x128xf32>
    %523 = arith.mulf %522, %515 : vector<16x128xf32>
    %524 = arith.select %521, %515, %523 : vector<16x128xi1>, vector<16x128xf32>
    %cst_582 = arith.constant 0.000000e+00 : f32
    %525 = vector.broadcast %cst_582 : f32 to vector<16x128xf32>
    %526 = arith.cmpf ogt, %519, %525 : vector<16x128xf32>
    %cst_583 = arith.constant 2.000000e-01 : f32
    %527 = vector.broadcast %cst_583 : f32 to vector<16x128xf32>
    %528 = arith.mulf %527, %519 : vector<16x128xf32>
    %529 = arith.select %526, %519, %528 : vector<16x128xi1>, vector<16x128xf32>
    %c0_584 = arith.constant 0 : index
    %c0_585 = arith.constant 0 : index
    %c7_586 = arith.constant 7 : index
    %530 = vector.load %arg5[%c0_584, %c0_585, %c7_586] : memref<2x16x256xf32, #tpu.memory_space<vmem>>, vector<1x16x128xf32>
    %531 = vector.shape_cast %530 : vector<1x16x128xf32> to vector<16x128xf32>
    %532 = vector.shape_cast %524 : vector<16x128xf32> to vector<1x16x128xf32>
    tpu.vector_store %arg5[%c0_584, %c0_585, %c7_586], %532 {strides = array<i32>} : memref<2x16x256xf32, #tpu.memory_space<vmem>>, vector<1x16x128xf32>,
    %c1_587 = arith.constant 1 : index
    %c0_588 = arith.constant 0 : index
    %c7_589 = arith.constant 7 : index
    %533 = vector.load %arg5[%c1_587, %c0_588, %c7_589] : memref<2x16x256xf32, #tpu.memory_space<vmem>>, vector<1x16x128xf32>
    %534 = vector.shape_cast %533 : vector<1x16x128xf32> to vector<16x128xf32>
    %535 = vector.shape_cast %529 : vector<16x128xf32> to vector<1x16x128xf32>
    tpu.vector_store %arg5[%c1_587, %c0_588, %c7_589], %535 {strides = array<i32>} : memref<2x16x256xf32, #tpu.memory_space<vmem>>, vector<1x16x128xf32>,
    %cst_590 = arith.constant 0.000000e+00 : f32
    %536 = vector.broadcast %cst_590 : f32 to vector<16x128xf32>
    %c3_591 = arith.constant 3 : index
    %c0_592 = arith.constant 0 : index
    %c0_593 = arith.constant 0 : index
    %537 = vector.load %arg3[%c3_591, %c0_592, %c0_593] : memref<4x16x1xf32, #tpu.memory_space<vmem>>, vector<1x16x1xf32>
    %538 = vector.shape_cast %537 : vector<1x16x1xf32> to vector<16x1xf32>
    %539 = vector.broadcast %538 : vector<16x1xf32> to vector<16x128xf32>
    %540 = arith.addf %536, %539 : vector<16x128xf32>
    %c3_594 = arith.constant 3 : index
    %c0_595 = arith.constant 0 : index
    %c0_596 = arith.constant 0 : index
    %c0_597 = arith.constant 0 : index
    %541 = vector.load %arg2[%c3_594, %c0_595, %c0_596, %c0_597] : memref<4x15x16x16xf32, #tpu.memory_space<vmem>>, vector<1x1x16x16xf32>
    %542 = vector.shape_cast %541 : vector<1x1x16x16xf32> to vector<16x16xf32>
    %c0_598 = arith.constant 0 : index
    %c0_599 = arith.constant 0 : index
    %c0_600 = arith.constant 0 : index
    %543 = vector.load %arg5[%c0_598, %c0_599, %c0_600] : memref<2x16x256xf32, #tpu.memory_space<vmem>>, vector<1x16x128xf32>
    %544 = vector.shape_cast %543 : vector<1x16x128xf32> to vector<16x128xf32>
    %cst_601 = arith.constant dense<0.000000e+00> : vector<16x128xf32>
    %545 = tpu.matmul %542, %544, %cst_601 {dimension_numbers = #tpu.dot_dimension_numbers<[1], [0], [0], [1], [0, 0, 1, 1], [], []>} : vector<16x16xf32>, vector<16x128xf32>, vector<16x128xf32> -> vector<16x128xf32>
    %546 = arith.addf %540, %545 : vector<16x128xf32>
    %c1_602 = arith.constant 1 : index
    %c0_603 = arith.constant 0 : index
    %c0_604 = arith.constant 0 : index
    %547 = vector.load %arg5[%c1_602, %c0_603, %c0_604] : memref<2x16x256xf32, #tpu.memory_space<vmem>>, vector<1x16x128xf32>
    %548 = vector.shape_cast %547 : vector<1x16x128xf32> to vector<16x128xf32>
    %cst_605 = arith.constant dense<0.000000e+00> : vector<16x128xf32>
    %549 = tpu.matmul %542, %548, %cst_605 {dimension_numbers = #tpu.dot_dimension_numbers<[1], [0], [0], [1], [0, 0, 1, 1], [], []>} : vector<16x16xf32>, vector<16x128xf32>, vector<16x128xf32> -> vector<16x128xf32>
    %550 = arith.addf %540, %549 : vector<16x128xf32>
    %c3_606 = arith.constant 3 : index
    %c1_607 = arith.constant 1 : index
    %c0_608 = arith.constant 0 : index
    %c0_609 = arith.constant 0 : index
    %551 = vector.load %arg2[%c3_606, %c1_607, %c0_608, %c0_609] : memref<4x15x16x16xf32, #tpu.memory_space<vmem>>, vector<1x1x16x16xf32>
    %552 = vector.shape_cast %551 : vector<1x1x16x16xf32> to vector<16x16xf32>
    %c0_610 = arith.constant 0 : index
    %c0_611 = arith.constant 0 : index
    %c1_612 = arith.constant 1 : index
    %553 = vector.load %arg5[%c0_610, %c0_611, %c1_612] : memref<2x16x256xf32, #tpu.memory_space<vmem>>, vector<1x16x128xf32>
    %554 = vector.shape_cast %553 : vector<1x16x128xf32> to vector<16x128xf32>
    %cst_613 = arith.constant dense<0.000000e+00> : vector<16x128xf32>
    %555 = tpu.matmul %552, %554, %cst_613 {dimension_numbers = #tpu.dot_dimension_numbers<[1], [0], [0], [1], [0, 0, 1, 1], [], []>} : vector<16x16xf32>, vector<16x128xf32>, vector<16x128xf32> -> vector<16x128xf32>
    %556 = arith.addf %546, %555 : vector<16x128xf32>
    %c1_614 = arith.constant 1 : index
    %c0_615 = arith.constant 0 : index
    %c1_616 = arith.constant 1 : index
    %557 = vector.load %arg5[%c1_614, %c0_615, %c1_616] : memref<2x16x256xf32, #tpu.memory_space<vmem>>, vector<1x16x128xf32>
    %558 = vector.shape_cast %557 : vector<1x16x128xf32> to vector<16x128xf32>
    %cst_617 = arith.constant dense<0.000000e+00> : vector<16x128xf32>
    %559 = tpu.matmul %552, %558, %cst_617 {dimension_numbers = #tpu.dot_dimension_numbers<[1], [0], [0], [1], [0, 0, 1, 1], [], []>} : vector<16x16xf32>, vector<16x128xf32>, vector<16x128xf32> -> vector<16x128xf32>
    %560 = arith.addf %550, %559 : vector<16x128xf32>
    %c3_618 = arith.constant 3 : index
    %c2_619 = arith.constant 2 : index
    %c0_620 = arith.constant 0 : index
    %c0_621 = arith.constant 0 : index
    %561 = vector.load %arg2[%c3_618, %c2_619, %c0_620, %c0_621] : memref<4x15x16x16xf32, #tpu.memory_space<vmem>>, vector<1x1x16x16xf32>
    %562 = vector.shape_cast %561 : vector<1x1x16x16xf32> to vector<16x16xf32>
    %c0_622 = arith.constant 0 : index
    %c0_623 = arith.constant 0 : index
    %c2_624 = arith.constant 2 : index
    %563 = vector.load %arg5[%c0_622, %c0_623, %c2_624] : memref<2x16x256xf32, #tpu.memory_space<vmem>>, vector<1x16x128xf32>
    %564 = vector.shape_cast %563 : vector<1x16x128xf32> to vector<16x128xf32>
    %cst_625 = arith.constant dense<0.000000e+00> : vector<16x128xf32>
    %565 = tpu.matmul %562, %564, %cst_625 {dimension_numbers = #tpu.dot_dimension_numbers<[1], [0], [0], [1], [0, 0, 1, 1], [], []>} : vector<16x16xf32>, vector<16x128xf32>, vector<16x128xf32> -> vector<16x128xf32>
    %566 = arith.addf %556, %565 : vector<16x128xf32>
    %c1_626 = arith.constant 1 : index
    %c0_627 = arith.constant 0 : index
    %c2_628 = arith.constant 2 : index
    %567 = vector.load %arg5[%c1_626, %c0_627, %c2_628] : memref<2x16x256xf32, #tpu.memory_space<vmem>>, vector<1x16x128xf32>
    %568 = vector.shape_cast %567 : vector<1x16x128xf32> to vector<16x128xf32>
    %cst_629 = arith.constant dense<0.000000e+00> : vector<16x128xf32>
    %569 = tpu.matmul %562, %568, %cst_629 {dimension_numbers = #tpu.dot_dimension_numbers<[1], [0], [0], [1], [0, 0, 1, 1], [], []>} : vector<16x16xf32>, vector<16x128xf32>, vector<16x128xf32> -> vector<16x128xf32>
    %570 = arith.addf %560, %569 : vector<16x128xf32>
    %c3_630 = arith.constant 3 : index
    %c3_631 = arith.constant 3 : index
    %c0_632 = arith.constant 0 : index
    %c0_633 = arith.constant 0 : index
    %571 = vector.load %arg2[%c3_630, %c3_631, %c0_632, %c0_633] : memref<4x15x16x16xf32, #tpu.memory_space<vmem>>, vector<1x1x16x16xf32>
    %572 = vector.shape_cast %571 : vector<1x1x16x16xf32> to vector<16x16xf32>
    %c0_634 = arith.constant 0 : index
    %c0_635 = arith.constant 0 : index
    %c3_636 = arith.constant 3 : index
    %573 = vector.load %arg5[%c0_634, %c0_635, %c3_636] : memref<2x16x256xf32, #tpu.memory_space<vmem>>, vector<1x16x128xf32>
    %574 = vector.shape_cast %573 : vector<1x16x128xf32> to vector<16x128xf32>
    %cst_637 = arith.constant dense<0.000000e+00> : vector<16x128xf32>
    %575 = tpu.matmul %572, %574, %cst_637 {dimension_numbers = #tpu.dot_dimension_numbers<[1], [0], [0], [1], [0, 0, 1, 1], [], []>} : vector<16x16xf32>, vector<16x128xf32>, vector<16x128xf32> -> vector<16x128xf32>
    %576 = arith.addf %566, %575 : vector<16x128xf32>
    %c1_638 = arith.constant 1 : index
    %c0_639 = arith.constant 0 : index
    %c3_640 = arith.constant 3 : index
    %577 = vector.load %arg5[%c1_638, %c0_639, %c3_640] : memref<2x16x256xf32, #tpu.memory_space<vmem>>, vector<1x16x128xf32>
    %578 = vector.shape_cast %577 : vector<1x16x128xf32> to vector<16x128xf32>
    %cst_641 = arith.constant dense<0.000000e+00> : vector<16x128xf32>
    %579 = tpu.matmul %572, %578, %cst_641 {dimension_numbers = #tpu.dot_dimension_numbers<[1], [0], [0], [1], [0, 0, 1, 1], [], []>} : vector<16x16xf32>, vector<16x128xf32>, vector<16x128xf32> -> vector<16x128xf32>
    %580 = arith.addf %570, %579 : vector<16x128xf32>
    %c3_642 = arith.constant 3 : index
    %c4_643 = arith.constant 4 : index
    %c0_644 = arith.constant 0 : index
    %c0_645 = arith.constant 0 : index
    %581 = vector.load %arg2[%c3_642, %c4_643, %c0_644, %c0_645] : memref<4x15x16x16xf32, #tpu.memory_space<vmem>>, vector<1x1x16x16xf32>
    %582 = vector.shape_cast %581 : vector<1x1x16x16xf32> to vector<16x16xf32>
    %c0_646 = arith.constant 0 : index
    %c0_647 = arith.constant 0 : index
    %c4_648 = arith.constant 4 : index
    %583 = vector.load %arg5[%c0_646, %c0_647, %c4_648] : memref<2x16x256xf32, #tpu.memory_space<vmem>>, vector<1x16x128xf32>
    %584 = vector.shape_cast %583 : vector<1x16x128xf32> to vector<16x128xf32>
    %cst_649 = arith.constant dense<0.000000e+00> : vector<16x128xf32>
    %585 = tpu.matmul %582, %584, %cst_649 {dimension_numbers = #tpu.dot_dimension_numbers<[1], [0], [0], [1], [0, 0, 1, 1], [], []>} : vector<16x16xf32>, vector<16x128xf32>, vector<16x128xf32> -> vector<16x128xf32>
    %586 = arith.addf %576, %585 : vector<16x128xf32>
    %c1_650 = arith.constant 1 : index
    %c0_651 = arith.constant 0 : index
    %c4_652 = arith.constant 4 : index
    %587 = vector.load %arg5[%c1_650, %c0_651, %c4_652] : memref<2x16x256xf32, #tpu.memory_space<vmem>>, vector<1x16x128xf32>
    %588 = vector.shape_cast %587 : vector<1x16x128xf32> to vector<16x128xf32>
    %cst_653 = arith.constant dense<0.000000e+00> : vector<16x128xf32>
    %589 = tpu.matmul %582, %588, %cst_653 {dimension_numbers = #tpu.dot_dimension_numbers<[1], [0], [0], [1], [0, 0, 1, 1], [], []>} : vector<16x16xf32>, vector<16x128xf32>, vector<16x128xf32> -> vector<16x128xf32>
    %590 = arith.addf %580, %589 : vector<16x128xf32>
    %c3_654 = arith.constant 3 : index
    %c5_655 = arith.constant 5 : index
    %c0_656 = arith.constant 0 : index
    %c0_657 = arith.constant 0 : index
    %591 = vector.load %arg2[%c3_654, %c5_655, %c0_656, %c0_657] : memref<4x15x16x16xf32, #tpu.memory_space<vmem>>, vector<1x1x16x16xf32>
    %592 = vector.shape_cast %591 : vector<1x1x16x16xf32> to vector<16x16xf32>
    %c0_658 = arith.constant 0 : index
    %c0_659 = arith.constant 0 : index
    %c5_660 = arith.constant 5 : index
    %593 = vector.load %arg5[%c0_658, %c0_659, %c5_660] : memref<2x16x256xf32, #tpu.memory_space<vmem>>, vector<1x16x128xf32>
    %594 = vector.shape_cast %593 : vector<1x16x128xf32> to vector<16x128xf32>
    %cst_661 = arith.constant dense<0.000000e+00> : vector<16x128xf32>
    %595 = tpu.matmul %592, %594, %cst_661 {dimension_numbers = #tpu.dot_dimension_numbers<[1], [0], [0], [1], [0, 0, 1, 1], [], []>} : vector<16x16xf32>, vector<16x128xf32>, vector<16x128xf32> -> vector<16x128xf32>
    %596 = arith.addf %586, %595 : vector<16x128xf32>
    %c1_662 = arith.constant 1 : index
    %c0_663 = arith.constant 0 : index
    %c5_664 = arith.constant 5 : index
    %597 = vector.load %arg5[%c1_662, %c0_663, %c5_664] : memref<2x16x256xf32, #tpu.memory_space<vmem>>, vector<1x16x128xf32>
    %598 = vector.shape_cast %597 : vector<1x16x128xf32> to vector<16x128xf32>
    %cst_665 = arith.constant dense<0.000000e+00> : vector<16x128xf32>
    %599 = tpu.matmul %592, %598, %cst_665 {dimension_numbers = #tpu.dot_dimension_numbers<[1], [0], [0], [1], [0, 0, 1, 1], [], []>} : vector<16x16xf32>, vector<16x128xf32>, vector<16x128xf32> -> vector<16x128xf32>
    %600 = arith.addf %590, %599 : vector<16x128xf32>
    %c3_666 = arith.constant 3 : index
    %c6_667 = arith.constant 6 : index
    %c0_668 = arith.constant 0 : index
    %c0_669 = arith.constant 0 : index
    %601 = vector.load %arg2[%c3_666, %c6_667, %c0_668, %c0_669] : memref<4x15x16x16xf32, #tpu.memory_space<vmem>>, vector<1x1x16x16xf32>
    %602 = vector.shape_cast %601 : vector<1x1x16x16xf32> to vector<16x16xf32>
    %c0_670 = arith.constant 0 : index
    %c0_671 = arith.constant 0 : index
    %c6_672 = arith.constant 6 : index
    %603 = vector.load %arg5[%c0_670, %c0_671, %c6_672] : memref<2x16x256xf32, #tpu.memory_space<vmem>>, vector<1x16x128xf32>
    %604 = vector.shape_cast %603 : vector<1x16x128xf32> to vector<16x128xf32>
    %cst_673 = arith.constant dense<0.000000e+00> : vector<16x128xf32>
    %605 = tpu.matmul %602, %604, %cst_673 {dimension_numbers = #tpu.dot_dimension_numbers<[1], [0], [0], [1], [0, 0, 1, 1], [], []>} : vector<16x16xf32>, vector<16x128xf32>, vector<16x128xf32> -> vector<16x128xf32>
    %606 = arith.addf %596, %605 : vector<16x128xf32>
    %c1_674 = arith.constant 1 : index
    %c0_675 = arith.constant 0 : index
    %c6_676 = arith.constant 6 : index
    %607 = vector.load %arg5[%c1_674, %c0_675, %c6_676] : memref<2x16x256xf32, #tpu.memory_space<vmem>>, vector<1x16x128xf32>
    %608 = vector.shape_cast %607 : vector<1x16x128xf32> to vector<16x128xf32>
    %cst_677 = arith.constant dense<0.000000e+00> : vector<16x128xf32>
    %609 = tpu.matmul %602, %608, %cst_677 {dimension_numbers = #tpu.dot_dimension_numbers<[1], [0], [0], [1], [0, 0, 1, 1], [], []>} : vector<16x16xf32>, vector<16x128xf32>, vector<16x128xf32> -> vector<16x128xf32>
    %610 = arith.addf %600, %609 : vector<16x128xf32>
    %c3_678 = arith.constant 3 : index
    %c7_679 = arith.constant 7 : index
    %c0_680 = arith.constant 0 : index
    %c0_681 = arith.constant 0 : index
    %611 = vector.load %arg2[%c3_678, %c7_679, %c0_680, %c0_681] : memref<4x15x16x16xf32, #tpu.memory_space<vmem>>, vector<1x1x16x16xf32>
    %612 = vector.shape_cast %611 : vector<1x1x16x16xf32> to vector<16x16xf32>
    %c0_682 = arith.constant 0 : index
    %c0_683 = arith.constant 0 : index
    %c7_684 = arith.constant 7 : index
    %613 = vector.load %arg5[%c0_682, %c0_683, %c7_684] : memref<2x16x256xf32, #tpu.memory_space<vmem>>, vector<1x16x128xf32>
    %614 = vector.shape_cast %613 : vector<1x16x128xf32> to vector<16x128xf32>
    %cst_685 = arith.constant dense<0.000000e+00> : vector<16x128xf32>
    %615 = tpu.matmul %612, %614, %cst_685 {dimension_numbers = #tpu.dot_dimension_numbers<[1], [0], [0], [1], [0, 0, 1, 1], [], []>} : vector<16x16xf32>, vector<16x128xf32>, vector<16x128xf32> -> vector<16x128xf32>
    %616 = arith.addf %606, %615 : vector<16x128xf32>
    %c1_686 = arith.constant 1 : index
    %c0_687 = arith.constant 0 : index
    %c7_688 = arith.constant 7 : index
    %617 = vector.load %arg5[%c1_686, %c0_687, %c7_688] : memref<2x16x256xf32, #tpu.memory_space<vmem>>, vector<1x16x128xf32>
    %618 = vector.shape_cast %617 : vector<1x16x128xf32> to vector<16x128xf32>
    %cst_689 = arith.constant dense<0.000000e+00> : vector<16x128xf32>
    %619 = tpu.matmul %612, %618, %cst_689 {dimension_numbers = #tpu.dot_dimension_numbers<[1], [0], [0], [1], [0, 0, 1, 1], [], []>} : vector<16x16xf32>, vector<16x128xf32>, vector<16x128xf32> -> vector<16x128xf32>
    %620 = arith.addf %610, %619 : vector<16x128xf32>
    %c3_690 = arith.constant 3 : index
    %c8_691 = arith.constant 8 : index
    %c0_692 = arith.constant 0 : index
    %c0_693 = arith.constant 0 : index
    %621 = vector.load %arg2[%c3_690, %c8_691, %c0_692, %c0_693] : memref<4x15x16x16xf32, #tpu.memory_space<vmem>>, vector<1x1x16x16xf32>
    %622 = vector.shape_cast %621 : vector<1x1x16x16xf32> to vector<16x16xf32>
    %c0_694 = arith.constant 0 : index
    %c0_695 = arith.constant 0 : index
    %c8_696 = arith.constant 8 : index
    %623 = vector.load %arg5[%c0_694, %c0_695, %c8_696] : memref<2x16x256xf32, #tpu.memory_space<vmem>>, vector<1x16x128xf32>
    %624 = vector.shape_cast %623 : vector<1x16x128xf32> to vector<16x128xf32>
    %cst_697 = arith.constant dense<0.000000e+00> : vector<16x128xf32>
    %625 = tpu.matmul %622, %624, %cst_697 {dimension_numbers = #tpu.dot_dimension_numbers<[1], [0], [0], [1], [0, 0, 1, 1], [], []>} : vector<16x16xf32>, vector<16x128xf32>, vector<16x128xf32> -> vector<16x128xf32>
    %626 = arith.addf %616, %625 : vector<16x128xf32>
    %c1_698 = arith.constant 1 : index
    %c0_699 = arith.constant 0 : index
    %c8_700 = arith.constant 8 : index
    %627 = vector.load %arg5[%c1_698, %c0_699, %c8_700] : memref<2x16x256xf32, #tpu.memory_space<vmem>>, vector<1x16x128xf32>
    %628 = vector.shape_cast %627 : vector<1x16x128xf32> to vector<16x128xf32>
    %cst_701 = arith.constant dense<0.000000e+00> : vector<16x128xf32>
    %629 = tpu.matmul %622, %628, %cst_701 {dimension_numbers = #tpu.dot_dimension_numbers<[1], [0], [0], [1], [0, 0, 1, 1], [], []>} : vector<16x16xf32>, vector<16x128xf32>, vector<16x128xf32> -> vector<16x128xf32>
    %630 = arith.addf %620, %629 : vector<16x128xf32>
    %c3_702 = arith.constant 3 : index
    %c9_703 = arith.constant 9 : index
    %c0_704 = arith.constant 0 : index
    %c0_705 = arith.constant 0 : index
    %631 = vector.load %arg2[%c3_702, %c9_703, %c0_704, %c0_705] : memref<4x15x16x16xf32, #tpu.memory_space<vmem>>, vector<1x1x16x16xf32>
    %632 = vector.shape_cast %631 : vector<1x1x16x16xf32> to vector<16x16xf32>
    %c0_706 = arith.constant 0 : index
    %c0_707 = arith.constant 0 : index
    %c9_708 = arith.constant 9 : index
    %633 = vector.load %arg5[%c0_706, %c0_707, %c9_708] : memref<2x16x256xf32, #tpu.memory_space<vmem>>, vector<1x16x128xf32>
    %634 = vector.shape_cast %633 : vector<1x16x128xf32> to vector<16x128xf32>
    %cst_709 = arith.constant dense<0.000000e+00> : vector<16x128xf32>
    %635 = tpu.matmul %632, %634, %cst_709 {dimension_numbers = #tpu.dot_dimension_numbers<[1], [0], [0], [1], [0, 0, 1, 1], [], []>} : vector<16x16xf32>, vector<16x128xf32>, vector<16x128xf32> -> vector<16x128xf32>
    %636 = arith.addf %626, %635 : vector<16x128xf32>
    %c1_710 = arith.constant 1 : index
    %c0_711 = arith.constant 0 : index
    %c9_712 = arith.constant 9 : index
    %637 = vector.load %arg5[%c1_710, %c0_711, %c9_712] : memref<2x16x256xf32, #tpu.memory_space<vmem>>, vector<1x16x128xf32>
    %638 = vector.shape_cast %637 : vector<1x16x128xf32> to vector<16x128xf32>
    %cst_713 = arith.constant dense<0.000000e+00> : vector<16x128xf32>
    %639 = tpu.matmul %632, %638, %cst_713 {dimension_numbers = #tpu.dot_dimension_numbers<[1], [0], [0], [1], [0, 0, 1, 1], [], []>} : vector<16x16xf32>, vector<16x128xf32>, vector<16x128xf32> -> vector<16x128xf32>
    %640 = arith.addf %630, %639 : vector<16x128xf32>
    %c3_714 = arith.constant 3 : index
    %c10_715 = arith.constant 10 : index
    %c0_716 = arith.constant 0 : index
    %c0_717 = arith.constant 0 : index
    %641 = vector.load %arg2[%c3_714, %c10_715, %c0_716, %c0_717] : memref<4x15x16x16xf32, #tpu.memory_space<vmem>>, vector<1x1x16x16xf32>
    %642 = vector.shape_cast %641 : vector<1x1x16x16xf32> to vector<16x16xf32>
    %c0_718 = arith.constant 0 : index
    %c0_719 = arith.constant 0 : index
    %c10_720 = arith.constant 10 : index
    %643 = vector.load %arg5[%c0_718, %c0_719, %c10_720] : memref<2x16x256xf32, #tpu.memory_space<vmem>>, vector<1x16x128xf32>
    %644 = vector.shape_cast %643 : vector<1x16x128xf32> to vector<16x128xf32>
    %cst_721 = arith.constant dense<0.000000e+00> : vector<16x128xf32>
    %645 = tpu.matmul %642, %644, %cst_721 {dimension_numbers = #tpu.dot_dimension_numbers<[1], [0], [0], [1], [0, 0, 1, 1], [], []>} : vector<16x16xf32>, vector<16x128xf32>, vector<16x128xf32> -> vector<16x128xf32>
    %646 = arith.addf %636, %645 : vector<16x128xf32>
    %c1_722 = arith.constant 1 : index
    %c0_723 = arith.constant 0 : index
    %c10_724 = arith.constant 10 : index
    %647 = vector.load %arg5[%c1_722, %c0_723, %c10_724] : memref<2x16x256xf32, #tpu.memory_space<vmem>>, vector<1x16x128xf32>
    %648 = vector.shape_cast %647 : vector<1x16x128xf32> to vector<16x128xf32>
    %cst_725 = arith.constant dense<0.000000e+00> : vector<16x128xf32>
    %649 = tpu.matmul %642, %648, %cst_725 {dimension_numbers = #tpu.dot_dimension_numbers<[1], [0], [0], [1], [0, 0, 1, 1], [], []>} : vector<16x16xf32>, vector<16x128xf32>, vector<16x128xf32> -> vector<16x128xf32>
    %650 = arith.addf %640, %649 : vector<16x128xf32>
    %c3_726 = arith.constant 3 : index
    %c11_727 = arith.constant 11 : index
    %c0_728 = arith.constant 0 : index
    %c0_729 = arith.constant 0 : index
    %651 = vector.load %arg2[%c3_726, %c11_727, %c0_728, %c0_729] : memref<4x15x16x16xf32, #tpu.memory_space<vmem>>, vector<1x1x16x16xf32>
    %652 = vector.shape_cast %651 : vector<1x1x16x16xf32> to vector<16x16xf32>
    %c0_730 = arith.constant 0 : index
    %c0_731 = arith.constant 0 : index
    %c11_732 = arith.constant 11 : index
    %653 = vector.load %arg5[%c0_730, %c0_731, %c11_732] : memref<2x16x256xf32, #tpu.memory_space<vmem>>, vector<1x16x128xf32>
    %654 = vector.shape_cast %653 : vector<1x16x128xf32> to vector<16x128xf32>
    %cst_733 = arith.constant dense<0.000000e+00> : vector<16x128xf32>
    %655 = tpu.matmul %652, %654, %cst_733 {dimension_numbers = #tpu.dot_dimension_numbers<[1], [0], [0], [1], [0, 0, 1, 1], [], []>} : vector<16x16xf32>, vector<16x128xf32>, vector<16x128xf32> -> vector<16x128xf32>
    %656 = arith.addf %646, %655 : vector<16x128xf32>
    %c1_734 = arith.constant 1 : index
    %c0_735 = arith.constant 0 : index
    %c11_736 = arith.constant 11 : index
    %657 = vector.load %arg5[%c1_734, %c0_735, %c11_736] : memref<2x16x256xf32, #tpu.memory_space<vmem>>, vector<1x16x128xf32>
    %658 = vector.shape_cast %657 : vector<1x16x128xf32> to vector<16x128xf32>
    %cst_737 = arith.constant dense<0.000000e+00> : vector<16x128xf32>
    %659 = tpu.matmul %652, %658, %cst_737 {dimension_numbers = #tpu.dot_dimension_numbers<[1], [0], [0], [1], [0, 0, 1, 1], [], []>} : vector<16x16xf32>, vector<16x128xf32>, vector<16x128xf32> -> vector<16x128xf32>
    %660 = arith.addf %650, %659 : vector<16x128xf32>
    %c3_738 = arith.constant 3 : index
    %c12_739 = arith.constant 12 : index
    %c0_740 = arith.constant 0 : index
    %c0_741 = arith.constant 0 : index
    %661 = vector.load %arg2[%c3_738, %c12_739, %c0_740, %c0_741] : memref<4x15x16x16xf32, #tpu.memory_space<vmem>>, vector<1x1x16x16xf32>
    %662 = vector.shape_cast %661 : vector<1x1x16x16xf32> to vector<16x16xf32>
    %c0_742 = arith.constant 0 : index
    %c0_743 = arith.constant 0 : index
    %c12_744 = arith.constant 12 : index
    %663 = vector.load %arg5[%c0_742, %c0_743, %c12_744] : memref<2x16x256xf32, #tpu.memory_space<vmem>>, vector<1x16x128xf32>
    %664 = vector.shape_cast %663 : vector<1x16x128xf32> to vector<16x128xf32>
    %cst_745 = arith.constant dense<0.000000e+00> : vector<16x128xf32>
    %665 = tpu.matmul %662, %664, %cst_745 {dimension_numbers = #tpu.dot_dimension_numbers<[1], [0], [0], [1], [0, 0, 1, 1], [], []>} : vector<16x16xf32>, vector<16x128xf32>, vector<16x128xf32> -> vector<16x128xf32>
    %666 = arith.addf %656, %665 : vector<16x128xf32>
    %c1_746 = arith.constant 1 : index
    %c0_747 = arith.constant 0 : index
    %c12_748 = arith.constant 12 : index
    %667 = vector.load %arg5[%c1_746, %c0_747, %c12_748] : memref<2x16x256xf32, #tpu.memory_space<vmem>>, vector<1x16x128xf32>
    %668 = vector.shape_cast %667 : vector<1x16x128xf32> to vector<16x128xf32>
    %cst_749 = arith.constant dense<0.000000e+00> : vector<16x128xf32>
    %669 = tpu.matmul %662, %668, %cst_749 {dimension_numbers = #tpu.dot_dimension_numbers<[1], [0], [0], [1], [0, 0, 1, 1], [], []>} : vector<16x16xf32>, vector<16x128xf32>, vector<16x128xf32> -> vector<16x128xf32>
    %670 = arith.addf %660, %669 : vector<16x128xf32>
    %c3_750 = arith.constant 3 : index
    %c13_751 = arith.constant 13 : index
    %c0_752 = arith.constant 0 : index
    %c0_753 = arith.constant 0 : index
    %671 = vector.load %arg2[%c3_750, %c13_751, %c0_752, %c0_753] : memref<4x15x16x16xf32, #tpu.memory_space<vmem>>, vector<1x1x16x16xf32>
    %672 = vector.shape_cast %671 : vector<1x1x16x16xf32> to vector<16x16xf32>
    %c0_754 = arith.constant 0 : index
    %c0_755 = arith.constant 0 : index
    %c13_756 = arith.constant 13 : index
    %673 = vector.load %arg5[%c0_754, %c0_755, %c13_756] : memref<2x16x256xf32, #tpu.memory_space<vmem>>, vector<1x16x128xf32>
    %674 = vector.shape_cast %673 : vector<1x16x128xf32> to vector<16x128xf32>
    %cst_757 = arith.constant dense<0.000000e+00> : vector<16x128xf32>
    %675 = tpu.matmul %672, %674, %cst_757 {dimension_numbers = #tpu.dot_dimension_numbers<[1], [0], [0], [1], [0, 0, 1, 1], [], []>} : vector<16x16xf32>, vector<16x128xf32>, vector<16x128xf32> -> vector<16x128xf32>
    %676 = arith.addf %666, %675 : vector<16x128xf32>
    %c1_758 = arith.constant 1 : index
    %c0_759 = arith.constant 0 : index
    %c13_760 = arith.constant 13 : index
    %677 = vector.load %arg5[%c1_758, %c0_759, %c13_760] : memref<2x16x256xf32, #tpu.memory_space<vmem>>, vector<1x16x128xf32>
    %678 = vector.shape_cast %677 : vector<1x16x128xf32> to vector<16x128xf32>
    %cst_761 = arith.constant dense<0.000000e+00> : vector<16x128xf32>
    %679 = tpu.matmul %672, %678, %cst_761 {dimension_numbers = #tpu.dot_dimension_numbers<[1], [0], [0], [1], [0, 0, 1, 1], [], []>} : vector<16x16xf32>, vector<16x128xf32>, vector<16x128xf32> -> vector<16x128xf32>
    %680 = arith.addf %670, %679 : vector<16x128xf32>
    %c3_762 = arith.constant 3 : index
    %c14_763 = arith.constant 14 : index
    %c0_764 = arith.constant 0 : index
    %c0_765 = arith.constant 0 : index
    %681 = vector.load %arg2[%c3_762, %c14_763, %c0_764, %c0_765] : memref<4x15x16x16xf32, #tpu.memory_space<vmem>>, vector<1x1x16x16xf32>
    %682 = vector.shape_cast %681 : vector<1x1x16x16xf32> to vector<16x16xf32>
    %c0_766 = arith.constant 0 : index
    %c0_767 = arith.constant 0 : index
    %c14_768 = arith.constant 14 : index
    %683 = vector.load %arg5[%c0_766, %c0_767, %c14_768] : memref<2x16x256xf32, #tpu.memory_space<vmem>>, vector<1x16x128xf32>
    %684 = vector.shape_cast %683 : vector<1x16x128xf32> to vector<16x128xf32>
    %cst_769 = arith.constant dense<0.000000e+00> : vector<16x128xf32>
    %685 = tpu.matmul %682, %684, %cst_769 {dimension_numbers = #tpu.dot_dimension_numbers<[1], [0], [0], [1], [0, 0, 1, 1], [], []>} : vector<16x16xf32>, vector<16x128xf32>, vector<16x128xf32> -> vector<16x128xf32>
    %686 = arith.addf %676, %685 : vector<16x128xf32>
    %c1_770 = arith.constant 1 : index
    %c0_771 = arith.constant 0 : index
    %c14_772 = arith.constant 14 : index
    %687 = vector.load %arg5[%c1_770, %c0_771, %c14_772] : memref<2x16x256xf32, #tpu.memory_space<vmem>>, vector<1x16x128xf32>
    %688 = vector.shape_cast %687 : vector<1x16x128xf32> to vector<16x128xf32>
    %cst_773 = arith.constant dense<0.000000e+00> : vector<16x128xf32>
    %689 = tpu.matmul %682, %688, %cst_773 {dimension_numbers = #tpu.dot_dimension_numbers<[1], [0], [0], [1], [0, 0, 1, 1], [], []>} : vector<16x16xf32>, vector<16x128xf32>, vector<16x128xf32> -> vector<16x128xf32>
    %690 = arith.addf %680, %689 : vector<16x128xf32>
    %691 = arith.negf %686 : vector<16x128xf32>
    %692 = math.exp %691 : vector<16x128xf32>
    %cst_774 = arith.constant 1.000000e+00 : f32
    %693 = vector.broadcast %cst_774 : f32 to vector<16x128xf32>
    %694 = arith.addf %693, %692 : vector<16x128xf32>
    %695 = arith.divf %693, %694 : vector<16x128xf32>
    %696 = arith.mulf %695, %524 : vector<16x128xf32>
    %c0_775 = arith.constant 0 : index
    %c0_776 = arith.constant 0 : index
    %c0_777 = arith.constant 0 : index
    %c0_778 = arith.constant 0 : index
    %697 = vector.load %arg4[%c0_775, %c0_776, %c0_777, %c0_778] : memref<4x2x16x128xf32, #tpu.memory_space<vmem>>, vector<1x1x16x128xf32>
    %698 = vector.shape_cast %697 : vector<1x1x16x128xf32> to vector<16x128xf32>
    %699 = vector.shape_cast %696 : vector<16x128xf32> to vector<1x1x16x128xf32>
    tpu.vector_store %arg4[%c0_775, %c0_776, %c0_777, %c0_778], %699 {strides = array<i32>} : memref<4x2x16x128xf32, #tpu.memory_space<vmem>>, vector<1x1x16x128xf32>,
    %700 = arith.subf %14, %696 : vector<16x128xf32>
    %c1_779 = arith.constant 1 : index
    %c0_780 = arith.constant 0 : index
    %c0_781 = arith.constant 0 : index
    %c0_782 = arith.constant 0 : index
    %701 = vector.load %arg4[%c1_779, %c0_780, %c0_781, %c0_782] : memref<4x2x16x128xf32, #tpu.memory_space<vmem>>, vector<1x1x16x128xf32>
    %702 = vector.shape_cast %701 : vector<1x1x16x128xf32> to vector<16x128xf32>
    %703 = vector.shape_cast %700 : vector<16x128xf32> to vector<1x1x16x128xf32>
    tpu.vector_store %arg4[%c1_779, %c0_780, %c0_781, %c0_782], %703 {strides = array<i32>} : memref<4x2x16x128xf32, #tpu.memory_space<vmem>>, vector<1x1x16x128xf32>,
    %c2_783 = arith.constant 2 : index
    %c0_784 = arith.constant 0 : index
    %c0_785 = arith.constant 0 : index
    %c0_786 = arith.constant 0 : index
    %704 = vector.load %arg4[%c2_783, %c0_784, %c0_785, %c0_786] : memref<4x2x16x128xf32, #tpu.memory_space<vmem>>, vector<1x1x16x128xf32>
    %705 = vector.shape_cast %704 : vector<1x1x16x128xf32> to vector<16x128xf32>
    %706 = vector.shape_cast %695 : vector<16x128xf32> to vector<1x1x16x128xf32>
    tpu.vector_store %arg4[%c2_783, %c0_784, %c0_785, %c0_786], %706 {strides = array<i32>} : memref<4x2x16x128xf32, #tpu.memory_space<vmem>>, vector<1x1x16x128xf32>,
    %cst_787 = arith.constant 1.000000e+00 : f32
    %707 = vector.broadcast %cst_787 : f32 to vector<16x128xf32>
    %708 = arith.subf %707, %695 : vector<16x128xf32>
    %c3_788 = arith.constant 3 : index
    %c0_789 = arith.constant 0 : index
    %c0_790 = arith.constant 0 : index
    %c0_791 = arith.constant 0 : index
    %709 = vector.load %arg4[%c3_788, %c0_789, %c0_790, %c0_791] : memref<4x2x16x128xf32, #tpu.memory_space<vmem>>, vector<1x1x16x128xf32>
    %710 = vector.shape_cast %709 : vector<1x1x16x128xf32> to vector<16x128xf32>
    %711 = vector.shape_cast %708 : vector<16x128xf32> to vector<1x1x16x128xf32>
    tpu.vector_store %arg4[%c3_788, %c0_789, %c0_790, %c0_791], %711 {strides = array<i32>} : memref<4x2x16x128xf32, #tpu.memory_space<vmem>>, vector<1x1x16x128xf32>,
    %712 = arith.negf %690 : vector<16x128xf32>
    %713 = math.exp %712 : vector<16x128xf32>
    %cst_792 = arith.constant 1.000000e+00 : f32
    %714 = vector.broadcast %cst_792 : f32 to vector<16x128xf32>
    %715 = arith.addf %714, %713 : vector<16x128xf32>
    %716 = arith.divf %714, %715 : vector<16x128xf32>
    %717 = arith.mulf %716, %529 : vector<16x128xf32>
    %c0_793 = arith.constant 0 : index
    %c1_794 = arith.constant 1 : index
    %c0_795 = arith.constant 0 : index
    %c0_796 = arith.constant 0 : index
    %718 = vector.load %arg4[%c0_793, %c1_794, %c0_795, %c0_796] : memref<4x2x16x128xf32, #tpu.memory_space<vmem>>, vector<1x1x16x128xf32>
    %719 = vector.shape_cast %718 : vector<1x1x16x128xf32> to vector<16x128xf32>
    %720 = vector.shape_cast %717 : vector<16x128xf32> to vector<1x1x16x128xf32>
    tpu.vector_store %arg4[%c0_793, %c1_794, %c0_795, %c0_796], %720 {strides = array<i32>} : memref<4x2x16x128xf32, #tpu.memory_space<vmem>>, vector<1x1x16x128xf32>,
    %721 = arith.subf %16, %717 : vector<16x128xf32>
    %c1_797 = arith.constant 1 : index
    %c1_798 = arith.constant 1 : index
    %c0_799 = arith.constant 0 : index
    %c0_800 = arith.constant 0 : index
    %722 = vector.load %arg4[%c1_797, %c1_798, %c0_799, %c0_800] : memref<4x2x16x128xf32, #tpu.memory_space<vmem>>, vector<1x1x16x128xf32>
    %723 = vector.shape_cast %722 : vector<1x1x16x128xf32> to vector<16x128xf32>
    %724 = vector.shape_cast %721 : vector<16x128xf32> to vector<1x1x16x128xf32>
    tpu.vector_store %arg4[%c1_797, %c1_798, %c0_799, %c0_800], %724 {strides = array<i32>} : memref<4x2x16x128xf32, #tpu.memory_space<vmem>>, vector<1x1x16x128xf32>,
    %c2_801 = arith.constant 2 : index
    %c1_802 = arith.constant 1 : index
    %c0_803 = arith.constant 0 : index
    %c0_804 = arith.constant 0 : index
    %725 = vector.load %arg4[%c2_801, %c1_802, %c0_803, %c0_804] : memref<4x2x16x128xf32, #tpu.memory_space<vmem>>, vector<1x1x16x128xf32>
    %726 = vector.shape_cast %725 : vector<1x1x16x128xf32> to vector<16x128xf32>
    %727 = vector.shape_cast %716 : vector<16x128xf32> to vector<1x1x16x128xf32>
    tpu.vector_store %arg4[%c2_801, %c1_802, %c0_803, %c0_804], %727 {strides = array<i32>} : memref<4x2x16x128xf32, #tpu.memory_space<vmem>>, vector<1x1x16x128xf32>,
    %cst_805 = arith.constant 1.000000e+00 : f32
    %728 = vector.broadcast %cst_805 : f32 to vector<16x128xf32>
    %729 = arith.subf %728, %716 : vector<16x128xf32>
    %c3_806 = arith.constant 3 : index
    %c1_807 = arith.constant 1 : index
    %c0_808 = arith.constant 0 : index
    %c0_809 = arith.constant 0 : index
    %730 = vector.load %arg4[%c3_806, %c1_807, %c0_808, %c0_809] : memref<4x2x16x128xf32, #tpu.memory_space<vmem>>, vector<1x1x16x128xf32>
    %731 = vector.shape_cast %730 : vector<1x1x16x128xf32> to vector<16x128xf32>
    %732 = vector.shape_cast %729 : vector<16x128xf32> to vector<1x1x16x128xf32>
    tpu.vector_store %arg4[%c3_806, %c1_807, %c0_808, %c0_809], %732 {strides = array<i32>} : memref<4x2x16x128xf32, #tpu.memory_space<vmem>>, vector<1x1x16x128xf32>,
    return
  }
  func.func @transform_0(%arg0: i32) -> (i32, i32, i32) {
    %c0_i32 = arith.constant 0 : i32
    %c0_i32_0 = arith.constant 0 : i32
    %c0_i32_1 = arith.constant 0 : i32
    return %arg0, %c0_i32, %c0_i32_0 : i32, i32, i32
  }
  func.func @transform_1(%arg0: i32) -> (i32, i32, i32, i32) {
    %c0_i32 = arith.constant 0 : i32
    %c0_i32_0 = arith.constant 0 : i32
    %c0_i32_1 = arith.constant 0 : i32
    %c0_i32_2 = arith.constant 0 : i32
    %c0_i32_3 = arith.constant 0 : i32
    return %c0_i32, %c0_i32_0, %c0_i32_1, %c0_i32_2 : i32, i32, i32, i32
  }
  func.func @transform_2(%arg0: i32) -> (i32, i32, i32) {
    %c0_i32 = arith.constant 0 : i32
    %c0_i32_0 = arith.constant 0 : i32
    %c0_i32_1 = arith.constant 0 : i32
    %c0_i32_2 = arith.constant 0 : i32
    return %c0_i32, %c0_i32_0, %c0_i32_1 : i32, i32, i32
  }
  func.func @transform_3(%arg0: i32) -> (i32, i32, i32, i32) {
    %c0_i32 = arith.constant 0 : i32
    %c0_i32_0 = arith.constant 0 : i32
    %c0_i32_1 = arith.constant 0 : i32
    %c0_i32_2 = arith.constant 0 : i32
    return %c0_i32, %arg0, %c0_i32_0, %c0_i32_1 : i32, i32, i32, i32
  }
}

</mosaic_0001>

<bundles_post_ra>
// kernel: run.1
= control target key start
LH: loop header
LB: loop body
LE: loop exit
PB: predicated region body
PF: predicated region fallthrough
CT: control target
= control target key end

     0   :  { %8 = vsyncpa [#allocation4], 0  ;;  %s15010_s12 = smov [#allocation3]   ;;  %s16074_s0 = inlined_call_operand.vmem [shape: f32[2,16,128], index: 0, kind: input, shape index: {}]   ;;  %s16075_s1 = inlined_call_operand.hbm [shape: f32[4,15,16,16], index: 1, kind: input, shape index: {}]   ;;  %s16076_s2 = inlined_call_operand.vmem [shape: f32[4,16,1], index: 2, kind: input, shape index: {}]   ;;  %s16077_s3 = inlined_call_operand.vmem [shape: f32[4,2,16,128], index: 3, kind: output, shape index: {}]  }
   0x1   :  { %s16_s13 = sshll.u32 %s15010_s12, 4  ;;  %s14986_s16 = scalar_lea.hbm %s16075_s1, 15360  ;;  %s17_s13 = int_to_ptr.vmem [resolvable:$true] %s16_s13 }
   0x2   :  { %p14987_p0 = scmp.ne.s32.totalorder %s16075_s1, %s14986_s16  ;;  %p14990_p1 = scmp.lt.u32.totalorder %s14986_s16, %s16075_s1 }
   0x4   :  { %p14992_p2 = pnand %p14990_p1, %p14987_p0 }
   0x6   :  { %14995 = shalt.err (!%p14992_p2)
}
   0x7   :  { %s14996_s21 = scalar_lea.vmem %s17_s13, 15360  ;;  %p15001_p4 = scmp.lt.s32.totalorder %s17_s13, %s17_s13 }
   0x8   :  { %p14997_p3 = scmp.ne.s32.totalorder %s17_s13, %s14996_s21  ;;  %p15002_p5 = scmp.lt.s32.totalorder %s14996_s21, %s14996_s21 }
   0xa   :  { %p15003_p6 = por %p15002_p5, %p15001_p4 }
   0xc   :  { %p15004_p7 = pnand %p15003_p6, %p14997_p3 }
   0xe   :  { %15007 = shalt.err (!%p15004_p7)
}
   0xf   :  { %s15011_s22 = smov 128   ;;  %s15012_s23 = smov 8  }
  0x10   :  { %22 = dma.hbm_to_vmem [thread:$0]  %s16075_s1, 15360, %s17_s13, [#allocation4], %s15011_s22, %s15011_s22, %s15012_s23  }
  0x11   :  { %15008 = dma.done.wait [#allocation4], 15360  }
  0x12   :  { %15009 = vsyncadd [#allocation4], 4294951936  ;;  %vm28_vm0 = vcmask 56320   ;;  %vm31_vm1 = vcmask 113720   ;;  %v15013_v0 = vmov 0.0   ;;  %v11518_v1 = vld [vmem:[%s16074_s0 + $0x10] sm:$0xff] }
  0x13   :  { %35 = vst.msk [vmem:[#allocation2 + $0x20] sm:$0xff] %vm28_vm0, %v15013_v0  ;;  %29 = vst.msk [vmem:[#allocation2] sm:$0xff] %vm28_vm0, %v15013_v0  ;;  %v39_v2 = vld [vmem:[%s16074_s0] sm:$0xff]  ;;  %s15014_s29 = smov 7   ;;  %v11519_v3 = vld [vmem:[%s16074_s0 + $0x18] sm:$0xff]  ;;  %vm52_vm2 = vcmask 1047608  }
  0x14   :  { %37 = vst.msk [vmem:[#allocation2 + $0x28] sm:$0xff] %vm31_vm1, %v15013_v0  ;;  %32 = vst.msk [vmem:[#allocation2 + $0x8] sm:$0xff] %vm31_vm1, %v15013_v0  ;;  %59 = vrot.lane.b32.xlu1 %v11518_v1, %s15014_s29  ;;  %46 = vrot.lane.b32.xlu0 %v39_v2, %s15014_s29  ;;  %v40_v4 = vld [vmem:[%s16074_s0 + $0x8] sm:$0xff]  ;;  %v83_v7 = vld [vmem:[#allocation3] sm:$0xff]  ;;  %vm87_vm3 = vcmask 130048   ;;  %s15015_s7 = smov 127  }
  0x15   :  { %30 = vst.msk [vmem:[#allocation2 + $0x10] sm:$0xff] %vm28_vm0, %v15013_v0  ;;  %36 = vst.msk [vmem:[#allocation2 + $0x30] sm:$0xff] %vm28_vm0, %v15013_v0  ;;  %12268 = vmatprep.mubr.msk.f32.mxu0 %vm87_vm3, %v83_v7  ;;  %12275 = vmatprep.mubr.msk.f32.mxu1 %vm87_vm3, %v83_v7  ;;  %v84_v24 = vld [vmem:[#allocation3 + $0x8] sm:$0xff]  ;;  %v251_v25 = vld [vmem:[#allocation3 + $0x10] sm:$0xff]  ;;  %s15016_s8 = smov 126   ;;  %s15017_s9 = smov 125  }
  0x16   :  { %33 = vst.msk [vmem:[#allocation2 + $0x18] sm:$0xff] %vm31_vm1, %v15013_v0  ;;  %38 = vst.msk [vmem:[#allocation2 + $0x38] sm:$0xff] %vm31_vm1, %v15013_v0  ;;  %s15018_s10 = smov 124   ;;  %s15019_s11 = smov 123   ;;  %v15029_v26 = vmov 0   ;;  %v69_v27 = vld [vmem:[%s16076_s2] sm:$0xff] }
  0x17   :  { %s15020_s12 = smov 122   ;;  %s15021_s13 = smov 121   ;;  %14125 = vset.pattern.permute.xlu1 %v15029_v26  ;;  %14124 = vset.pattern.permute.xlu0 %v15029_v26  ;;  %v70_v28 = vld [vmem:[%s16076_s2 + $0x8] sm:$0xff]  ;;  %vm269_vm4 = vcmask 1039360   ;;  %v252_v47 = vld [vmem:[#allocation3 + $0x18] sm:$0xff]  ;;  %vm465_vm5 = vcmask 1031168  }
  0x18   :  { %61 = vrot.lane.b32.xlu1 %v11519_v3, %s15014_s29  ;;  %48 = vrot.lane.b32.xlu0 %v40_v4, %s15014_s29  ;;  %s15022_s14 = smov 120   ;;  %s15023_s15 = smov 119   ;;  %v455_v53 = vld [vmem:[#allocation3 + $0x20] sm:$0xff]  ;;  %v456_v3 = vld [vmem:[#allocation3 + $0x28] sm:$0xff]  ;;  %vm653_vm6 = vcmask 1022976   ;;  %vm841_vm7 = vcmask 1014784  }
  0x19   :  { %s15024_s16 = smov 118   ;;  %s15025_s17 = smov 117   ;;  %vm1029_vm8 = vcmask 1006592   ;;  %vm1217_vm9 = vcmask 998400   ;;  %vm1405_vm10 = vcmask 990208   ;;  %vm1593_vm11 = vcmask 982016  }
  0x1a   :  { %s15026_s18 = smov 116   ;;  %s15027_s19 = smov 115   ;;  %vm1781_vm12 = vcmask 973824   ;;  %vm16082_vm13 = vcmask 965632   ;;  %vm16081_vm14 = vcmask 957440   ;;  %vm16078_vm15 = vcmask 949248  }
  0x1b   :  { %s15028_s20 = smov 114   ;;  %vm16079_vm1 = vcmask 941056  }
  0x86   :  { %v60_v5 = vpop.permute.xlu1 %59  ;;  %v47_v6 = vpop.permute.xlu0 %46 }
  0x87   :  { %65 = vst.msk [vmem:[#allocation2 + $0x20] sm:$0xff] %vm52_vm2, %v60_v5  ;;  %53 = vst.msk [vmem:[#allocation2] sm:$0xff] %vm52_vm2, %v47_v6 }
  0x88   :  { %66 = vst.msk [vmem:[#allocation2 + $0x28] sm:$0xff] %vm28_vm0, %v60_v5  ;;  %54 = vst.msk [vmem:[#allocation2 + $0x8] sm:$0xff] %vm28_vm0, %v47_v6 }
  0x8a   :  { %v62_v8 = vpop.permute.xlu1 %61  ;;  %v49_v9 = vpop.permute.xlu0 %48 }
  0x8b   :  { %67 = vst.msk [vmem:[#allocation2 + $0x30] sm:$0xff] %vm52_vm2, %v62_v8  ;;  %55 = vst.msk [vmem:[#allocation2 + $0x10] sm:$0xff] %vm52_vm2, %v49_v9 }
  0x8c   :  { %68 = vst.msk [vmem:[#allocation2 + $0x38] sm:$0xff] %vm28_vm0, %v62_v8  ;;  %56 = vst.msk [vmem:[#allocation2 + $0x18] sm:$0xff] %vm28_vm0, %v49_v9  ;;  %v643_v9 = vld [vmem:[#allocation3 + $0x30] sm:$0xff] }
  0x8e   :  { %v253_v10 = vld [vmem:[#allocation2] sm:$0xff] }
  0x8f   :  { %v357_v11 = vld [vmem:[#allocation2 + $0x20] sm:$0xff]  ;;  %v358_v12 = vld [vmem:[#allocation2 + $0x28] sm:$0xff] }
  0x90   :  { %v254_v13 = vld [vmem:[#allocation2 + $0x8] sm:$0xff]  ;;  %v15096_v17 = vpack.i.bf16 %v358_v12, %v357_v11 }
  0x91   :  { %v15092_v14 = vpack.i.bf16 %v254_v13, %v253_v10 }
  0x92   :  { %v359_v15 = vld [vmem:[#allocation2 + $0x30] sm:$0xff] }
  0x93   :  { %v255_v16 = vld [vmem:[#allocation2 + $0x10] sm:$0xff]  ;;  %13845 = vrot.lane.b32.xlu0 %v15092_v14, %s15015_s7  ;;  %v360_v18 = vld [vmem:[#allocation2 + $0x38] sm:$0xff]  ;;  %v13108_v20 = vpack.c.bf16 %v359_v15, %v357_v11 }
  0x94   :  { %v256_v19 = vld [vmem:[#allocation2 + $0x18] sm:$0xff]  ;;  %v13104_v21 = vpack.c.bf16 %v255_v16, %v253_v10  ;;  %v15104_v23 = vpack.i.bf16 %v360_v18, %v359_v15 }
  0x95   :  { %v15098_v22 = vpack.i.bf16 %v256_v19, %v255_v16  ;;  %13109 = vmatprep.subr.bf16.mxu1 %v13108_v20 }
  0x96   :  { %13105 = vmatprep.subr.bf16.mxu0 %v13104_v21  ;;  %13111 = vmatpush3.bf16.msra.mxu1 %v13108_v20 }
  0x97   :  { %13850 = vrot.lane.b32.xlu1 %v15098_v22, %s15015_s7  ;;  %13855 = vrot.lane.b32.xlu0 %v15096_v17, %s15015_s7 }
  0x98   :  { %13107 = vmatpush3.bf16.msra.mxu0 %v13104_v21 }
  0x99   :  { %12276 = vmatmul.mubr.msk.f32.vlgmr.msra.gmra.mrb[0].mxu1 %vm87_vm3, %v84_v24 }
  0x9a   :  { %12289 = vmatprep.mubr.msk.f32.mxu1 %vm87_vm3, %v251_v25 }
  0x9b   :  { %13860 = vrot.lane.b32.xlu1 %v15104_v23, %s15015_s7  ;;  %13865 = vrot.lane.b32.xlu0 %v15092_v14, %s15016_s8 }
  0x9c   :  { %12269 = vmatmul.mubr.msk.f32.vlgmr.msra.gmra.mrb[0].mxu0 %vm87_vm3, %v84_v24 }
  0x9d   :  { %12282 = vmatprep.mubr.msk.f32.mxu0 %vm87_vm3, %v251_v25 }
  0x9f   :  { %13870 = vrot.lane.b32.xlu1 %v15098_v22, %s15016_s8  ;;  %13875 = vrot.lane.b32.xlu0 %v15096_v17, %s15016_s8 }
  0xa3   :  { %13880 = vrot.lane.b32.xlu1 %v15104_v23, %s15016_s8  ;;  %13885 = vrot.lane.b32.xlu0 %v15092_v14, %s15017_s9 }
  0xa7   :  { %13890 = vrot.lane.b32.xlu1 %v15098_v22, %s15017_s9  ;;  %13895 = vrot.lane.b32.xlu0 %v15096_v17, %s15017_s9 }
  0xab   :  { %13900 = vrot.lane.b32.xlu1 %v15104_v23, %s15017_s9  ;;  %13905 = vrot.lane.b32.xlu0 %v15092_v14, %s15018_s10 }
  0xaf   :  { %13910 = vrot.lane.b32.xlu1 %v15098_v22, %s15018_s10  ;;  %13915 = vrot.lane.b32.xlu0 %v15096_v17, %s15018_s10 }
  0xb3   :  { %13920 = vrot.lane.b32.xlu1 %v15104_v23, %s15018_s10  ;;  %13925 = vrot.lane.b32.xlu0 %v15092_v14, %s15019_s11 }
  0xb7   :  { %13930 = vrot.lane.b32.xlu1 %v15098_v22, %s15019_s11  ;;  %13935 = vrot.lane.b32.xlu0 %v15096_v17, %s15019_s11 }
  0xbb   :  { %13940 = vrot.lane.b32.xlu1 %v15104_v23, %s15019_s11  ;;  %13945 = vrot.lane.b32.xlu0 %v15092_v14, %s15020_s12 }
  0xbf   :  { %13950 = vrot.lane.b32.xlu1 %v15098_v22, %s15020_s12  ;;  %13955 = vrot.lane.b32.xlu0 %v15096_v17, %s15020_s12 }
  0xc3   :  { %13960 = vrot.lane.b32.xlu1 %v15104_v23, %s15020_s12  ;;  %13965 = vrot.lane.b32.xlu0 %v15092_v14, %s15021_s13 }
  0xc7   :  { %13970 = vrot.lane.b32.xlu1 %v15098_v22, %s15021_s13  ;;  %13975 = vrot.lane.b32.xlu0 %v15096_v17, %s15021_s13 }
  0xcb   :  { %13980 = vrot.lane.b32.xlu1 %v15104_v23, %s15021_s13  ;;  %13985 = vrot.lane.b32.xlu0 %v15092_v14, %s15022_s14 }
  0xcf   :  { %13990 = vrot.lane.b32.xlu1 %v15098_v22, %s15022_s14  ;;  %13995 = vrot.lane.b32.xlu0 %v15096_v17, %s15022_s14 }
  0xd3   :  { %14000 = vrot.lane.b32.xlu1 %v15104_v23, %s15022_s14  ;;  %14005 = vrot.lane.b32.xlu0 %v15092_v14, %s15023_s15 }
  0xd7   :  { %14010 = vrot.lane.b32.xlu1 %v15098_v22, %s15023_s15  ;;  %14015 = vrot.lane.b32.xlu0 %v15096_v17, %s15023_s15 }
  0xdb   :  { %14020 = vrot.lane.b32.xlu1 %v15104_v23, %s15023_s15  ;;  %14025 = vrot.lane.b32.xlu0 %v15092_v14, %s15024_s16 }
  0xdf   :  { %14030 = vrot.lane.b32.xlu1 %v15098_v22, %s15024_s16  ;;  %14035 = vrot.lane.b32.xlu0 %v15096_v17, %s15024_s16 }
  0xe3   :  { %14040 = vrot.lane.b32.xlu1 %v15104_v23, %s15024_s16  ;;  %14045 = vrot.lane.b32.xlu0 %v15092_v14, %s15025_s17 }
  0xe7   :  { %14050 = vrot.lane.b32.xlu1 %v15098_v22, %s15025_s17  ;;  %14055 = vrot.lane.b32.xlu0 %v15096_v17, %s15025_s17 }
  0xeb   :  { %14060 = vrot.lane.b32.xlu1 %v15104_v23, %s15025_s17  ;;  %14065 = vrot.lane.b32.xlu0 %v15092_v14, %s15026_s18 }
  0xef   :  { %14070 = vrot.lane.b32.xlu1 %v15098_v22, %s15026_s18  ;;  %14075 = vrot.lane.b32.xlu0 %v15096_v17, %s15026_s18 }
  0xf3   :  { %14080 = vrot.lane.b32.xlu1 %v15104_v23, %s15026_s18  ;;  %14085 = vrot.lane.b32.xlu0 %v15092_v14, %s15027_s19 }
  0xf7   :  { %14090 = vrot.lane.b32.xlu1 %v15098_v22, %s15027_s19  ;;  %14095 = vrot.lane.b32.xlu0 %v15096_v17, %s15027_s19 }
  0xfb   :  { %14100 = vrot.lane.b32.xlu1 %v15104_v23, %s15027_s19  ;;  %14105 = vrot.lane.b32.xlu0 %v15092_v14, %s15028_s20 }
  0xff   :  { %14110 = vrot.lane.b32.xlu1 %v15098_v22, %s15028_s20  ;;  %14115 = vrot.lane.b32.xlu0 %v15096_v17, %s15028_s20 }
 0x103   :  { %14120 = vrot.lane.b32.xlu1 %v15104_v23, %s15028_s20  ;;  %73 = vperm.xlu0 %14124, %v69_v27   ;;  %v644_v23 = vld [vmem:[#allocation3 + $0x38] sm:$0xff] }
 0x105   :  { %v13846_v29 = vpop.permute.xlu0 %13845 }
 0x106   :  { %v13848_v30 = vunpack.i.h.bf16 %v13846_v29  ;;  %v13847_v31 = vunpack.i.l.bf16 %v13846_v29  ;;  %v831_v29 = vld [vmem:[#allocation3 + $0x40] sm:$0xff] }
 0x107   :  { %78 = vperm.xlu1 %14125, %v70_v28  }
 0x108   :  { %v270_v38 = vsel %vm269_vm4, %v13847_v31, %v13848_v30 }
 0x109   :  { %v13851_v32 = vpop.permute.xlu1 %13850  ;;  %v13856_v33 = vpop.permute.xlu0 %13855 }
 0x10a   :  { %v13853_v34 = vunpack.i.h.bf16 %v13851_v32  ;;  %v13852_v35 = vunpack.i.l.bf16 %v13851_v32  ;;  %v13858_v36 = vunpack.i.h.bf16 %v13856_v33  ;;  %v13857_v37 = vunpack.i.l.bf16 %v13856_v33 }
 0x10c   :  { %v271_v39 = vsel %vm269_vm4, %v13852_v35, %v13853_v34  ;;  %v373_v48 = vsel %vm269_vm4, %v13857_v37, %v13858_v36 }
 0x10d   :  { %v13861_v40 = vpop.permute.xlu1 %13860  ;;  %v13866_v41 = vpop.permute.xlu0 %13865  ;;  %v13112_v42 = vpack.c.bf16 %v271_v39, %v270_v38 }
 0x10e   :  { %v13863_v43 = vunpack.i.h.bf16 %v13861_v40  ;;  %v13862_v44 = vunpack.i.l.bf16 %v13861_v40  ;;  %v13868_v45 = vunpack.i.h.bf16 %v13866_v41  ;;  %v13867_v46 = vunpack.i.l.bf16 %v13866_v41 }
 0x10f   :  { %13113 = vmatprep.subr.bf16.mxu0 %v13112_v42 }
 0x110   :  { %13115 = vmatpush3.bf16.msra.mxu0 %v13112_v42  ;;  %v374_v49 = vsel %vm269_vm4, %v13862_v44, %v13863_v43  ;;  %v466_v58 = vsel %vm465_vm5, %v13867_v46, %v13868_v45  ;;  %v832_v43 = vld [vmem:[#allocation3 + $0x48] sm:$0xff] }
 0x111   :  { %v13871_v50 = vpop.permute.xlu1 %13870  ;;  %v13876_v51 = vpop.permute.xlu0 %13875  ;;  %v13116_v52 = vpack.c.bf16 %v374_v49, %v373_v48  ;;  %v1019_v49 = vld [vmem:[#allocation3 + $0x50] sm:$0xff] }
 0x112   :  { %v13873_v54 = vunpack.i.h.bf16 %v13871_v50  ;;  %v13872_v55 = vunpack.i.l.bf16 %v13871_v50  ;;  %v13878_v56 = vunpack.i.h.bf16 %v13876_v51  ;;  %v13877_v57 = vunpack.i.l.bf16 %v13876_v51 }
 0x113   :  { %12283 = vmatmul.mubr.msk.f32.vlgmr.msra.gmra.mrb[0].mxu0 %vm87_vm3, %v252_v47  ;;  %13117 = vmatprep.subr.bf16.mxu1 %v13116_v52 }
 0x114   :  { %13119 = vmatpush3.bf16.msra.mxu1 %v13116_v52  ;;  %v467_v59 = vsel %vm465_vm5, %v13872_v55, %v13873_v54  ;;  %12296 = vmatprep.mubr.msk.f32.mxu0 %vm87_vm3, %v455_v53  ;;  %v561_v4 = vsel %vm465_vm5, %v13877_v57, %v13878_v56 }
 0x115   :  { %v13881_v60 = vpop.permute.xlu1 %13880  ;;  %v13886_v61 = vpop.permute.xlu0 %13885  ;;  %v13120_v62 = vpack.c.bf16 %v467_v59, %v466_v58 }
 0x116   :  { %v13883_v63 = vunpack.i.h.bf16 %v13881_v60  ;;  %v13882_v0 = vunpack.i.l.bf16 %v13881_v60  ;;  %v13888_v1 = vunpack.i.h.bf16 %v13886_v61  ;;  %v13887_v2 = vunpack.i.l.bf16 %v13886_v61 }
 0x117   :  { %12290 = vmatmul.mubr.msk.f32.vlgmr.msra.gmra.mrb[0].mxu1 %vm87_vm3, %v252_v47  ;;  %13121 = vmatprep.subr.bf16.mxu0 %v13120_v62 }
 0x118   :  { %13123 = vmatpush3.bf16.msra.mxu0 %v13120_v62  ;;  %v562_v5 = vsel %vm465_vm5, %v13882_v0, %v13883_v63  ;;  %12303 = vmatprep.mubr.msk.f32.mxu1 %vm87_vm3, %v455_v53  ;;  %v654_v14 = vsel %vm653_vm6, %v13887_v2, %v13888_v1  ;;  %v1020_v63 = vld [vmem:[#allocation3 + $0x58] sm:$0xff] }
 0x119   :  { %v13891_v6 = vpop.permute.xlu1 %13890  ;;  %v13896_v7 = vpop.permute.xlu0 %13895  ;;  %v13124_v8 = vpack.c.bf16 %v562_v5, %v561_v4  ;;  %v1207_v5 = vld [vmem:[#allocation3 + $0x60] sm:$0xff] }
 0x11a   :  { %v13893_v10 = vunpack.i.h.bf16 %v13891_v6  ;;  %v13892_v11 = vunpack.i.l.bf16 %v13891_v6  ;;  %v13898_v12 = vunpack.i.h.bf16 %v13896_v7  ;;  %v13897_v13 = vunpack.i.l.bf16 %v13896_v7 }
 0x11b   :  { %12297 = vmatmul.mubr.msk.f32.vlgmr.msra.gmra.mrb[0].mxu0 %vm87_vm3, %v456_v3  ;;  %13125 = vmatprep.subr.bf16.mxu1 %v13124_v8 }
 0x11c   :  { %13127 = vmatpush3.bf16.msra.mxu1 %v13124_v8  ;;  %v655_v15 = vsel %vm653_vm6, %v13892_v11, %v13893_v10  ;;  %12310 = vmatprep.mubr.msk.f32.mxu0 %vm87_vm3, %v643_v9  ;;  %v749_v24 = vsel %vm653_vm6, %v13897_v13, %v13898_v12 }
 0x11d   :  { %v13901_v16 = vpop.permute.xlu1 %13900  ;;  %v13906_v17 = vpop.permute.xlu0 %13905  ;;  %v13128_v18 = vpack.c.bf16 %v655_v15, %v654_v14 }
 0x11e   :  { %v13903_v19 = vunpack.i.h.bf16 %v13901_v16  ;;  %v13902_v20 = vunpack.i.l.bf16 %v13901_v16  ;;  %v13908_v21 = vunpack.i.h.bf16 %v13906_v17  ;;  %v13907_v22 = vunpack.i.l.bf16 %v13906_v17 }
 0x11f   :  { %12304 = vmatmul.mubr.msk.f32.vlgmr.msra.gmra.mrb[0].mxu1 %vm87_vm3, %v456_v3  ;;  %13129 = vmatprep.subr.bf16.mxu0 %v13128_v18 }
 0x120   :  { %13131 = vmatpush3.bf16.msra.mxu0 %v13128_v18  ;;  %v750_v25 = vsel %vm653_vm6, %v13902_v20, %v13903_v19  ;;  %12317 = vmatprep.mubr.msk.f32.mxu1 %vm87_vm3, %v643_v9  ;;  %v842_v34 = vsel %vm841_vm7, %v13907_v22, %v13908_v21  ;;  %v1208_v19 = vld [vmem:[#allocation3 + $0x68] sm:$0xff] }
 0x121   :  { %v13911_v26 = vpop.permute.xlu1 %13910  ;;  %v13916_v27 = vpop.permute.xlu0 %13915  ;;  %v13132_v28 = vpack.c.bf16 %v750_v25, %v749_v24  ;;  %v1395_v25 = vld [vmem:[#allocation3 + $0x70] sm:$0xff] }
 0x122   :  { %v13913_v30 = vunpack.i.h.bf16 %v13911_v26  ;;  %v13912_v31 = vunpack.i.l.bf16 %v13911_v26  ;;  %v13918_v32 = vunpack.i.h.bf16 %v13916_v27  ;;  %v13917_v33 = vunpack.i.l.bf16 %v13916_v27 }
 0x123   :  { %12311 = vmatmul.mubr.msk.f32.vlgmr.msra.gmra.mrb[0].mxu0 %vm87_vm3, %v644_v23  ;;  %13133 = vmatprep.subr.bf16.mxu1 %v13132_v28 }
 0x124   :  { %13135 = vmatpush3.bf16.msra.mxu1 %v13132_v28  ;;  %v843_v35 = vsel %vm841_vm7, %v13912_v31, %v13913_v30  ;;  %12324 = vmatprep.mubr.msk.f32.mxu0 %vm87_vm3, %v831_v29  ;;  %v937_v44 = vsel %vm841_vm7, %v13917_v33, %v13918_v32 }
 0x125   :  { %v13921_v36 = vpop.permute.xlu1 %13920  ;;  %v13926_v37 = vpop.permute.xlu0 %13925  ;;  %v13136_v38 = vpack.c.bf16 %v843_v35, %v842_v34 }
 0x126   :  { %v13923_v39 = vunpack.i.h.bf16 %v13921_v36  ;;  %v13922_v40 = vunpack.i.l.bf16 %v13921_v36  ;;  %v13928_v41 = vunpack.i.h.bf16 %v13926_v37  ;;  %v13927_v42 = vunpack.i.l.bf16 %v13926_v37 }
 0x127   :  { %12318 = vmatmul.mubr.msk.f32.vlgmr.msra.gmra.mrb[0].mxu1 %vm87_vm3, %v644_v23  ;;  %13137 = vmatprep.subr.bf16.mxu0 %v13136_v38 }
 0x128   :  { %13139 = vmatpush3.bf16.msra.mxu0 %v13136_v38  ;;  %v938_v45 = vsel %vm841_vm7, %v13922_v40, %v13923_v39  ;;  %12331 = vmatprep.mubr.msk.f32.mxu1 %vm87_vm3, %v831_v29  ;;  %v1030_v54 = vsel %vm1029_vm8, %v13927_v42, %v13928_v41  ;;  %v1396_v39 = vld [vmem:[#allocation3 + $0x78] sm:$0xff] }
 0x129   :  { %v13931_v46 = vpop.permute.xlu1 %13930  ;;  %v13936_v47 = vpop.permute.xlu0 %13935  ;;  %v13140_v48 = vpack.c.bf16 %v938_v45, %v937_v44  ;;  %v1583_v45 = vld [vmem:[#allocation3 + $0x80] sm:$0xff] }
 0x12a   :  { %v13933_v50 = vunpack.i.h.bf16 %v13931_v46  ;;  %v13932_v51 = vunpack.i.l.bf16 %v13931_v46  ;;  %v13938_v52 = vunpack.i.h.bf16 %v13936_v47  ;;  %v13937_v53 = vunpack.i.l.bf16 %v13936_v47 }
 0x12b   :  { %12325 = vmatmul.mubr.msk.f32.vlgmr.msra.gmra.mrb[0].mxu0 %vm87_vm3, %v832_v43  ;;  %13141 = vmatprep.subr.bf16.mxu1 %v13140_v48 }
 0x12c   :  { %13143 = vmatpush3.bf16.msra.mxu1 %v13140_v48  ;;  %v1031_v55 = vsel %vm1029_vm8, %v13932_v51, %v13933_v50  ;;  %12338 = vmatprep.mubr.msk.f32.mxu0 %vm87_vm3, %v1019_v49  ;;  %v1125_v0 = vsel %vm1029_vm8, %v13937_v53, %v13938_v52 }
 0x12d   :  { %v13941_v56 = vpop.permute.xlu1 %13940  ;;  %v13946_v57 = vpop.permute.xlu0 %13945  ;;  %v13144_v58 = vpack.c.bf16 %v1031_v55, %v1030_v54 }
 0x12e   :  { %v13943_v59 = vunpack.i.h.bf16 %v13941_v56  ;;  %v13942_v60 = vunpack.i.l.bf16 %v13941_v56  ;;  %v13948_v61 = vunpack.i.h.bf16 %v13946_v57  ;;  %v13947_v62 = vunpack.i.l.bf16 %v13946_v57 }
 0x12f   :  { %12332 = vmatmul.mubr.msk.f32.vlgmr.msra.gmra.mrb[0].mxu1 %vm87_vm3, %v832_v43  ;;  %13145 = vmatprep.subr.bf16.mxu0 %v13144_v58 }
 0x130   :  { %13147 = vmatpush3.bf16.msra.mxu0 %v13144_v58  ;;  %v1126_v1 = vsel %vm1029_vm8, %v13942_v60, %v13943_v59  ;;  %12345 = vmatprep.mubr.msk.f32.mxu1 %vm87_vm3, %v1019_v49  ;;  %v1218_v10 = vsel %vm1217_vm9, %v13947_v62, %v13948_v61  ;;  %v1584_v59 = vld [vmem:[#allocation3 + $0x88] sm:$0xff] }
 0x131   :  { %v13951_v2 = vpop.permute.xlu1 %13950  ;;  %v13956_v3 = vpop.permute.xlu0 %13955  ;;  %v13148_v4 = vpack.c.bf16 %v1126_v1, %v1125_v0  ;;  %v1771_v1 = vld [vmem:[#allocation3 + $0x90] sm:$0xff] }
 0x132   :  { %v13953_v6 = vunpack.i.h.bf16 %v13951_v2  ;;  %v13952_v7 = vunpack.i.l.bf16 %v13951_v2  ;;  %v13958_v8 = vunpack.i.h.bf16 %v13956_v3  ;;  %v13957_v9 = vunpack.i.l.bf16 %v13956_v3 }
 0x133   :  { %12339 = vmatmul.mubr.msk.f32.vlgmr.msra.gmra.mrb[0].mxu0 %vm87_vm3, %v1020_v63  ;;  %13149 = vmatprep.subr.bf16.mxu1 %v13148_v4 }
 0x134   :  { %13151 = vmatpush3.bf16.msra.mxu1 %v13148_v4  ;;  %v1219_v11 = vsel %vm1217_vm9, %v13952_v7, %v13953_v6  ;;  %12352 = vmatprep.mubr.msk.f32.mxu0 %vm87_vm3, %v1207_v5  ;;  %v1313_v20 = vsel %vm1217_vm9, %v13957_v9, %v13958_v8 }
 0x135   :  { %v13961_v12 = vpop.permute.xlu1 %13960  ;;  %v13966_v13 = vpop.permute.xlu0 %13965  ;;  %v13152_v14 = vpack.c.bf16 %v1219_v11, %v1218_v10 }
 0x136   :  { %v13963_v15 = vunpack.i.h.bf16 %v13961_v12  ;;  %v13962_v16 = vunpack.i.l.bf16 %v13961_v12  ;;  %v13968_v17 = vunpack.i.h.bf16 %v13966_v13  ;;  %v13967_v18 = vunpack.i.l.bf16 %v13966_v13 }
 0x137   :  { %12346 = vmatmul.mubr.msk.f32.vlgmr.msra.gmra.mrb[0].mxu1 %vm87_vm3, %v1020_v63  ;;  %13153 = vmatprep.subr.bf16.mxu0 %v13152_v14 }
 0x138   :  { %13155 = vmatpush3.bf16.msra.mxu0 %v13152_v14  ;;  %v1314_v21 = vsel %vm1217_vm9, %v13962_v16, %v13963_v15  ;;  %12359 = vmatprep.mubr.msk.f32.mxu1 %vm87_vm3, %v1207_v5  ;;  %v1406_v30 = vsel %vm1405_vm10, %v13967_v18, %v13968_v17  ;;  %v1772_v15 = vld [vmem:[#allocation3 + $0x98] sm:$0xff] }
 0x139   :  { %v13971_v22 = vpop.permute.xlu1 %13970  ;;  %v13976_v23 = vpop.permute.xlu0 %13975  ;;  %v13156_v24 = vpack.c.bf16 %v1314_v21, %v1313_v20  ;;  %v1959_v21 = vld [vmem:[#allocation3 + $0xa0] sm:$0xff] }
 0x13a   :  { %v13973_v26 = vunpack.i.h.bf16 %v13971_v22  ;;  %v13972_v27 = vunpack.i.l.bf16 %v13971_v22  ;;  %v13978_v28 = vunpack.i.h.bf16 %v13976_v23  ;;  %v13977_v29 = vunpack.i.l.bf16 %v13976_v23 }
 0x13b   :  { %12353 = vmatmul.mubr.msk.f32.vlgmr.msra.gmra.mrb[0].mxu0 %vm87_vm3, %v1208_v19  ;;  %13157 = vmatprep.subr.bf16.mxu1 %v13156_v24 }
 0x13c   :  { %13159 = vmatpush3.bf16.msra.mxu1 %v13156_v24  ;;  %v1407_v31 = vsel %vm1405_vm10, %v13972_v27, %v13973_v26  ;;  %12366 = vmatprep.mubr.msk.f32.mxu0 %vm87_vm3, %v1395_v25  ;;  %v1501_v40 = vsel %vm1405_vm10, %v13977_v29, %v13978_v28 }
 0x13d   :  { %v13981_v32 = vpop.permute.xlu1 %13980  ;;  %v13986_v33 = vpop.permute.xlu0 %13985  ;;  %v13160_v34 = vpack.c.bf16 %v1407_v31, %v1406_v30 }
 0x13e   :  { %v13983_v35 = vunpack.i.h.bf16 %v13981_v32  ;;  %v13982_v36 = vunpack.i.l.bf16 %v13981_v32  ;;  %v13988_v37 = vunpack.i.h.bf16 %v13986_v33  ;;  %v13987_v38 = vunpack.i.l.bf16 %v13986_v33 }
 0x13f   :  { %12360 = vmatmul.mubr.msk.f32.vlgmr.msra.gmra.mrb[0].mxu1 %vm87_vm3, %v1208_v19  ;;  %13161 = vmatprep.subr.bf16.mxu0 %v13160_v34 }
 0x140   :  { %13163 = vmatpush3.bf16.msra.mxu0 %v13160_v34  ;;  %v1502_v41 = vsel %vm1405_vm10, %v13982_v36, %v13983_v35  ;;  %12373 = vmatprep.mubr.msk.f32.mxu1 %vm87_vm3, %v1395_v25  ;;  %v1594_v50 = vsel %vm1593_vm11, %v13987_v38, %v13988_v37  ;;  %v1960_v35 = vld [vmem:[#allocation3 + $0xa8] sm:$0xff] }
 0x141   :  { %v13991_v42 = vpop.permute.xlu1 %13990  ;;  %v13996_v43 = vpop.permute.xlu0 %13995  ;;  %v13164_v44 = vpack.c.bf16 %v1502_v41, %v1501_v40  ;;  %v2147_v41 = vld [vmem:[#allocation3 + $0xb0] sm:$0xff] }
 0x142   :  { %v13993_v46 = vunpack.i.h.bf16 %v13991_v42  ;;  %v13992_v47 = vunpack.i.l.bf16 %v13991_v42  ;;  %v13998_v48 = vunpack.i.h.bf16 %v13996_v43  ;;  %v13997_v49 = vunpack.i.l.bf16 %v13996_v43 }
 0x143   :  { %12367 = vmatmul.mubr.msk.f32.vlgmr.msra.gmra.mrb[0].mxu0 %vm87_vm3, %v1396_v39  ;;  %13165 = vmatprep.subr.bf16.mxu1 %v13164_v44 }
 0x144   :  { %13167 = vmatpush3.bf16.msra.mxu1 %v13164_v44  ;;  %v1595_v51 = vsel %vm1593_vm11, %v13992_v47, %v13993_v46  ;;  %12380 = vmatprep.mubr.msk.f32.mxu0 %vm87_vm3, %v1583_v45  ;;  %v1689_v60 = vsel %vm1593_vm11, %v13997_v49, %v13998_v48 }
 0x145   :  { %v14001_v52 = vpop.permute.xlu1 %14000  ;;  %v14006_v53 = vpop.permute.xlu0 %14005  ;;  %v13168_v54 = vpack.c.bf16 %v1595_v51, %v1594_v50 }
 0x146   :  { %v14003_v55 = vunpack.i.h.bf16 %v14001_v52  ;;  %v14002_v56 = vunpack.i.l.bf16 %v14001_v52  ;;  %v14008_v57 = vunpack.i.h.bf16 %v14006_v53  ;;  %v14007_v58 = vunpack.i.l.bf16 %v14006_v53 }
 0x147   :  { %12374 = vmatmul.mubr.msk.f32.vlgmr.msra.gmra.mrb[0].mxu1 %vm87_vm3, %v1396_v39  ;;  %13169 = vmatprep.subr.bf16.mxu0 %v13168_v54 }
 0x148   :  { %13171 = vmatpush3.bf16.msra.mxu0 %v13168_v54  ;;  %v1690_v61 = vsel %vm1593_vm11, %v14002_v56, %v14003_v55  ;;  %12387 = vmatprep.mubr.msk.f32.mxu1 %vm87_vm3, %v1583_v45  ;;  %v1782_v6 = vsel %vm1781_vm12, %v14007_v58, %v14008_v57  ;;  %v2148_v55 = vld [vmem:[#allocation3 + $0xb8] sm:$0xff] }
 0x149   :  { %v14011_v62 = vpop.permute.xlu1 %14010  ;;  %v14016_v63 = vpop.permute.xlu0 %14015  ;;  %v13172_v0 = vpack.c.bf16 %v1690_v61, %v1689_v60  ;;  %v2335_v61 = vld [vmem:[#allocation3 + $0xc0] sm:$0xff] }
 0x14a   :  { %v14013_v2 = vunpack.i.h.bf16 %v14011_v62  ;;  %v14012_v3 = vunpack.i.l.bf16 %v14011_v62  ;;  %v14018_v4 = vunpack.i.h.bf16 %v14016_v63  ;;  %v14017_v5 = vunpack.i.l.bf16 %v14016_v63 }
 0x14b   :  { %12381 = vmatmul.mubr.msk.f32.vlgmr.msra.gmra.mrb[0].mxu0 %vm87_vm3, %v1584_v59  ;;  %13173 = vmatprep.subr.bf16.mxu1 %v13172_v0 }
 0x14c   :  { %13175 = vmatpush3.bf16.msra.mxu1 %v13172_v0  ;;  %v1783_v7 = vsel %vm1781_vm12, %v14012_v3, %v14013_v2  ;;  %12394 = vmatprep.mubr.msk.f32.mxu0 %vm87_vm3, %v1771_v1  ;;  %v1877_v16 = vsel %vm1781_vm12, %v14017_v5, %v14018_v4 }
 0x14d   :  { %v14021_v8 = vpop.permute.xlu1 %14020  ;;  %v14026_v9 = vpop.permute.xlu0 %14025  ;;  %v13176_v10 = vpack.c.bf16 %v1783_v7, %v1782_v6 }
 0x14e   :  { %v14023_v11 = vunpack.i.h.bf16 %v14021_v8  ;;  %v14022_v12 = vunpack.i.l.bf16 %v14021_v8  ;;  %v14028_v13 = vunpack.i.h.bf16 %v14026_v9  ;;  %v14027_v14 = vunpack.i.l.bf16 %v14026_v9 }
 0x14f   :  { %12388 = vmatmul.mubr.msk.f32.vlgmr.msra.gmra.mrb[0].mxu1 %vm87_vm3, %v1584_v59  ;;  %13177 = vmatprep.subr.bf16.mxu0 %v13176_v10 }
 0x150   :  { %13179 = vmatpush3.bf16.msra.mxu0 %v13176_v10  ;;  %v1878_v17 = vsel %vm1781_vm12, %v14022_v12, %v14023_v11  ;;  %12401 = vmatprep.mubr.msk.f32.mxu1 %vm87_vm3, %v1771_v1  ;;  %v1970_v26 = vsel %vm16082_vm13, %v14027_v14, %v14028_v13  ;;  %v2336_v11 = vld [vmem:[#allocation3 + $0xc8] sm:$0xff] }
 0x151   :  { %v14031_v18 = vpop.permute.xlu1 %14030  ;;  %v14036_v19 = vpop.permute.xlu0 %14035  ;;  %v13180_v20 = vpack.c.bf16 %v1878_v17, %v1877_v16  ;;  %v2523_v17 = vld [vmem:[#allocation3 + $0xd0] sm:$0xff] }
 0x152   :  { %v14033_v22 = vunpack.i.h.bf16 %v14031_v18  ;;  %v14032_v23 = vunpack.i.l.bf16 %v14031_v18  ;;  %v14038_v24 = vunpack.i.h.bf16 %v14036_v19  ;;  %v14037_v25 = vunpack.i.l.bf16 %v14036_v19 }
 0x153   :  { %12395 = vmatmul.mubr.msk.f32.vlgmr.msra.gmra.mrb[0].mxu0 %vm87_vm3, %v1772_v15  ;;  %13181 = vmatprep.subr.bf16.mxu1 %v13180_v20 }
 0x154   :  { %13183 = vmatpush3.bf16.msra.mxu1 %v13180_v20  ;;  %v1971_v27 = vsel %vm16082_vm13, %v14032_v23, %v14033_v22  ;;  %12408 = vmatprep.mubr.msk.f32.mxu0 %vm87_vm3, %v1959_v21  ;;  %v2065_v36 = vsel %vm16082_vm13, %v14037_v25, %v14038_v24 }
 0x155   :  { %v14041_v28 = vpop.permute.xlu1 %14040  ;;  %v14046_v29 = vpop.permute.xlu0 %14045  ;;  %v13184_v30 = vpack.c.bf16 %v1971_v27, %v1970_v26 }
 0x156   :  { %v14043_v31 = vunpack.i.h.bf16 %v14041_v28  ;;  %v14042_v32 = vunpack.i.l.bf16 %v14041_v28  ;;  %v14048_v33 = vunpack.i.h.bf16 %v14046_v29  ;;  %v14047_v34 = vunpack.i.l.bf16 %v14046_v29 }
 0x157   :  { %12402 = vmatmul.mubr.msk.f32.vlgmr.msra.gmra.mrb[0].mxu1 %vm87_vm3, %v1772_v15  ;;  %13185 = vmatprep.subr.bf16.mxu0 %v13184_v30 }
 0x158   :  { %13187 = vmatpush3.bf16.msra.mxu0 %v13184_v30  ;;  %v2066_v37 = vsel %vm16082_vm13, %v14042_v32, %v14043_v31  ;;  %12415 = vmatprep.mubr.msk.f32.mxu1 %vm87_vm3, %v1959_v21  ;;  %v2158_v46 = vsel %vm16081_vm14, %v14047_v34, %v14048_v33  ;;  %v2524_v31 = vld [vmem:[#allocation3 + $0xd8] sm:$0xff] }
 0x159   :  { %v14051_v38 = vpop.permute.xlu1 %14050  ;;  %v14056_v39 = vpop.permute.xlu0 %14055  ;;  %v13188_v40 = vpack.c.bf16 %v2066_v37, %v2065_v36  ;;  %v2711_v37 = vld [vmem:[#allocation3 + $0xe0] sm:$0xff] }
 0x15a   :  { %v14053_v42 = vunpack.i.h.bf16 %v14051_v38  ;;  %v14052_v43 = vunpack.i.l.bf16 %v14051_v38  ;;  %v14058_v44 = vunpack.i.h.bf16 %v14056_v39  ;;  %v14057_v45 = vunpack.i.l.bf16 %v14056_v39 }
 0x15b   :  { %12409 = vmatmul.mubr.msk.f32.vlgmr.msra.gmra.mrb[0].mxu0 %vm87_vm3, %v1960_v35  ;;  %13189 = vmatprep.subr.bf16.mxu1 %v13188_v40 }
 0x15c   :  { %13191 = vmatpush3.bf16.msra.mxu1 %v13188_v40  ;;  %v2159_v47 = vsel %vm16081_vm14, %v14052_v43, %v14053_v42  ;;  %12422 = vmatprep.mubr.msk.f32.mxu0 %vm87_vm3, %v2147_v41  ;;  %v2253_v56 = vsel %vm16081_vm14, %v14057_v45, %v14058_v44 }
 0x15d   :  { %v14061_v48 = vpop.permute.xlu1 %14060  ;;  %v14066_v49 = vpop.permute.xlu0 %14065  ;;  %v13192_v50 = vpack.c.bf16 %v2159_v47, %v2158_v46 }
 0x15e   :  { %v14063_v51 = vunpack.i.h.bf16 %v14061_v48  ;;  %v14062_v52 = vunpack.i.l.bf16 %v14061_v48  ;;  %v14068_v53 = vunpack.i.h.bf16 %v14066_v49  ;;  %v14067_v54 = vunpack.i.l.bf16 %v14066_v49  ;;  %v2712_v48 = vld [vmem:[#allocation3 + $0xe8] sm:$0xff] }
 0x15f   :  { %12416 = vmatmul.mubr.msk.f32.vlgmr.msra.gmra.mrb[0].mxu1 %vm87_vm3, %v1960_v35  ;;  %13193 = vmatprep.subr.bf16.mxu0 %v13192_v50 }
 0x160   :  { %13195 = vmatpush3.bf16.msra.mxu0 %v13192_v50  ;;  %v2254_v57 = vsel %vm16081_vm14, %v14062_v52, %v14063_v51  ;;  %12429 = vmatprep.mubr.msk.f32.mxu1 %vm87_vm3, %v2147_v41  ;;  %v2346_v2 = vsel %vm16078_vm15, %v14067_v54, %v14068_v53 }
 0x161   :  { %v14071_v58 = vpop.permute.xlu1 %14070  ;;  %v14076_v59 = vpop.permute.xlu0 %14075  ;;  %v13196_v60 = vpack.c.bf16 %v2254_v57, %v2253_v56 }
 0x162   :  { %v14073_v62 = vunpack.i.h.bf16 %v14071_v58  ;;  %v14072_v63 = vunpack.i.l.bf16 %v14071_v58  ;;  %v14078_v0 = vunpack.i.h.bf16 %v14076_v59  ;;  %v14077_v1 = vunpack.i.l.bf16 %v14076_v59 }
 0x163   :  { %12423 = vmatmul.mubr.msk.f32.vlgmr.msra.gmra.mrb[0].mxu0 %vm87_vm3, %v2148_v55  ;;  %13197 = vmatprep.subr.bf16.mxu1 %v13196_v60 }
 0x164   :  { %13199 = vmatpush3.bf16.msra.mxu1 %v13196_v60  ;;  %v2347_v3 = vsel %vm16078_vm15, %v14072_v63, %v14073_v62  ;;  %12436 = vmatprep.mubr.msk.f32.mxu0 %vm87_vm3, %v2335_v61  ;;  %v2441_v12 = vsel %vm16078_vm15, %v14077_v1, %v14078_v0 }
 0x165   :  { %v14081_v4 = vpop.permute.xlu1 %14080  ;;  %v14086_v5 = vpop.permute.xlu0 %14085  ;;  %v13200_v6 = vpack.c.bf16 %v2347_v3, %v2346_v2 }
 0x166   :  { %v14083_v7 = vunpack.i.h.bf16 %v14081_v4  ;;  %v14082_v8 = vunpack.i.l.bf16 %v14081_v4  ;;  %v14088_v9 = vunpack.i.h.bf16 %v14086_v5  ;;  %v14087_v10 = vunpack.i.l.bf16 %v14086_v5 }
 0x167   :  { %12430 = vmatmul.mubr.msk.f32.vlgmr.msra.gmra.mrb[0].mxu1 %vm87_vm3, %v2148_v55  ;;  %13201 = vmatprep.subr.bf16.mxu0 %v13200_v6 }
 0x168   :  { %13203 = vmatpush3.bf16.msra.mxu0 %v13200_v6  ;;  %v2442_v13 = vsel %vm16078_vm15, %v14082_v8, %v14083_v7  ;;  %12443 = vmatprep.mubr.msk.f32.mxu1 %vm87_vm3, %v2335_v61  ;;  %v2534_v22 = vsel %vm16079_vm1, %v14087_v10, %v14088_v9  ;;  %vm16080_vm15 = vcmask 932864   ;;  %v2950_v6 = vld [vmem:[#allocation3 + $0xf0] sm:$0xff] }
 0x169   :  { %v14091_v14 = vpop.permute.xlu1 %14090  ;;  %v14096_v15 = vpop.permute.xlu0 %14095  ;;  %v13204_v16 = vpack.c.bf16 %v2442_v13, %v2441_v12 }
 0x16a   :  { %v14093_v18 = vunpack.i.h.bf16 %v14091_v14  ;;  %v14092_v19 = vunpack.i.l.bf16 %v14091_v14  ;;  %v14098_v20 = vunpack.i.h.bf16 %v14096_v15  ;;  %v14097_v21 = vunpack.i.l.bf16 %v14096_v15 }
 0x16b   :  { %12437 = vmatmul.mubr.msk.f32.vlgmr.msra.gmra.mrb[0].mxu0 %vm87_vm3, %v2336_v11  ;;  %13205 = vmatprep.subr.bf16.mxu1 %v13204_v16 }
 0x16c   :  { %13207 = vmatpush3.bf16.msra.mxu1 %v13204_v16  ;;  %v2535_v23 = vsel %vm16079_vm1, %v14092_v19, %v14093_v18  ;;  %12450 = vmatprep.mubr.msk.f32.mxu0 %vm87_vm3, %v2523_v17  ;;  %v2629_v32 = vsel %vm16079_vm1, %v14097_v21, %v14098_v20 }
 0x16d   :  { %v14101_v24 = vpop.permute.xlu1 %14100  ;;  %v14106_v25 = vpop.permute.xlu0 %14105  ;;  %v13208_v26 = vpack.c.bf16 %v2535_v23, %v2534_v22 }
 0x16e   :  { %v14103_v27 = vunpack.i.h.bf16 %v14101_v24  ;;  %v14102_v28 = vunpack.i.l.bf16 %v14101_v24  ;;  %v14108_v29 = vunpack.i.h.bf16 %v14106_v25  ;;  %v14107_v30 = vunpack.i.l.bf16 %v14106_v25  ;;  %v2951_v25 = vld [vmem:[#allocation3 + $0xf8] sm:$0xff] }
 0x16f   :  { %12444 = vmatmul.mubr.msk.f32.vlgmr.msra.gmra.mrb[0].mxu1 %vm87_vm3, %v2336_v11  ;;  %13209 = vmatprep.subr.bf16.mxu0 %v13208_v26 }
 0x170   :  { %13211 = vmatpush3.bf16.msra.mxu0 %v13208_v26  ;;  %v2630_v33 = vsel %vm16079_vm1, %v14102_v28, %v14103_v27  ;;  %12457 = vmatprep.mubr.msk.f32.mxu1 %vm87_vm3, %v2523_v17  ;;  %v2722_v42 = vsel %vm16080_vm15, %v14107_v30, %v14108_v29  ;;  %v3117_v26 = vld [vmem:[#allocation3 + $0x100] sm:$0xff]  ;;  %v11581_v27 = vld [vmem:[%s16076_s2 + $0x18] sm:$0xff]  ;;  %v11580_v28 = vld [vmem:[%s16076_s2 + $0x10] sm:$0xff] }
 0x171   :  { %v14111_v34 = vpop.permute.xlu1 %14110  ;;  %v14116_v35 = vpop.permute.xlu0 %14115  ;;  %v13212_v36 = vpack.c.bf16 %v2630_v33, %v2629_v32 }
 0x172   :  { %v14113_v38 = vunpack.i.h.bf16 %v14111_v34  ;;  %v14112_v39 = vunpack.i.l.bf16 %v14111_v34  ;;  %v14118_v40 = vunpack.i.h.bf16 %v14116_v35  ;;  %v14117_v41 = vunpack.i.l.bf16 %v14116_v35 }
 0x173   :  { %12451 = vmatmul.mubr.msk.f32.vlgmr.msra.gmra.mrb[0].mxu0 %vm87_vm3, %v2524_v31  ;;  %13213 = vmatprep.subr.bf16.mxu1 %v13212_v36 }
 0x174   :  { %13215 = vmatpush3.bf16.msra.mxu1 %v13212_v36  ;;  %v2723_v43 = vsel %vm16080_vm15, %v14112_v39, %v14113_v38  ;;  %12464 = vmatprep.mubr.msk.f32.mxu0 %vm87_vm3, %v2711_v37  ;;  %v2817_v49 = vsel %vm16080_vm15, %v14117_v41, %v14118_v40 }
 0x175   :  { %v14121_v44 = vpop.permute.xlu1 %14120  ;;  %v13216_v45 = vpack.c.bf16 %v2723_v43, %v2722_v42 }
 0x176   :  { %v14123_v46 = vunpack.i.h.bf16 %v14121_v44  ;;  %v14122_v47 = vunpack.i.l.bf16 %v14121_v44 }
 0x177   :  { %12458 = vmatmul.mubr.msk.f32.vlgmr.msra.gmra.mrb[0].mxu1 %vm87_vm3, %v2524_v31  ;;  %13217 = vmatprep.subr.bf16.mxu0 %v13216_v45 }
 0x178   :  { %13219 = vmatpush3.bf16.msra.mxu0 %v13216_v45  ;;  %v2818_v50 = vsel %vm16080_vm15, %v14122_v47, %v14123_v46  ;;  %12471 = vmatprep.mubr.msk.f32.mxu1 %vm87_vm3, %v2711_v37  ;;  %v3118_v46 = vld [vmem:[#allocation3 + $0x108] sm:$0xff] }
 0x179   :  { %v13220_v51 = vpack.c.bf16 %v2818_v50, %v2817_v49 }
 0x17b   :  { %12465 = vmatmul.mubr.msk.f32.vlgmr.msra.gmra.mrb[0].mxu0 %vm87_vm3, %v2712_v48  ;;  %13221 = vmatprep.subr.bf16.mxu1 %v13220_v51 }
 0x17c   :  { %13223 = vmatpush3.bf16.msra.mxu1 %v13220_v51  ;;  %12478 = vmatprep.mubr.msk.f32.mxu0 %vm87_vm3, %v2950_v6 }
 0x17f   :  { %12472 = vmatmul.mubr.msk.f32.vlgmr.msra.gmra.mrb[0].mxu1 %vm87_vm3, %v2712_v48 }
 0x180   :  { %12485 = vmatprep.mubr.msk.f32.mxu1 %vm87_vm3, %v2950_v6 }
 0x182   :  { %v74_v53 = vpop.permute.xlu0 %73 }
 0x186   :  { %v79_v52 = vpop.permute.xlu1 %78 }
 0x24e   :  { %v12466_v54 = vpop.f32.mrb[0].mxu0 }
 0x24f   :  { %v13584_v55 = vadd.f32 %v12466_v54, %v79_v52  ;;  %v2798_v56 = vpop.f32.mrb[1].mxu0 }
 0x250   :  { %v13585_v57 = vadd.f32 %v2798_v56, %v74_v53 }
 0x251   :  { %v2901_v58 = vmul.f32 0.2, %v13584_v55  ;;  %vm2899_vm1 = vcmp.gt.f32.partialorder %v13584_v55, 0.0 }
 0x252   :  { %v2900_v59 = vmul.f32 0.2, %v13585_v57  ;;  %v12473_v60 = vpop.f32.mrb[0].mxu1  ;;  %vm2898_vm15 = vcmp.gt.f32.partialorder %v13585_v57, 0.0 }
 0x253   :  { %v13586_v61 = vadd.f32 %v12473_v60, %v79_v52  ;;  %v2887_v62 = vpop.f32.mrb[1].mxu1  ;;  %v2903_v63 = vsel %vm2899_vm1, %v13584_v55, %v2901_v58  ;;  %v3320_v52 = vld [vmem:[#allocation3 + $0x110] sm:$0xff] }
 0x254   :  { %v13587_v0 = vadd.f32 %v2887_v62, %v74_v53  ;;  %2914 = vrot.lane.b32.xlu0 %v2903_v63, %s15014_s29  ;;  %v2902_v1 = vsel %vm2898_vm15, %v13585_v57, %v2900_v59 }
 0x255   :  { %v2907_v2 = vmul.f32 0.2, %v13586_v61  ;;  %2912 = vrot.lane.b32.xlu1 %v2902_v1, %s15014_s29  ;;  %vm2905_vm14 = vcmp.gt.f32.partialorder %v13586_v61, 0.0 }
 0x256   :  { %v2906_v3 = vmul.f32 0.2, %v13587_v0  ;;  %vm2904_vm13 = vcmp.gt.f32.partialorder %v13587_v0, 0.0 }
 0x257   :  { %v2909_v4 = vsel %vm2905_vm14, %v13586_v61, %v2907_v2  ;;  %v3321_v2 = vld [vmem:[#allocation3 + $0x118] sm:$0xff] }
 0x258   :  { %2926 = vrot.lane.b32.xlu0 %v2909_v4, %s15014_s29  ;;  %v2908_v5 = vsel %vm2904_vm13, %v13587_v0, %v2906_v3  ;;  %vm16083_vm13 = vcmask 965632  }
 0x259   :  { %2924 = vrot.lane.b32.xlu1 %v2908_v5, %s15014_s29  ;;  %vm16084_vm14 = vmmov %vm16083_vm13 }
 0x25a   :  { %vm16085_vm15 = vmmov %vm16083_vm13 }
 0x25b   :  { %vm16086_vm1 = vmmov %vm16083_vm13 }
 0x2c6   :  { %v2915_v7 = vpop.permute.xlu0 %2914 }
 0x2c7   :  { %2920 = vst.msk [vmem:[#allocation2 + $0x10] sm:$0xff] %vm52_vm2, %v2915_v7  ;;  %v2913_v8 = vpop.permute.xlu1 %2912 }
 0x2c8   :  { %2921 = vst.msk [vmem:[#allocation2 + $0x18] sm:$0xff] %vm28_vm0, %v2915_v7  ;;  %2919 = vst.msk [vmem:[#allocation2 + $0x8] sm:$0xff] %vm28_vm0, %v2913_v8 }
 0x2c9   :  { %2918 = vst.msk [vmem:[#allocation2] sm:$0xff] %vm52_vm2, %v2913_v8  ;;  %v3507_v8 = vld [vmem:[#allocation3 + $0x120] sm:$0xff] }
 0x2ca   :  { %v2927_v9 = vpop.permute.xlu0 %2926 }
 0x2cb   :  { %2932 = vst.msk [vmem:[#allocation2 + $0x30] sm:$0xff] %vm52_vm2, %v2927_v9  ;;  %v2925_v10 = vpop.permute.xlu1 %2924 }
 0x2cc   :  { %2933 = vst.msk [vmem:[#allocation2 + $0x38] sm:$0xff] %vm28_vm0, %v2927_v9  ;;  %2931 = vst.msk [vmem:[#allocation2 + $0x28] sm:$0xff] %vm28_vm0, %v2925_v10 }
 0x2cd   :  { %2930 = vst.msk [vmem:[#allocation2 + $0x20] sm:$0xff] %vm52_vm2, %v2925_v10 }
 0x2ce   :  { %v3121_v11 = vld [vmem:[#allocation2 + $0x10] sm:$0xff] }
 0x2cf   :  { %v3122_v12 = vld [vmem:[#allocation2 + $0x18] sm:$0xff]  ;;  %v3120_v14 = vld [vmem:[#allocation2 + $0x8] sm:$0xff] }
 0x2d0   :  { %v3119_v13 = vld [vmem:[#allocation2] sm:$0xff]  ;;  %v15346_v15 = vpack.i.bf16 %v3122_v12, %v3121_v11 }
 0x2d1   :  { %v15348_v16 = vpack.i.bf16 %v3120_v14, %v3119_v13  ;;  %v13224_v17 = vpack.c.bf16 %v3121_v11, %v3119_v13 }
 0x2d2   :  { %14127 = vrot.lane.b32.xlu0 %v15346_v15, %s15015_s7  ;;  %v3224_v18 = vld [vmem:[#allocation2 + $0x30] sm:$0xff] }
 0x2d3   :  { %v3225_v19 = vld [vmem:[#allocation2 + $0x38] sm:$0xff]  ;;  %14262 = vrot.lane.b32.xlu1 %v15348_v16, %s15015_s7  ;;  %13225 = vmatprep.subr.bf16.mxu0 %v13224_v17  ;;  %v3223_v21 = vld [vmem:[#allocation2 + $0x28] sm:$0xff] }
 0x2d4   :  { %v3222_v20 = vld [vmem:[#allocation2 + $0x20] sm:$0xff]  ;;  %13227 = vmatpush3.bf16.msra.mxu0 %v13224_v17  ;;  %v14131_v22 = vpack.i.bf16 %v3225_v19, %v3224_v18 }
 0x2d5   :  { %v14266_v23 = vpack.i.bf16 %v3223_v21, %v3222_v20  ;;  %v13228_v24 = vpack.c.bf16 %v3224_v18, %v3222_v20 }
 0x2d6   :  { %14132 = vrot.lane.b32.xlu0 %v14131_v22, %s15015_s7 }
 0x2d7   :  { %14267 = vrot.lane.b32.xlu1 %v14266_v23, %s15015_s7  ;;  %13229 = vmatprep.subr.bf16.mxu1 %v13228_v24 }
 0x2d8   :  { %13231 = vmatpush3.bf16.msra.mxu1 %v13228_v24  ;;  %12479 = vmatmul.mubr.msk.f32.vlgmr.msra.gmra.mrb[2].mxu0 %vm87_vm3, %v2951_v25 }
 0x2d9   :  { %12492 = vmatprep.mubr.msk.f32.mxu0 %vm87_vm3, %v3117_v26 }
 0x2da   :  { %14137 = vrot.lane.b32.xlu0 %v15346_v15, %s15016_s8 }
 0x2db   :  { %14272 = vrot.lane.b32.xlu1 %v15348_v16, %s15016_s8  ;;  %12486 = vmatmul.mubr.msk.f32.vlgmr.msra.gmra.mrb[2].mxu1 %vm87_vm3, %v2951_v25 }
 0x2dc   :  { %12499 = vmatprep.mubr.msk.f32.mxu1 %vm87_vm3, %v3117_v26 }
 0x2de   :  { %14142 = vrot.lane.b32.xlu0 %v14131_v22, %s15016_s8 }
 0x2df   :  { %14277 = vrot.lane.b32.xlu1 %v14266_v23, %s15016_s8 }
 0x2e2   :  { %14147 = vrot.lane.b32.xlu0 %v15346_v15, %s15017_s9 }
 0x2e3   :  { %14282 = vrot.lane.b32.xlu1 %v15348_v16, %s15017_s9 }
 0x2e6   :  { %14152 = vrot.lane.b32.xlu0 %v14131_v22, %s15017_s9 }
 0x2e7   :  { %14287 = vrot.lane.b32.xlu1 %v14266_v23, %s15017_s9 }
 0x2ea   :  { %14157 = vrot.lane.b32.xlu0 %v15346_v15, %s15018_s10 }
 0x2eb   :  { %14292 = vrot.lane.b32.xlu1 %v15348_v16, %s15018_s10 }
 0x2ee   :  { %14162 = vrot.lane.b32.xlu0 %v14131_v22, %s15018_s10 }
 0x2ef   :  { %14297 = vrot.lane.b32.xlu1 %v14266_v23, %s15018_s10 }
 0x2f2   :  { %14167 = vrot.lane.b32.xlu0 %v15346_v15, %s15019_s11 }
 0x2f3   :  { %14302 = vrot.lane.b32.xlu1 %v15348_v16, %s15019_s11 }
 0x2f6   :  { %14172 = vrot.lane.b32.xlu0 %v14131_v22, %s15019_s11 }
 0x2f7   :  { %14307 = vrot.lane.b32.xlu1 %v14266_v23, %s15019_s11 }
 0x2fa   :  { %14177 = vrot.lane.b32.xlu0 %v15346_v15, %s15020_s12 }
 0x2fb   :  { %14312 = vrot.lane.b32.xlu1 %v15348_v16, %s15020_s12 }
 0x2fe   :  { %14182 = vrot.lane.b32.xlu0 %v14131_v22, %s15020_s12 }
 0x2ff   :  { %14317 = vrot.lane.b32.xlu1 %v14266_v23, %s15020_s12 }
 0x302   :  { %14187 = vrot.lane.b32.xlu0 %v15346_v15, %s15021_s13 }
 0x303   :  { %14322 = vrot.lane.b32.xlu1 %v15348_v16, %s15021_s13 }
 0x306   :  { %14192 = vrot.lane.b32.xlu0 %v14131_v22, %s15021_s13 }
 0x307   :  { %14327 = vrot.lane.b32.xlu1 %v14266_v23, %s15021_s13 }
 0x30a   :  { %14197 = vrot.lane.b32.xlu0 %v15346_v15, %s15022_s14 }
 0x30b   :  { %14332 = vrot.lane.b32.xlu1 %v15348_v16, %s15022_s14 }
 0x30e   :  { %14202 = vrot.lane.b32.xlu0 %v14131_v22, %s15022_s14 }
 0x30f   :  { %14337 = vrot.lane.b32.xlu1 %v14266_v23, %s15022_s14 }
 0x312   :  { %14207 = vrot.lane.b32.xlu0 %v15346_v15, %s15023_s15 }
 0x313   :  { %14342 = vrot.lane.b32.xlu1 %v15348_v16, %s15023_s15 }
 0x316   :  { %14212 = vrot.lane.b32.xlu0 %v14131_v22, %s15023_s15 }
 0x317   :  { %14347 = vrot.lane.b32.xlu1 %v14266_v23, %s15023_s15 }
 0x31a   :  { %14217 = vrot.lane.b32.xlu0 %v15346_v15, %s15024_s16 }
 0x31b   :  { %14352 = vrot.lane.b32.xlu1 %v15348_v16, %s15024_s16 }
 0x31e   :  { %14222 = vrot.lane.b32.xlu0 %v14131_v22, %s15024_s16 }
 0x31f   :  { %14357 = vrot.lane.b32.xlu1 %v14266_v23, %s15024_s16 }
 0x322   :  { %14227 = vrot.lane.b32.xlu0 %v15346_v15, %s15025_s17 }
 0x323   :  { %14362 = vrot.lane.b32.xlu1 %v15348_v16, %s15025_s17 }
 0x326   :  { %14232 = vrot.lane.b32.xlu0 %v14131_v22, %s15025_s17 }
 0x327   :  { %14367 = vrot.lane.b32.xlu1 %v14266_v23, %s15025_s17 }
 0x32a   :  { %14237 = vrot.lane.b32.xlu0 %v15346_v15, %s15026_s18 }
 0x32b   :  { %14372 = vrot.lane.b32.xlu1 %v15348_v16, %s15026_s18 }
 0x32e   :  { %14242 = vrot.lane.b32.xlu0 %v14131_v22, %s15026_s18 }
 0x32f   :  { %14377 = vrot.lane.b32.xlu1 %v14266_v23, %s15026_s18 }
 0x332   :  { %14247 = vrot.lane.b32.xlu0 %v15346_v15, %s15027_s19 }
 0x333   :  { %14382 = vrot.lane.b32.xlu1 %v15348_v16, %s15027_s19 }
 0x336   :  { %14252 = vrot.lane.b32.xlu0 %v14131_v22, %s15027_s19 }
 0x337   :  { %14387 = vrot.lane.b32.xlu1 %v14266_v23, %s15027_s19 }
 0x33a   :  { %14257 = vrot.lane.b32.xlu0 %v15346_v15, %s15028_s20 }
 0x33b   :  { %14392 = vrot.lane.b32.xlu1 %v15348_v16, %s15028_s20 }
 0x33e   :  { %14402 = vrot.lane.b32.xlu0 %v14131_v22, %s15028_s20  ;;  %v3508_v22 = vld [vmem:[#allocation3 + $0x128] sm:$0xff] }
 0x33f   :  { %14397 = vrot.lane.b32.xlu1 %v14266_v23, %s15028_s20 }
 0x342   :  { %2944 = vperm.xlu0 %14124, %v11581_v27  }
 0x343   :  { %2939 = vperm.xlu1 %14125, %v11580_v28   ;;  %v3694_v28 = vld [vmem:[#allocation3 + $0x130] sm:$0xff] }
 0x344   :  { %v14128_v29 = vpop.permute.xlu0 %14127 }
 0x345   :  { %v14130_v30 = vunpack.i.h.bf16 %v14128_v29  ;;  %v14129_v31 = vunpack.i.l.bf16 %v14128_v29  ;;  %v14263_v32 = vpop.permute.xlu1 %14262 }
 0x346   :  { %v14265_v33 = vunpack.i.h.bf16 %v14263_v32  ;;  %v14264_v34 = vunpack.i.l.bf16 %v14263_v32 }
 0x347   :  { %v3136_v35 = vsel %vm269_vm4, %v14129_v31, %v14130_v30 }
 0x348   :  { %v14133_v36 = vpop.permute.xlu0 %14132  ;;  %v3135_v37 = vsel %vm269_vm4, %v14264_v34, %v14265_v33 }
 0x349   :  { %v14135_v38 = vunpack.i.h.bf16 %v14133_v36  ;;  %v14134_v39 = vunpack.i.l.bf16 %v14133_v36  ;;  %v14268_v40 = vpop.permute.xlu1 %14267  ;;  %v13232_v41 = vpack.c.bf16 %v3136_v35, %v3135_v37 }
 0x34a   :  { %v14270_v42 = vunpack.i.h.bf16 %v14268_v40  ;;  %v14269_v43 = vunpack.i.l.bf16 %v14268_v40 }
 0x34b   :  { %13233 = vmatprep.subr.bf16.mxu0 %v13232_v41  ;;  %v3239_v44 = vsel %vm269_vm4, %v14134_v39, %v14135_v38 }
 0x34c   :  { %v14138_v45 = vpop.permute.xlu0 %14137  ;;  %13235 = vmatpush3.bf16.msra.mxu0 %v13232_v41  ;;  %v3238_v47 = vsel %vm269_vm4, %v14269_v43, %v14270_v42  ;;  %v3695_v42 = vld [vmem:[#allocation3 + $0x138] sm:$0xff] }
 0x34d   :  { %v14140_v48 = vunpack.i.h.bf16 %v14138_v45  ;;  %v14139_v49 = vunpack.i.l.bf16 %v14138_v45  ;;  %v14273_v50 = vpop.permute.xlu1 %14272  ;;  %v13236_v51 = vpack.c.bf16 %v3239_v44, %v3238_v47 }
 0x34e   :  { %v14275_v53 = vunpack.i.h.bf16 %v14273_v50  ;;  %v14274_v54 = vunpack.i.l.bf16 %v14273_v50 }
 0x34f   :  { %12493 = vmatmul.mubr.msk.f32.vlgmr.msra.gmra.mrb[2].mxu0 %vm87_vm3, %v3118_v46  ;;  %13237 = vmatprep.subr.bf16.mxu1 %v13236_v51  ;;  %v3331_v55 = vsel %vm465_vm5, %v14139_v49, %v14140_v48  ;;  %v3881_v48 = vld [vmem:[#allocation3 + $0x140] sm:$0xff] }
 0x350   :  { %v14143_v56 = vpop.permute.xlu0 %14142  ;;  %13239 = vmatpush3.bf16.msra.mxu1 %v13236_v51  ;;  %v3330_v57 = vsel %vm465_vm5, %v14274_v54, %v14275_v53  ;;  %12506 = vmatprep.mubr.msk.f32.mxu0 %vm87_vm3, %v3320_v52 }
 0x351   :  { %v14145_v58 = vunpack.i.h.bf16 %v14143_v56  ;;  %v14144_v59 = vunpack.i.l.bf16 %v14143_v56  ;;  %v14278_v60 = vpop.permute.xlu1 %14277  ;;  %v13240_v61 = vpack.c.bf16 %v3331_v55, %v3330_v57 }
 0x352   :  { %v14280_v62 = vunpack.i.h.bf16 %v14278_v60  ;;  %v14279_v63 = vunpack.i.l.bf16 %v14278_v60 }
 0x353   :  { %12500 = vmatmul.mubr.msk.f32.vlgmr.msra.gmra.mrb[2].mxu1 %vm87_vm3, %v3118_v46  ;;  %13241 = vmatprep.subr.bf16.mxu0 %v13240_v61  ;;  %v3426_v0 = vsel %vm465_vm5, %v14144_v59, %v14145_v58 }
 0x354   :  { %v14148_v1 = vpop.permute.xlu0 %14147  ;;  %13243 = vmatpush3.bf16.msra.mxu0 %v13240_v61  ;;  %v3425_v3 = vsel %vm465_vm5, %v14279_v63, %v14280_v62  ;;  %12513 = vmatprep.mubr.msk.f32.mxu1 %vm87_vm3, %v3320_v52  ;;  %v3882_v62 = vld [vmem:[#allocation3 + $0x148] sm:$0xff] }
 0x355   :  { %v14150_v4 = vunpack.i.h.bf16 %v14148_v1  ;;  %v14149_v5 = vunpack.i.l.bf16 %v14148_v1  ;;  %v14283_v6 = vpop.permute.xlu1 %14282  ;;  %v13244_v7 = vpack.c.bf16 %v3426_v0, %v3425_v3 }
 0x356   :  { %v14285_v9 = vunpack.i.h.bf16 %v14283_v6  ;;  %v14284_v10 = vunpack.i.l.bf16 %v14283_v6 }
 0x357   :  { %12507 = vmatmul.mubr.msk.f32.vlgmr.msra.gmra.mrb[2].mxu0 %vm87_vm3, %v3321_v2  ;;  %13245 = vmatprep.subr.bf16.mxu1 %v13244_v7  ;;  %v3518_v11 = vsel %vm653_vm6, %v14149_v5, %v14150_v4  ;;  %v4068_v4 = vld [vmem:[#allocation3 + $0x150] sm:$0xff] }
 0x358   :  { %v14153_v12 = vpop.permute.xlu0 %14152  ;;  %13247 = vmatpush3.bf16.msra.mxu1 %v13244_v7  ;;  %v3517_v13 = vsel %vm653_vm6, %v14284_v10, %v14285_v9  ;;  %12520 = vmatprep.mubr.msk.f32.mxu0 %vm87_vm3, %v3507_v8 }
 0x359   :  { %v14155_v14 = vunpack.i.h.bf16 %v14153_v12  ;;  %v14154_v15 = vunpack.i.l.bf16 %v14153_v12  ;;  %v14288_v16 = vpop.permute.xlu1 %14287  ;;  %v13248_v17 = vpack.c.bf16 %v3518_v11, %v3517_v13 }
 0x35a   :  { %v14290_v18 = vunpack.i.h.bf16 %v14288_v16  ;;  %v14289_v19 = vunpack.i.l.bf16 %v14288_v16 }
 0x35b   :  { %12514 = vmatmul.mubr.msk.f32.vlgmr.msra.gmra.mrb[2].mxu1 %vm87_vm3, %v3321_v2  ;;  %13249 = vmatprep.subr.bf16.mxu0 %v13248_v17  ;;  %v3613_v20 = vsel %vm653_vm6, %v14154_v15, %v14155_v14 }
 0x35c   :  { %v14158_v21 = vpop.permute.xlu0 %14157  ;;  %13251 = vmatpush3.bf16.msra.mxu0 %v13248_v17  ;;  %v3612_v23 = vsel %vm653_vm6, %v14289_v19, %v14290_v18  ;;  %12527 = vmatprep.mubr.msk.f32.mxu1 %vm87_vm3, %v3507_v8  ;;  %v4069_v18 = vld [vmem:[#allocation3 + $0x158] sm:$0xff] }
 0x35d   :  { %v14160_v24 = vunpack.i.h.bf16 %v14158_v21  ;;  %v14159_v25 = vunpack.i.l.bf16 %v14158_v21  ;;  %v14293_v26 = vpop.permute.xlu1 %14292  ;;  %v13252_v27 = vpack.c.bf16 %v3613_v20, %v3612_v23 }
 0x35e   :  { %v14295_v29 = vunpack.i.h.bf16 %v14293_v26  ;;  %v14294_v30 = vunpack.i.l.bf16 %v14293_v26 }
 0x35f   :  { %12521 = vmatmul.mubr.msk.f32.vlgmr.msra.gmra.mrb[2].mxu0 %vm87_vm3, %v3508_v22  ;;  %13253 = vmatprep.subr.bf16.mxu1 %v13252_v27  ;;  %v3705_v31 = vsel %vm841_vm7, %v14159_v25, %v14160_v24  ;;  %v4255_v24 = vld [vmem:[#allocation3 + $0x160] sm:$0xff] }
 0x360   :  { %v14163_v32 = vpop.permute.xlu0 %14162  ;;  %13255 = vmatpush3.bf16.msra.mxu1 %v13252_v27  ;;  %v3704_v33 = vsel %vm841_vm7, %v14294_v30, %v14295_v29  ;;  %12534 = vmatprep.mubr.msk.f32.mxu0 %vm87_vm3, %v3694_v28 }
 0x361   :  { %v14165_v34 = vunpack.i.h.bf16 %v14163_v32  ;;  %v14164_v35 = vunpack.i.l.bf16 %v14163_v32  ;;  %v14298_v36 = vpop.permute.xlu1 %14297  ;;  %v13256_v37 = vpack.c.bf16 %v3705_v31, %v3704_v33 }
 0x362   :  { %v14300_v38 = vunpack.i.h.bf16 %v14298_v36  ;;  %v14299_v39 = vunpack.i.l.bf16 %v14298_v36 }
 0x363   :  { %12528 = vmatmul.mubr.msk.f32.vlgmr.msra.gmra.mrb[2].mxu1 %vm87_vm3, %v3508_v22  ;;  %13257 = vmatprep.subr.bf16.mxu0 %v13256_v37  ;;  %v3800_v40 = vsel %vm841_vm7, %v14164_v35, %v14165_v34 }
 0x364   :  { %v14168_v41 = vpop.permute.xlu0 %14167  ;;  %13259 = vmatpush3.bf16.msra.mxu0 %v13256_v37  ;;  %v3799_v43 = vsel %vm841_vm7, %v14299_v39, %v14300_v38  ;;  %12541 = vmatprep.mubr.msk.f32.mxu1 %vm87_vm3, %v3694_v28  ;;  %v4256_v38 = vld [vmem:[#allocation3 + $0x168] sm:$0xff] }
 0x365   :  { %v14170_v44 = vunpack.i.h.bf16 %v14168_v41  ;;  %v14169_v45 = vunpack.i.l.bf16 %v14168_v41  ;;  %v14303_v46 = vpop.permute.xlu1 %14302  ;;  %v13260_v47 = vpack.c.bf16 %v3800_v40, %v3799_v43 }
 0x366   :  { %v14305_v49 = vunpack.i.h.bf16 %v14303_v46  ;;  %v14304_v50 = vunpack.i.l.bf16 %v14303_v46 }
 0x367   :  { %12535 = vmatmul.mubr.msk.f32.vlgmr.msra.gmra.mrb[2].mxu0 %vm87_vm3, %v3695_v42  ;;  %13261 = vmatprep.subr.bf16.mxu1 %v13260_v47  ;;  %v3892_v51 = vsel %vm1029_vm8, %v14169_v45, %v14170_v44  ;;  %v4442_v44 = vld [vmem:[#allocation3 + $0x170] sm:$0xff] }
 0x368   :  { %v14173_v52 = vpop.permute.xlu0 %14172  ;;  %13263 = vmatpush3.bf16.msra.mxu1 %v13260_v47  ;;  %v3891_v53 = vsel %vm1029_vm8, %v14304_v50, %v14305_v49  ;;  %12548 = vmatprep.mubr.msk.f32.mxu0 %vm87_vm3, %v3881_v48 }
 0x369   :  { %v14175_v54 = vunpack.i.h.bf16 %v14173_v52  ;;  %v14174_v55 = vunpack.i.l.bf16 %v14173_v52  ;;  %v14308_v56 = vpop.permute.xlu1 %14307  ;;  %v13264_v57 = vpack.c.bf16 %v3892_v51, %v3891_v53 }
 0x36a   :  { %v14310_v58 = vunpack.i.h.bf16 %v14308_v56  ;;  %v14309_v59 = vunpack.i.l.bf16 %v14308_v56 }
 0x36b   :  { %12542 = vmatmul.mubr.msk.f32.vlgmr.msra.gmra.mrb[2].mxu1 %vm87_vm3, %v3695_v42  ;;  %13265 = vmatprep.subr.bf16.mxu0 %v13264_v57  ;;  %v3987_v60 = vsel %vm1029_vm8, %v14174_v55, %v14175_v54 }
 0x36c   :  { %v14178_v61 = vpop.permute.xlu0 %14177  ;;  %13267 = vmatpush3.bf16.msra.mxu0 %v13264_v57  ;;  %v3986_v63 = vsel %vm1029_vm8, %v14309_v59, %v14310_v58  ;;  %12555 = vmatprep.mubr.msk.f32.mxu1 %vm87_vm3, %v3881_v48  ;;  %v4443_v58 = vld [vmem:[#allocation3 + $0x178] sm:$0xff] }
 0x36d   :  { %v14180_v0 = vunpack.i.h.bf16 %v14178_v61  ;;  %v14179_v1 = vunpack.i.l.bf16 %v14178_v61  ;;  %v14313_v2 = vpop.permute.xlu1 %14312  ;;  %v13268_v3 = vpack.c.bf16 %v3987_v60, %v3986_v63 }
 0x36e   :  { %v14315_v5 = vunpack.i.h.bf16 %v14313_v2  ;;  %v14314_v6 = vunpack.i.l.bf16 %v14313_v2 }
 0x36f   :  { %12549 = vmatmul.mubr.msk.f32.vlgmr.msra.gmra.mrb[2].mxu0 %vm87_vm3, %v3882_v62  ;;  %13269 = vmatprep.subr.bf16.mxu1 %v13268_v3  ;;  %v4079_v7 = vsel %vm1217_vm9, %v14179_v1, %v14180_v0  ;;  %v4629_v0 = vld [vmem:[#allocation3 + $0x180] sm:$0xff] }
 0x370   :  { %v14183_v8 = vpop.permute.xlu0 %14182  ;;  %13271 = vmatpush3.bf16.msra.mxu1 %v13268_v3  ;;  %v4078_v9 = vsel %vm1217_vm9, %v14314_v6, %v14315_v5  ;;  %12562 = vmatprep.mubr.msk.f32.mxu0 %vm87_vm3, %v4068_v4 }
 0x371   :  { %v14185_v10 = vunpack.i.h.bf16 %v14183_v8  ;;  %v14184_v11 = vunpack.i.l.bf16 %v14183_v8  ;;  %v14318_v12 = vpop.permute.xlu1 %14317  ;;  %v13272_v13 = vpack.c.bf16 %v4079_v7, %v4078_v9 }
 0x372   :  { %v14320_v14 = vunpack.i.h.bf16 %v14318_v12  ;;  %v14319_v15 = vunpack.i.l.bf16 %v14318_v12 }
 0x373   :  { %12556 = vmatmul.mubr.msk.f32.vlgmr.msra.gmra.mrb[2].mxu1 %vm87_vm3, %v3882_v62  ;;  %13273 = vmatprep.subr.bf16.mxu0 %v13272_v13  ;;  %v4174_v16 = vsel %vm1217_vm9, %v14184_v11, %v14185_v10 }
 0x374   :  { %v14188_v17 = vpop.permute.xlu0 %14187  ;;  %13275 = vmatpush3.bf16.msra.mxu0 %v13272_v13  ;;  %v4173_v19 = vsel %vm1217_vm9, %v14319_v15, %v14320_v14  ;;  %12569 = vmatprep.mubr.msk.f32.mxu1 %vm87_vm3, %v4068_v4  ;;  %v4630_v14 = vld [vmem:[#allocation3 + $0x188] sm:$0xff] }
 0x375   :  { %v14190_v20 = vunpack.i.h.bf16 %v14188_v17  ;;  %v14189_v21 = vunpack.i.l.bf16 %v14188_v17  ;;  %v14323_v22 = vpop.permute.xlu1 %14322  ;;  %v13276_v23 = vpack.c.bf16 %v4174_v16, %v4173_v19 }
 0x376   :  { %v14325_v25 = vunpack.i.h.bf16 %v14323_v22  ;;  %v14324_v26 = vunpack.i.l.bf16 %v14323_v22 }
 0x377   :  { %12563 = vmatmul.mubr.msk.f32.vlgmr.msra.gmra.mrb[2].mxu0 %vm87_vm3, %v4069_v18  ;;  %13277 = vmatprep.subr.bf16.mxu1 %v13276_v23  ;;  %v4266_v27 = vsel %vm1405_vm10, %v14189_v21, %v14190_v20  ;;  %v4816_v20 = vld [vmem:[#allocation3 + $0x190] sm:$0xff] }
 0x378   :  { %v14193_v28 = vpop.permute.xlu0 %14192  ;;  %13279 = vmatpush3.bf16.msra.mxu1 %v13276_v23  ;;  %v4265_v29 = vsel %vm1405_vm10, %v14324_v26, %v14325_v25  ;;  %12576 = vmatprep.mubr.msk.f32.mxu0 %vm87_vm3, %v4255_v24 }
 0x379   :  { %v14195_v30 = vunpack.i.h.bf16 %v14193_v28  ;;  %v14194_v31 = vunpack.i.l.bf16 %v14193_v28  ;;  %v14328_v32 = vpop.permute.xlu1 %14327  ;;  %v13280_v33 = vpack.c.bf16 %v4266_v27, %v4265_v29 }
 0x37a   :  { %v14330_v34 = vunpack.i.h.bf16 %v14328_v32  ;;  %v14329_v35 = vunpack.i.l.bf16 %v14328_v32 }
 0x37b   :  { %12570 = vmatmul.mubr.msk.f32.vlgmr.msra.gmra.mrb[2].mxu1 %vm87_vm3, %v4069_v18  ;;  %13281 = vmatprep.subr.bf16.mxu0 %v13280_v33  ;;  %v4361_v36 = vsel %vm1405_vm10, %v14194_v31, %v14195_v30 }
 0x37c   :  { %v14198_v37 = vpop.permute.xlu0 %14197  ;;  %13283 = vmatpush3.bf16.msra.mxu0 %v13280_v33  ;;  %v4360_v39 = vsel %vm1405_vm10, %v14329_v35, %v14330_v34  ;;  %12583 = vmatprep.mubr.msk.f32.mxu1 %vm87_vm3, %v4255_v24  ;;  %v4817_v34 = vld [vmem:[#allocation3 + $0x198] sm:$0xff] }
 0x37d   :  { %v14200_v40 = vunpack.i.h.bf16 %v14198_v37  ;;  %v14199_v41 = vunpack.i.l.bf16 %v14198_v37  ;;  %v14333_v42 = vpop.permute.xlu1 %14332  ;;  %v13284_v43 = vpack.c.bf16 %v4361_v36, %v4360_v39 }
 0x37e   :  { %v14335_v45 = vunpack.i.h.bf16 %v14333_v42  ;;  %v14334_v46 = vunpack.i.l.bf16 %v14333_v42 }
 0x37f   :  { %12577 = vmatmul.mubr.msk.f32.vlgmr.msra.gmra.mrb[2].mxu0 %vm87_vm3, %v4256_v38  ;;  %13285 = vmatprep.subr.bf16.mxu1 %v13284_v43  ;;  %v4453_v47 = vsel %vm1593_vm11, %v14199_v41, %v14200_v40  ;;  %v5003_v40 = vld [vmem:[#allocation3 + $0x1a0] sm:$0xff] }
 0x380   :  { %v14203_v48 = vpop.permute.xlu0 %14202  ;;  %13287 = vmatpush3.bf16.msra.mxu1 %v13284_v43  ;;  %v4452_v49 = vsel %vm1593_vm11, %v14334_v46, %v14335_v45  ;;  %12590 = vmatprep.mubr.msk.f32.mxu0 %vm87_vm3, %v4442_v44 }
 0x381   :  { %v14205_v50 = vunpack.i.h.bf16 %v14203_v48  ;;  %v14204_v51 = vunpack.i.l.bf16 %v14203_v48  ;;  %v14338_v52 = vpop.permute.xlu1 %14337  ;;  %v13288_v53 = vpack.c.bf16 %v4453_v47, %v4452_v49 }
 0x382   :  { %v14340_v54 = vunpack.i.h.bf16 %v14338_v52  ;;  %v14339_v55 = vunpack.i.l.bf16 %v14338_v52 }
 0x383   :  { %12584 = vmatmul.mubr.msk.f32.vlgmr.msra.gmra.mrb[2].mxu1 %vm87_vm3, %v4256_v38  ;;  %13289 = vmatprep.subr.bf16.mxu0 %v13288_v53  ;;  %v4548_v56 = vsel %vm1593_vm11, %v14204_v51, %v14205_v50 }
 0x384   :  { %v14208_v57 = vpop.permute.xlu0 %14207  ;;  %13291 = vmatpush3.bf16.msra.mxu0 %v13288_v53  ;;  %v4547_v59 = vsel %vm1593_vm11, %v14339_v55, %v14340_v54  ;;  %12597 = vmatprep.mubr.msk.f32.mxu1 %vm87_vm3, %v4442_v44  ;;  %v5004_v54 = vld [vmem:[#allocation3 + $0x1a8] sm:$0xff] }
 0x385   :  { %v14210_v60 = vunpack.i.h.bf16 %v14208_v57  ;;  %v14209_v61 = vunpack.i.l.bf16 %v14208_v57  ;;  %v14343_v62 = vpop.permute.xlu1 %14342  ;;  %v13292_v63 = vpack.c.bf16 %v4548_v56, %v4547_v59 }
 0x386   :  { %v14345_v1 = vunpack.i.h.bf16 %v14343_v62  ;;  %v14344_v2 = vunpack.i.l.bf16 %v14343_v62 }
 0x387   :  { %12591 = vmatmul.mubr.msk.f32.vlgmr.msra.gmra.mrb[2].mxu0 %vm87_vm3, %v4443_v58  ;;  %13293 = vmatprep.subr.bf16.mxu1 %v13292_v63  ;;  %v4640_v3 = vsel %vm1781_vm12, %v14209_v61, %v14210_v60  ;;  %v5190_v60 = vld [vmem:[#allocation3 + $0x1b0] sm:$0xff] }
 0x388   :  { %v14213_v4 = vpop.permute.xlu0 %14212  ;;  %13295 = vmatpush3.bf16.msra.mxu1 %v13292_v63  ;;  %v4639_v5 = vsel %vm1781_vm12, %v14344_v2, %v14345_v1  ;;  %12604 = vmatprep.mubr.msk.f32.mxu0 %vm87_vm3, %v4629_v0 }
 0x389   :  { %v14215_v6 = vunpack.i.h.bf16 %v14213_v4  ;;  %v14214_v7 = vunpack.i.l.bf16 %v14213_v4  ;;  %v14348_v8 = vpop.permute.xlu1 %14347  ;;  %v13296_v9 = vpack.c.bf16 %v4640_v3, %v4639_v5 }
 0x38a   :  { %v14350_v10 = vunpack.i.h.bf16 %v14348_v8  ;;  %v14349_v11 = vunpack.i.l.bf16 %v14348_v8 }
 0x38b   :  { %12598 = vmatmul.mubr.msk.f32.vlgmr.msra.gmra.mrb[2].mxu1 %vm87_vm3, %v4443_v58  ;;  %13297 = vmatprep.subr.bf16.mxu0 %v13296_v9  ;;  %v4735_v12 = vsel %vm1781_vm12, %v14214_v7, %v14215_v6 }
 0x38c   :  { %v14218_v13 = vpop.permute.xlu0 %14217  ;;  %13299 = vmatpush3.bf16.msra.mxu0 %v13296_v9  ;;  %v4734_v15 = vsel %vm1781_vm12, %v14349_v11, %v14350_v10  ;;  %12611 = vmatprep.mubr.msk.f32.mxu1 %vm87_vm3, %v4629_v0  ;;  %v5191_v10 = vld [vmem:[#allocation3 + $0x1b8] sm:$0xff] }
 0x38d   :  { %v14220_v16 = vunpack.i.h.bf16 %v14218_v13  ;;  %v14219_v17 = vunpack.i.l.bf16 %v14218_v13  ;;  %v14353_v18 = vpop.permute.xlu1 %14352  ;;  %v13300_v19 = vpack.c.bf16 %v4735_v12, %v4734_v15 }
 0x38e   :  { %v14355_v21 = vunpack.i.h.bf16 %v14353_v18  ;;  %v14354_v22 = vunpack.i.l.bf16 %v14353_v18 }
 0x38f   :  { %12605 = vmatmul.mubr.msk.f32.vlgmr.msra.gmra.mrb[2].mxu0 %vm87_vm3, %v4630_v14  ;;  %13301 = vmatprep.subr.bf16.mxu1 %v13300_v19  ;;  %v4827_v23 = vsel %vm16083_vm13, %v14219_v17, %v14220_v16  ;;  %vm16087_vm13 = vcmask 957440   ;;  %v5377_v16 = vld [vmem:[#allocation3 + $0x1c0] sm:$0xff] }
 0x390   :  { %v14223_v24 = vpop.permute.xlu0 %14222  ;;  %13303 = vmatpush3.bf16.msra.mxu1 %v13300_v19  ;;  %v4826_v25 = vsel %vm16084_vm14, %v14354_v22, %v14355_v21  ;;  %12618 = vmatprep.mubr.msk.f32.mxu0 %vm87_vm3, %v4816_v20  ;;  %vm16088_vm14 = vmmov %vm16087_vm13 }
 0x391   :  { %v14225_v26 = vunpack.i.h.bf16 %v14223_v24  ;;  %v14224_v27 = vunpack.i.l.bf16 %v14223_v24  ;;  %v14358_v28 = vpop.permute.xlu1 %14357  ;;  %v13304_v29 = vpack.c.bf16 %v4827_v23, %v4826_v25 }
 0x392   :  { %v14360_v30 = vunpack.i.h.bf16 %v14358_v28  ;;  %v14359_v31 = vunpack.i.l.bf16 %v14358_v28 }
 0x393   :  { %12612 = vmatmul.mubr.msk.f32.vlgmr.msra.gmra.mrb[2].mxu1 %vm87_vm3, %v4630_v14  ;;  %13305 = vmatprep.subr.bf16.mxu0 %v13304_v29  ;;  %v4922_v32 = vsel %vm16085_vm15, %v14224_v27, %v14225_v26  ;;  %vm16089_vm15 = vmmov %vm16087_vm13 }
 0x394   :  { %v14228_v33 = vpop.permute.xlu0 %14227  ;;  %13307 = vmatpush3.bf16.msra.mxu0 %v13304_v29  ;;  %v4921_v35 = vsel %vm16086_vm1, %v14359_v31, %v14360_v30  ;;  %12625 = vmatprep.mubr.msk.f32.mxu1 %vm87_vm3, %v4816_v20  ;;  %vm16090_vm1 = vmmov %vm16087_vm13  ;;  %v5378_v30 = vld [vmem:[#allocation3 + $0x1c8] sm:$0xff] }
 0x395   :  { %v14230_v36 = vunpack.i.h.bf16 %v14228_v33  ;;  %v14229_v37 = vunpack.i.l.bf16 %v14228_v33  ;;  %v14363_v38 = vpop.permute.xlu1 %14362  ;;  %v13308_v39 = vpack.c.bf16 %v4922_v32, %v4921_v35 }
 0x396   :  { %v14365_v41 = vunpack.i.h.bf16 %v14363_v38  ;;  %v14364_v42 = vunpack.i.l.bf16 %v14363_v38 }
 0x397   :  { %12619 = vmatmul.mubr.msk.f32.vlgmr.msra.gmra.mrb[2].mxu0 %vm87_vm3, %v4817_v34  ;;  %13309 = vmatprep.subr.bf16.mxu1 %v13308_v39  ;;  %v5014_v43 = vsel %vm16087_vm13, %v14229_v37, %v14230_v36  ;;  %vm16091_vm13 = vcmask 949248   ;;  %v5564_v36 = vld [vmem:[#allocation3 + $0x1d0] sm:$0xff] }
 0x398   :  { %v14233_v44 = vpop.permute.xlu0 %14232  ;;  %13311 = vmatpush3.bf16.msra.mxu1 %v13308_v39  ;;  %v5013_v45 = vsel %vm16088_vm14, %v14364_v42, %v14365_v41  ;;  %12632 = vmatprep.mubr.msk.f32.mxu0 %vm87_vm3, %v5003_v40  ;;  %vm16092_vm14 = vmmov %vm16091_vm13 }
 0x399   :  { %v14235_v46 = vunpack.i.h.bf16 %v14233_v44  ;;  %v14234_v47 = vunpack.i.l.bf16 %v14233_v44  ;;  %v14368_v48 = vpop.permute.xlu1 %14367  ;;  %v13312_v49 = vpack.c.bf16 %v5014_v43, %v5013_v45 }
 0x39a   :  { %v14370_v50 = vunpack.i.h.bf16 %v14368_v48  ;;  %v14369_v51 = vunpack.i.l.bf16 %v14368_v48 }
 0x39b   :  { %12626 = vmatmul.mubr.msk.f32.vlgmr.msra.gmra.mrb[2].mxu1 %vm87_vm3, %v4817_v34  ;;  %13313 = vmatprep.subr.bf16.mxu0 %v13312_v49  ;;  %v5109_v52 = vsel %vm16089_vm15, %v14234_v47, %v14235_v46  ;;  %vm16093_vm15 = vmmov %vm16091_vm13 }
 0x39c   :  { %v14238_v53 = vpop.permute.xlu0 %14237  ;;  %13315 = vmatpush3.bf16.msra.mxu0 %v13312_v49  ;;  %v5108_v55 = vsel %vm16090_vm1, %v14369_v51, %v14370_v50  ;;  %12639 = vmatprep.mubr.msk.f32.mxu1 %vm87_vm3, %v5003_v40  ;;  %vm16094_vm1 = vmmov %vm16091_vm13  ;;  %v5565_v49 = vld [vmem:[#allocation3 + $0x1d8] sm:$0xff] }
 0x39d   :  { %v14240_v56 = vunpack.i.h.bf16 %v14238_v53  ;;  %v14239_v57 = vunpack.i.l.bf16 %v14238_v53  ;;  %v14373_v58 = vpop.permute.xlu1 %14372  ;;  %v13316_v59 = vpack.c.bf16 %v5109_v52, %v5108_v55 }
 0x39e   :  { %v14375_v61 = vunpack.i.h.bf16 %v14373_v58  ;;  %v14374_v62 = vunpack.i.l.bf16 %v14373_v58 }
 0x39f   :  { %12633 = vmatmul.mubr.msk.f32.vlgmr.msra.gmra.mrb[2].mxu0 %vm87_vm3, %v5004_v54  ;;  %13317 = vmatprep.subr.bf16.mxu1 %v13316_v59  ;;  %v5201_v63 = vsel %vm16091_vm13, %v14239_v57, %v14240_v56  ;;  %vm16095_vm13 = vcmask 941056  }
 0x3a0   :  { %v14243_v0 = vpop.permute.xlu0 %14242  ;;  %13319 = vmatpush3.bf16.msra.mxu1 %v13316_v59  ;;  %v5200_v1 = vsel %vm16092_vm14, %v14374_v62, %v14375_v61  ;;  %12646 = vmatprep.mubr.msk.f32.mxu0 %vm87_vm3, %v5190_v60  ;;  %vm16096_vm14 = vmmov %vm16095_vm13 }
 0x3a1   :  { %v14245_v2 = vunpack.i.h.bf16 %v14243_v0  ;;  %v14244_v3 = vunpack.i.l.bf16 %v14243_v0  ;;  %v14378_v4 = vpop.permute.xlu1 %14377  ;;  %v13320_v5 = vpack.c.bf16 %v5201_v63, %v5200_v1 }
 0x3a2   :  { %v14380_v6 = vunpack.i.h.bf16 %v14378_v4  ;;  %v14379_v7 = vunpack.i.l.bf16 %v14378_v4 }
 0x3a3   :  { %12640 = vmatmul.mubr.msk.f32.vlgmr.msra.gmra.mrb[2].mxu1 %vm87_vm3, %v5004_v54  ;;  %13321 = vmatprep.subr.bf16.mxu0 %v13320_v5  ;;  %v5296_v8 = vsel %vm16093_vm15, %v14244_v3, %v14245_v2  ;;  %vm16097_vm15 = vmmov %vm16095_vm13 }
 0x3a4   :  { %v14248_v9 = vpop.permute.xlu0 %14247  ;;  %13323 = vmatpush3.bf16.msra.mxu0 %v13320_v5  ;;  %v5295_v11 = vsel %vm16094_vm1, %v14379_v7, %v14380_v6  ;;  %12653 = vmatprep.mubr.msk.f32.mxu1 %vm87_vm3, %v5190_v60  ;;  %vm16098_vm1 = vmmov %vm16095_vm13  ;;  %v5802_v6 = vld [vmem:[#allocation3 + $0x1e0] sm:$0xff] }
 0x3a5   :  { %v14250_v12 = vunpack.i.h.bf16 %v14248_v9  ;;  %v14249_v13 = vunpack.i.l.bf16 %v14248_v9  ;;  %v14383_v14 = vpop.permute.xlu1 %14382  ;;  %v13324_v15 = vpack.c.bf16 %v5296_v8, %v5295_v11 }
 0x3a6   :  { %v14385_v17 = vunpack.i.h.bf16 %v14383_v14  ;;  %v14384_v18 = vunpack.i.l.bf16 %v14383_v14 }
 0x3a7   :  { %12647 = vmatmul.mubr.msk.f32.vlgmr.msra.gmra.mrb[2].mxu0 %vm87_vm3, %v5191_v10  ;;  %13325 = vmatprep.subr.bf16.mxu1 %v13324_v15  ;;  %v5388_v19 = vsel %vm16095_vm13, %v14249_v13, %v14250_v12  ;;  %vm16099_vm13 = vcmask 932864  }
 0x3a8   :  { %v14253_v20 = vpop.permute.xlu0 %14252  ;;  %13327 = vmatpush3.bf16.msra.mxu1 %v13324_v15  ;;  %v5387_v21 = vsel %vm16096_vm14, %v14384_v18, %v14385_v17  ;;  %12660 = vmatprep.mubr.msk.f32.mxu0 %vm87_vm3, %v5377_v16  ;;  %vm16100_vm14 = vmmov %vm16099_vm13 }
 0x3a9   :  { %v14255_v22 = vunpack.i.h.bf16 %v14253_v20  ;;  %v14254_v23 = vunpack.i.l.bf16 %v14253_v20  ;;  %v14388_v24 = vpop.permute.xlu1 %14387  ;;  %v13328_v25 = vpack.c.bf16 %v5388_v19, %v5387_v21 }
 0x3aa   :  { %v14390_v26 = vunpack.i.h.bf16 %v14388_v24  ;;  %v14389_v27 = vunpack.i.l.bf16 %v14388_v24 }
 0x3ab   :  { %12654 = vmatmul.mubr.msk.f32.vlgmr.msra.gmra.mrb[2].mxu1 %vm87_vm3, %v5191_v10  ;;  %13329 = vmatprep.subr.bf16.mxu0 %v13328_v25  ;;  %v5483_v28 = vsel %vm16097_vm15, %v14254_v23, %v14255_v22  ;;  %vm16101_vm15 = vmmov %vm16099_vm13 }
 0x3ac   :  { %v14258_v29 = vpop.permute.xlu0 %14257  ;;  %13331 = vmatpush3.bf16.msra.mxu0 %v13328_v25  ;;  %v5482_v31 = vsel %vm16098_vm1, %v14389_v27, %v14390_v26  ;;  %12667 = vmatprep.mubr.msk.f32.mxu1 %vm87_vm3, %v5377_v16  ;;  %vm16102_vm1 = vmmov %vm16099_vm13  ;;  %v5803_v25 = vld [vmem:[#allocation3 + $0x1e8] sm:$0xff]  ;;  %v5969_v26 = vld [vmem:[#allocation3 + $0x1f0] sm:$0xff] }
 0x3ad   :  { %v14260_v32 = vunpack.i.h.bf16 %v14258_v29  ;;  %v14259_v33 = vunpack.i.l.bf16 %v14258_v29  ;;  %v14393_v34 = vpop.permute.xlu1 %14392  ;;  %v13332_v35 = vpack.c.bf16 %v5483_v28, %v5482_v31  ;;  %v11643_v27 = vld [vmem:[%s16076_s2 + $0x28] sm:$0xff]  ;;  %v11642_v28 = vld [vmem:[%s16076_s2 + $0x20] sm:$0xff] }
 0x3ae   :  { %v14395_v37 = vunpack.i.h.bf16 %v14393_v34  ;;  %v14394_v38 = vunpack.i.l.bf16 %v14393_v34 }
 0x3af   :  { %12661 = vmatmul.mubr.msk.f32.vlgmr.msra.gmra.mrb[2].mxu0 %vm87_vm3, %v5378_v30  ;;  %13333 = vmatprep.subr.bf16.mxu1 %v13332_v35  ;;  %v5575_v39 = vsel %vm16099_vm13, %v14259_v33, %v14260_v32 }
 0x3b0   :  { %v14403_v40 = vpop.permute.xlu0 %14402  ;;  %13335 = vmatpush3.bf16.msra.mxu1 %v13332_v35  ;;  %v5574_v41 = vsel %vm16100_vm14, %v14394_v38, %v14395_v37  ;;  %12674 = vmatprep.mubr.msk.f32.mxu0 %vm87_vm3, %v5564_v36 }
 0x3b1   :  { %v14405_v42 = vunpack.i.h.bf16 %v14403_v40  ;;  %v14404_v43 = vunpack.i.l.bf16 %v14403_v40  ;;  %v14398_v44 = vpop.permute.xlu1 %14397  ;;  %v13336_v45 = vpack.c.bf16 %v5575_v39, %v5574_v41 }
 0x3b2   :  { %v14400_v46 = vunpack.i.h.bf16 %v14398_v44  ;;  %v14399_v47 = vunpack.i.l.bf16 %v14398_v44 }
 0x3b3   :  { %12668 = vmatmul.mubr.msk.f32.vlgmr.msra.gmra.mrb[2].mxu1 %vm87_vm3, %v5378_v30  ;;  %13337 = vmatprep.subr.bf16.mxu0 %v13336_v45  ;;  %v5670_v48 = vsel %vm16101_vm15, %v14404_v43, %v14405_v42 }
 0x3b4   :  { %13339 = vmatpush3.bf16.msra.mxu0 %v13336_v45  ;;  %v5669_v50 = vsel %vm16102_vm1, %v14399_v47, %v14400_v46  ;;  %12681 = vmatprep.mubr.msk.f32.mxu1 %vm87_vm3, %v5564_v36  ;;  %v5970_v46 = vld [vmem:[#allocation3 + $0x1f8] sm:$0xff] }
 0x3b5   :  { %v13340_v51 = vpack.c.bf16 %v5670_v48, %v5669_v50 }
 0x3b7   :  { %12675 = vmatmul.mubr.msk.f32.vlgmr.msra.gmra.mrb[2].mxu0 %vm87_vm3, %v5565_v49  ;;  %13341 = vmatprep.subr.bf16.mxu1 %v13340_v51 }
 0x3b8   :  { %13343 = vmatpush3.bf16.msra.mxu1 %v13340_v51  ;;  %12688 = vmatprep.mubr.msk.f32.mxu0 %vm87_vm3, %v5802_v6 }
 0x3bb   :  { %12682 = vmatmul.mubr.msk.f32.vlgmr.msra.gmra.mrb[2].mxu1 %vm87_vm3, %v5565_v49 }
 0x3bc   :  { %12695 = vmatprep.mubr.msk.f32.mxu1 %vm87_vm3, %v5802_v6 }
 0x3c1   :  { %v2945_v52 = vpop.permute.xlu0 %2944 }
 0x3c2   :  { %v2940_v54 = vpop.permute.xlu1 %2939 }
 0x48a   :  { %v12676_v53 = vpop.f32.mrb[2].mxu0 }
 0x48b   :  { %v13588_v55 = vadd.f32 %v12676_v53, %v2945_v52  ;;  %v5650_v56 = vpop.f32.mrb[3].mxu0 }
 0x48c   :  { %v13589_v57 = vadd.f32 %v5650_v56, %v2940_v54 }
 0x48d   :  { %vm5751_vm13 = vcmp.gt.f32.partialorder %v13588_v55, 0.0  ;;  %v5753_v58 = vmul.f32 0.2, %v13588_v55 }
 0x48e   :  { %vm5750_vm14 = vcmp.gt.f32.partialorder %v13589_v57, 0.0  ;;  %v5752_v59 = vmul.f32 0.2, %v13589_v57  ;;  %v12683_v60 = vpop.f32.mrb[2].mxu1 }
 0x48f   :  { %v13590_v61 = vadd.f32 %v12683_v60, %v2945_v52  ;;  %v5739_v62 = vpop.f32.mrb[3].mxu1  ;;  %v5755_v63 = vsel %vm5751_vm13, %v13588_v55, %v5753_v58  ;;  %v6172_v52 = vld [vmem:[#allocation3 + $0x200] sm:$0xff]  ;;  %vm16103_vm13 = vcmask 965632  }
 0x490   :  { %v13591_v0 = vadd.f32 %v5739_v62, %v2940_v54  ;;  %5766 = vrot.lane.b32.xlu0 %v5755_v63, %s15014_s29  ;;  %v5754_v1 = vsel %vm5750_vm14, %v13589_v57, %v5752_v59  ;;  %vm16104_vm14 = vmmov %vm16103_vm13 }
 0x491   :  { %vm5757_vm15 = vcmp.gt.f32.partialorder %v13590_v61, 0.0  ;;  %v5759_v2 = vmul.f32 0.2, %v13590_v61  ;;  %5764 = vrot.lane.b32.xlu1 %v5754_v1, %s15014_s29 }
 0x492   :  { %vm5756_vm1 = vcmp.gt.f32.partialorder %v13591_v0, 0.0  ;;  %v5758_v3 = vmul.f32 0.2, %v13591_v0 }
 0x493   :  { %v5761_v4 = vsel %vm5757_vm15, %v13590_v61, %v5759_v2  ;;  %v6173_v2 = vld [vmem:[#allocation3 + $0x208] sm:$0xff]  ;;  %vm16105_vm15 = vmmov %vm16103_vm13 }
 0x494   :  { %5778 = vrot.lane.b32.xlu0 %v5761_v4, %s15014_s29  ;;  %v5760_v5 = vsel %vm5756_vm1, %v13591_v0, %v5758_v3  ;;  %vm16106_vm1 = vmmov %vm16103_vm13 }
 0x495   :  { %5776 = vrot.lane.b32.xlu1 %v5760_v5, %s15014_s29 }
 0x502   :  { %v5767_v7 = vpop.permute.xlu0 %5766 }
 0x503   :  { %5772 = vst.msk [vmem:[#allocation2 + $0x10] sm:$0xff] %vm52_vm2, %v5767_v7  ;;  %v5765_v8 = vpop.permute.xlu1 %5764 }
 0x504   :  { %5773 = vst.msk [vmem:[#allocation2 + $0x18] sm:$0xff] %vm28_vm0, %v5767_v7  ;;  %5771 = vst.msk [vmem:[#allocation2 + $0x8] sm:$0xff] %vm28_vm0, %v5765_v8 }
 0x505   :  { %5770 = vst.msk [vmem:[#allocation2] sm:$0xff] %vm52_vm2, %v5765_v8  ;;  %v6359_v8 = vld [vmem:[#allocation3 + $0x210] sm:$0xff] }
 0x506   :  { %v5779_v9 = vpop.permute.xlu0 %5778 }
 0x507   :  { %5784 = vst.msk [vmem:[#allocation2 + $0x30] sm:$0xff] %vm52_vm2, %v5779_v9  ;;  %v5777_v10 = vpop.permute.xlu1 %5776 }
 0x508   :  { %5785 = vst.msk [vmem:[#allocation2 + $0x38] sm:$0xff] %vm28_vm0, %v5779_v9  ;;  %5783 = vst.msk [vmem:[#allocation2 + $0x28] sm:$0xff] %vm28_vm0, %v5777_v10 }
 0x509   :  { %5782 = vst.msk [vmem:[#allocation2 + $0x20] sm:$0xff] %vm52_vm2, %v5777_v10 }
 0x50a   :  { %v5973_v11 = vld [vmem:[#allocation2 + $0x10] sm:$0xff] }
 0x50b   :  { %v5974_v12 = vld [vmem:[#allocation2 + $0x18] sm:$0xff]  ;;  %v5972_v14 = vld [vmem:[#allocation2 + $0x8] sm:$0xff] }
 0x50c   :  { %v5971_v13 = vld [vmem:[#allocation2] sm:$0xff]  ;;  %v15568_v15 = vpack.i.bf16 %v5974_v12, %v5973_v11 }
 0x50d   :  { %v15570_v16 = vpack.i.bf16 %v5972_v14, %v5971_v13  ;;  %v13344_v17 = vpack.c.bf16 %v5973_v11, %v5971_v13 }
 0x50e   :  { %14407 = vrot.lane.b32.xlu0 %v15568_v15, %s15015_s7  ;;  %v6076_v18 = vld [vmem:[#allocation2 + $0x30] sm:$0xff] }
 0x50f   :  { %v6077_v19 = vld [vmem:[#allocation2 + $0x38] sm:$0xff]  ;;  %14542 = vrot.lane.b32.xlu1 %v15570_v16, %s15015_s7  ;;  %13345 = vmatprep.subr.bf16.mxu0 %v13344_v17  ;;  %v6075_v21 = vld [vmem:[#allocation2 + $0x28] sm:$0xff] }
 0x510   :  { %v6074_v20 = vld [vmem:[#allocation2 + $0x20] sm:$0xff]  ;;  %13347 = vmatpush3.bf16.msra.mxu0 %v13344_v17  ;;  %v14411_v22 = vpack.i.bf16 %v6077_v19, %v6076_v18 }
 0x511   :  { %v14546_v23 = vpack.i.bf16 %v6075_v21, %v6074_v20  ;;  %v13348_v24 = vpack.c.bf16 %v6076_v18, %v6074_v20 }
 0x512   :  { %14412 = vrot.lane.b32.xlu0 %v14411_v22, %s15015_s7 }
 0x513   :  { %14547 = vrot.lane.b32.xlu1 %v14546_v23, %s15015_s7  ;;  %13349 = vmatprep.subr.bf16.mxu1 %v13348_v24 }
 0x514   :  { %13351 = vmatpush3.bf16.msra.mxu1 %v13348_v24  ;;  %12689 = vmatmul.mubr.msk.f32.vlgmr.msra.gmra.mrb[4].mxu0 %vm87_vm3, %v5803_v25 }
 0x515   :  { %12702 = vmatprep.mubr.msk.f32.mxu0 %vm87_vm3, %v5969_v26 }
 0x516   :  { %14417 = vrot.lane.b32.xlu0 %v15568_v15, %s15016_s8 }
 0x517   :  { %14552 = vrot.lane.b32.xlu1 %v15570_v16, %s15016_s8  ;;  %12696 = vmatmul.mubr.msk.f32.vlgmr.msra.gmra.mrb[4].mxu1 %vm87_vm3, %v5803_v25 }
 0x518   :  { %12709 = vmatprep.mubr.msk.f32.mxu1 %vm87_vm3, %v5969_v26 }
 0x51a   :  { %14422 = vrot.lane.b32.xlu0 %v14411_v22, %s15016_s8 }
 0x51b   :  { %14557 = vrot.lane.b32.xlu1 %v14546_v23, %s15016_s8 }
 0x51e   :  { %14427 = vrot.lane.b32.xlu0 %v15568_v15, %s15017_s9 }
 0x51f   :  { %14562 = vrot.lane.b32.xlu1 %v15570_v16, %s15017_s9 }
 0x522   :  { %14432 = vrot.lane.b32.xlu0 %v14411_v22, %s15017_s9 }
 0x523   :  { %14567 = vrot.lane.b32.xlu1 %v14546_v23, %s15017_s9 }
 0x526   :  { %14437 = vrot.lane.b32.xlu0 %v15568_v15, %s15018_s10 }
 0x527   :  { %14572 = vrot.lane.b32.xlu1 %v15570_v16, %s15018_s10 }
 0x52a   :  { %14442 = vrot.lane.b32.xlu0 %v14411_v22, %s15018_s10 }
 0x52b   :  { %14577 = vrot.lane.b32.xlu1 %v14546_v23, %s15018_s10 }
 0x52e   :  { %14447 = vrot.lane.b32.xlu0 %v15568_v15, %s15019_s11 }
 0x52f   :  { %14582 = vrot.lane.b32.xlu1 %v15570_v16, %s15019_s11 }
 0x532   :  { %14452 = vrot.lane.b32.xlu0 %v14411_v22, %s15019_s11 }
 0x533   :  { %14587 = vrot.lane.b32.xlu1 %v14546_v23, %s15019_s11 }
 0x536   :  { %14457 = vrot.lane.b32.xlu0 %v15568_v15, %s15020_s12 }
 0x537   :  { %14592 = vrot.lane.b32.xlu1 %v15570_v16, %s15020_s12 }
 0x53a   :  { %14462 = vrot.lane.b32.xlu0 %v14411_v22, %s15020_s12 }
 0x53b   :  { %14597 = vrot.lane.b32.xlu1 %v14546_v23, %s15020_s12 }
 0x53e   :  { %14467 = vrot.lane.b32.xlu0 %v15568_v15, %s15021_s13 }
 0x53f   :  { %14602 = vrot.lane.b32.xlu1 %v15570_v16, %s15021_s13 }
 0x542   :  { %14472 = vrot.lane.b32.xlu0 %v14411_v22, %s15021_s13 }
 0x543   :  { %14607 = vrot.lane.b32.xlu1 %v14546_v23, %s15021_s13 }
 0x546   :  { %14477 = vrot.lane.b32.xlu0 %v15568_v15, %s15022_s14 }
 0x547   :  { %14612 = vrot.lane.b32.xlu1 %v15570_v16, %s15022_s14 }
 0x54a   :  { %14482 = vrot.lane.b32.xlu0 %v14411_v22, %s15022_s14 }
 0x54b   :  { %14617 = vrot.lane.b32.xlu1 %v14546_v23, %s15022_s14 }
 0x54e   :  { %14487 = vrot.lane.b32.xlu0 %v15568_v15, %s15023_s15 }
 0x54f   :  { %14622 = vrot.lane.b32.xlu1 %v15570_v16, %s15023_s15 }
 0x552   :  { %14492 = vrot.lane.b32.xlu0 %v14411_v22, %s15023_s15 }
 0x553   :  { %14627 = vrot.lane.b32.xlu1 %v14546_v23, %s15023_s15 }
 0x556   :  { %14497 = vrot.lane.b32.xlu0 %v15568_v15, %s15024_s16 }
 0x557   :  { %14632 = vrot.lane.b32.xlu1 %v15570_v16, %s15024_s16 }
 0x55a   :  { %14502 = vrot.lane.b32.xlu0 %v14411_v22, %s15024_s16 }
 0x55b   :  { %14637 = vrot.lane.b32.xlu1 %v14546_v23, %s15024_s16 }
 0x55e   :  { %14507 = vrot.lane.b32.xlu0 %v15568_v15, %s15025_s17 }
 0x55f   :  { %14642 = vrot.lane.b32.xlu1 %v15570_v16, %s15025_s17 }
 0x562   :  { %14512 = vrot.lane.b32.xlu0 %v14411_v22, %s15025_s17 }
 0x563   :  { %14647 = vrot.lane.b32.xlu1 %v14546_v23, %s15025_s17 }
 0x566   :  { %14517 = vrot.lane.b32.xlu0 %v15568_v15, %s15026_s18 }
 0x567   :  { %14652 = vrot.lane.b32.xlu1 %v15570_v16, %s15026_s18 }
 0x56a   :  { %14522 = vrot.lane.b32.xlu0 %v14411_v22, %s15026_s18 }
 0x56b   :  { %14657 = vrot.lane.b32.xlu1 %v14546_v23, %s15026_s18 }
 0x56e   :  { %14527 = vrot.lane.b32.xlu0 %v15568_v15, %s15027_s19 }
 0x56f   :  { %14662 = vrot.lane.b32.xlu1 %v15570_v16, %s15027_s19 }
 0x572   :  { %14532 = vrot.lane.b32.xlu0 %v14411_v22, %s15027_s19 }
 0x573   :  { %14667 = vrot.lane.b32.xlu1 %v14546_v23, %s15027_s19 }
 0x576   :  { %14537 = vrot.lane.b32.xlu0 %v15568_v15, %s15028_s20 }
 0x577   :  { %14672 = vrot.lane.b32.xlu1 %v15570_v16, %s15028_s20 }
 0x57a   :  { %14682 = vrot.lane.b32.xlu0 %v14411_v22, %s15028_s20  ;;  %v6360_v22 = vld [vmem:[#allocation3 + $0x218] sm:$0xff] }
 0x57b   :  { %14677 = vrot.lane.b32.xlu1 %v14546_v23, %s15028_s20 }
 0x57e   :  { %5796 = vperm.xlu0 %14124, %v11643_v27  }
 0x57f   :  { %5791 = vperm.xlu1 %14125, %v11642_v28   ;;  %v6546_v28 = vld [vmem:[#allocation3 + $0x220] sm:$0xff] }
 0x580   :  { %v14408_v29 = vpop.permute.xlu0 %14407 }
 0x581   :  { %v14410_v30 = vunpack.i.h.bf16 %v14408_v29  ;;  %v14409_v31 = vunpack.i.l.bf16 %v14408_v29  ;;  %v14543_v32 = vpop.permute.xlu1 %14542 }
 0x582   :  { %v14545_v33 = vunpack.i.h.bf16 %v14543_v32  ;;  %v14544_v34 = vunpack.i.l.bf16 %v14543_v32 }
 0x583   :  { %v5988_v35 = vsel %vm269_vm4, %v14409_v31, %v14410_v30 }
 0x584   :  { %v14413_v36 = vpop.permute.xlu0 %14412  ;;  %v5987_v37 = vsel %vm269_vm4, %v14544_v34, %v14545_v33 }
 0x585   :  { %v14415_v38 = vunpack.i.h.bf16 %v14413_v36  ;;  %v14414_v39 = vunpack.i.l.bf16 %v14413_v36  ;;  %v14548_v40 = vpop.permute.xlu1 %14547  ;;  %v13352_v41 = vpack.c.bf16 %v5988_v35, %v5987_v37 }
 0x586   :  { %v14550_v42 = vunpack.i.h.bf16 %v14548_v40  ;;  %v14549_v43 = vunpack.i.l.bf16 %v14548_v40 }
 0x587   :  { %13353 = vmatprep.subr.bf16.mxu0 %v13352_v41  ;;  %v6091_v44 = vsel %vm269_vm4, %v14414_v39, %v14415_v38 }
 0x588   :  { %v14418_v45 = vpop.permute.xlu0 %14417  ;;  %13355 = vmatpush3.bf16.msra.mxu0 %v13352_v41  ;;  %v6090_v47 = vsel %vm269_vm4, %v14549_v43, %v14550_v42  ;;  %v6547_v42 = vld [vmem:[#allocation3 + $0x228] sm:$0xff] }
 0x589   :  { %v14420_v48 = vunpack.i.h.bf16 %v14418_v45  ;;  %v14419_v49 = vunpack.i.l.bf16 %v14418_v45  ;;  %v14553_v50 = vpop.permute.xlu1 %14552  ;;  %v13356_v51 = vpack.c.bf16 %v6091_v44, %v6090_v47 }
 0x58a   :  { %v14555_v53 = vunpack.i.h.bf16 %v14553_v50  ;;  %v14554_v54 = vunpack.i.l.bf16 %v14553_v50 }
 0x58b   :  { %12703 = vmatmul.mubr.msk.f32.vlgmr.msra.gmra.mrb[4].mxu0 %vm87_vm3, %v5970_v46  ;;  %13357 = vmatprep.subr.bf16.mxu1 %v13356_v51  ;;  %v6183_v55 = vsel %vm465_vm5, %v14419_v49, %v14420_v48  ;;  %v6733_v48 = vld [vmem:[#allocation3 + $0x230] sm:$0xff] }
 0x58c   :  { %v14423_v56 = vpop.permute.xlu0 %14422  ;;  %13359 = vmatpush3.bf16.msra.mxu1 %v13356_v51  ;;  %v6182_v57 = vsel %vm465_vm5, %v14554_v54, %v14555_v53  ;;  %12716 = vmatprep.mubr.msk.f32.mxu0 %vm87_vm3, %v6172_v52 }
 0x58d   :  { %v14425_v58 = vunpack.i.h.bf16 %v14423_v56  ;;  %v14424_v59 = vunpack.i.l.bf16 %v14423_v56  ;;  %v14558_v60 = vpop.permute.xlu1 %14557  ;;  %v13360_v61 = vpack.c.bf16 %v6183_v55, %v6182_v57 }
 0x58e   :  { %v14560_v62 = vunpack.i.h.bf16 %v14558_v60  ;;  %v14559_v63 = vunpack.i.l.bf16 %v14558_v60 }
 0x58f   :  { %12710 = vmatmul.mubr.msk.f32.vlgmr.msra.gmra.mrb[4].mxu1 %vm87_vm3, %v5970_v46  ;;  %13361 = vmatprep.subr.bf16.mxu0 %v13360_v61  ;;  %v6278_v0 = vsel %vm465_vm5, %v14424_v59, %v14425_v58 }
 0x590   :  { %v14428_v1 = vpop.permute.xlu0 %14427  ;;  %13363 = vmatpush3.bf16.msra.mxu0 %v13360_v61  ;;  %v6277_v3 = vsel %vm465_vm5, %v14559_v63, %v14560_v62  ;;  %12723 = vmatprep.mubr.msk.f32.mxu1 %vm87_vm3, %v6172_v52  ;;  %v6734_v62 = vld [vmem:[#allocation3 + $0x238] sm:$0xff] }
 0x591   :  { %v14430_v4 = vunpack.i.h.bf16 %v14428_v1  ;;  %v14429_v5 = vunpack.i.l.bf16 %v14428_v1  ;;  %v14563_v6 = vpop.permute.xlu1 %14562  ;;  %v13364_v7 = vpack.c.bf16 %v6278_v0, %v6277_v3 }
 0x592   :  { %v14565_v9 = vunpack.i.h.bf16 %v14563_v6  ;;  %v14564_v10 = vunpack.i.l.bf16 %v14563_v6 }
 0x593   :  { %12717 = vmatmul.mubr.msk.f32.vlgmr.msra.gmra.mrb[4].mxu0 %vm87_vm3, %v6173_v2  ;;  %13365 = vmatprep.subr.bf16.mxu1 %v13364_v7  ;;  %v6370_v11 = vsel %vm653_vm6, %v14429_v5, %v14430_v4  ;;  %v6920_v4 = vld [vmem:[#allocation3 + $0x240] sm:$0xff] }
 0x594   :  { %v14433_v12 = vpop.permute.xlu0 %14432  ;;  %13367 = vmatpush3.bf16.msra.mxu1 %v13364_v7  ;;  %v6369_v13 = vsel %vm653_vm6, %v14564_v10, %v14565_v9  ;;  %12730 = vmatprep.mubr.msk.f32.mxu0 %vm87_vm3, %v6359_v8 }
 0x595   :  { %v14435_v14 = vunpack.i.h.bf16 %v14433_v12  ;;  %v14434_v15 = vunpack.i.l.bf16 %v14433_v12  ;;  %v14568_v16 = vpop.permute.xlu1 %14567  ;;  %v13368_v17 = vpack.c.bf16 %v6370_v11, %v6369_v13 }
 0x596   :  { %v14570_v18 = vunpack.i.h.bf16 %v14568_v16  ;;  %v14569_v19 = vunpack.i.l.bf16 %v14568_v16 }
 0x597   :  { %12724 = vmatmul.mubr.msk.f32.vlgmr.msra.gmra.mrb[4].mxu1 %vm87_vm3, %v6173_v2  ;;  %13369 = vmatprep.subr.bf16.mxu0 %v13368_v17  ;;  %v6465_v20 = vsel %vm653_vm6, %v14434_v15, %v14435_v14 }
 0x598   :  { %v14438_v21 = vpop.permute.xlu0 %14437  ;;  %13371 = vmatpush3.bf16.msra.mxu0 %v13368_v17  ;;  %v6464_v23 = vsel %vm653_vm6, %v14569_v19, %v14570_v18  ;;  %12737 = vmatprep.mubr.msk.f32.mxu1 %vm87_vm3, %v6359_v8  ;;  %v6921_v18 = vld [vmem:[#allocation3 + $0x248] sm:$0xff] }
 0x599   :  { %v14440_v24 = vunpack.i.h.bf16 %v14438_v21  ;;  %v14439_v25 = vunpack.i.l.bf16 %v14438_v21  ;;  %v14573_v26 = vpop.permute.xlu1 %14572  ;;  %v13372_v27 = vpack.c.bf16 %v6465_v20, %v6464_v23 }
 0x59a   :  { %v14575_v29 = vunpack.i.h.bf16 %v14573_v26  ;;  %v14574_v30 = vunpack.i.l.bf16 %v14573_v26 }
 0x59b   :  { %12731 = vmatmul.mubr.msk.f32.vlgmr.msra.gmra.mrb[4].mxu0 %vm87_vm3, %v6360_v22  ;;  %13373 = vmatprep.subr.bf16.mxu1 %v13372_v27  ;;  %v6557_v31 = vsel %vm841_vm7, %v14439_v25, %v14440_v24  ;;  %v7107_v24 = vld [vmem:[#allocation3 + $0x250] sm:$0xff] }
 0x59c   :  { %v14443_v32 = vpop.permute.xlu0 %14442  ;;  %13375 = vmatpush3.bf16.msra.mxu1 %v13372_v27  ;;  %v6556_v33 = vsel %vm841_vm7, %v14574_v30, %v14575_v29  ;;  %12744 = vmatprep.mubr.msk.f32.mxu0 %vm87_vm3, %v6546_v28 }
 0x59d   :  { %v14445_v34 = vunpack.i.h.bf16 %v14443_v32  ;;  %v14444_v35 = vunpack.i.l.bf16 %v14443_v32  ;;  %v14578_v36 = vpop.permute.xlu1 %14577  ;;  %v13376_v37 = vpack.c.bf16 %v6557_v31, %v6556_v33 }
 0x59e   :  { %v14580_v38 = vunpack.i.h.bf16 %v14578_v36  ;;  %v14579_v39 = vunpack.i.l.bf16 %v14578_v36 }
 0x59f   :  { %12738 = vmatmul.mubr.msk.f32.vlgmr.msra.gmra.mrb[4].mxu1 %vm87_vm3, %v6360_v22  ;;  %13377 = vmatprep.subr.bf16.mxu0 %v13376_v37  ;;  %v6652_v40 = vsel %vm841_vm7, %v14444_v35, %v14445_v34 }
 0x5a0   :  { %v14448_v41 = vpop.permute.xlu0 %14447  ;;  %13379 = vmatpush3.bf16.msra.mxu0 %v13376_v37  ;;  %v6651_v43 = vsel %vm841_vm7, %v14579_v39, %v14580_v38  ;;  %12751 = vmatprep.mubr.msk.f32.mxu1 %vm87_vm3, %v6546_v28  ;;  %v7108_v38 = vld [vmem:[#allocation3 + $0x258] sm:$0xff] }
 0x5a1   :  { %v14450_v44 = vunpack.i.h.bf16 %v14448_v41  ;;  %v14449_v45 = vunpack.i.l.bf16 %v14448_v41  ;;  %v14583_v46 = vpop.permute.xlu1 %14582  ;;  %v13380_v47 = vpack.c.bf16 %v6652_v40, %v6651_v43 }
 0x5a2   :  { %v14585_v49 = vunpack.i.h.bf16 %v14583_v46  ;;  %v14584_v50 = vunpack.i.l.bf16 %v14583_v46 }
 0x5a3   :  { %12745 = vmatmul.mubr.msk.f32.vlgmr.msra.gmra.mrb[4].mxu0 %vm87_vm3, %v6547_v42  ;;  %13381 = vmatprep.subr.bf16.mxu1 %v13380_v47  ;;  %v6744_v51 = vsel %vm1029_vm8, %v14449_v45, %v14450_v44  ;;  %v7294_v44 = vld [vmem:[#allocation3 + $0x260] sm:$0xff] }
 0x5a4   :  { %v14453_v52 = vpop.permute.xlu0 %14452  ;;  %13383 = vmatpush3.bf16.msra.mxu1 %v13380_v47  ;;  %v6743_v53 = vsel %vm1029_vm8, %v14584_v50, %v14585_v49  ;;  %12758 = vmatprep.mubr.msk.f32.mxu0 %vm87_vm3, %v6733_v48 }
 0x5a5   :  { %v14455_v54 = vunpack.i.h.bf16 %v14453_v52  ;;  %v14454_v55 = vunpack.i.l.bf16 %v14453_v52  ;;  %v14588_v56 = vpop.permute.xlu1 %14587  ;;  %v13384_v57 = vpack.c.bf16 %v6744_v51, %v6743_v53 }
 0x5a6   :  { %v14590_v58 = vunpack.i.h.bf16 %v14588_v56  ;;  %v14589_v59 = vunpack.i.l.bf16 %v14588_v56 }
 0x5a7   :  { %12752 = vmatmul.mubr.msk.f32.vlgmr.msra.gmra.mrb[4].mxu1 %vm87_vm3, %v6547_v42  ;;  %13385 = vmatprep.subr.bf16.mxu0 %v13384_v57  ;;  %v6839_v60 = vsel %vm1029_vm8, %v14454_v55, %v14455_v54 }
 0x5a8   :  { %v14458_v61 = vpop.permute.xlu0 %14457  ;;  %13387 = vmatpush3.bf16.msra.mxu0 %v13384_v57  ;;  %v6838_v63 = vsel %vm1029_vm8, %v14589_v59, %v14590_v58  ;;  %12765 = vmatprep.mubr.msk.f32.mxu1 %vm87_vm3, %v6733_v48  ;;  %v7295_v58 = vld [vmem:[#allocation3 + $0x268] sm:$0xff] }
 0x5a9   :  { %v14460_v0 = vunpack.i.h.bf16 %v14458_v61  ;;  %v14459_v1 = vunpack.i.l.bf16 %v14458_v61  ;;  %v14593_v2 = vpop.permute.xlu1 %14592  ;;  %v13388_v3 = vpack.c.bf16 %v6839_v60, %v6838_v63 }
 0x5aa   :  { %v14595_v5 = vunpack.i.h.bf16 %v14593_v2  ;;  %v14594_v6 = vunpack.i.l.bf16 %v14593_v2 }
 0x5ab   :  { %12759 = vmatmul.mubr.msk.f32.vlgmr.msra.gmra.mrb[4].mxu0 %vm87_vm3, %v6734_v62  ;;  %13389 = vmatprep.subr.bf16.mxu1 %v13388_v3  ;;  %v6931_v7 = vsel %vm1217_vm9, %v14459_v1, %v14460_v0  ;;  %v7481_v0 = vld [vmem:[#allocation3 + $0x270] sm:$0xff] }
 0x5ac   :  { %v14463_v8 = vpop.permute.xlu0 %14462  ;;  %13391 = vmatpush3.bf16.msra.mxu1 %v13388_v3  ;;  %v6930_v9 = vsel %vm1217_vm9, %v14594_v6, %v14595_v5  ;;  %12772 = vmatprep.mubr.msk.f32.mxu0 %vm87_vm3, %v6920_v4 }
 0x5ad   :  { %v14465_v10 = vunpack.i.h.bf16 %v14463_v8  ;;  %v14464_v11 = vunpack.i.l.bf16 %v14463_v8  ;;  %v14598_v12 = vpop.permute.xlu1 %14597  ;;  %v13392_v13 = vpack.c.bf16 %v6931_v7, %v6930_v9 }
 0x5ae   :  { %v14600_v14 = vunpack.i.h.bf16 %v14598_v12  ;;  %v14599_v15 = vunpack.i.l.bf16 %v14598_v12 }
 0x5af   :  { %12766 = vmatmul.mubr.msk.f32.vlgmr.msra.gmra.mrb[4].mxu1 %vm87_vm3, %v6734_v62  ;;  %13393 = vmatprep.subr.bf16.mxu0 %v13392_v13  ;;  %v7026_v16 = vsel %vm1217_vm9, %v14464_v11, %v14465_v10 }
 0x5b0   :  { %v14468_v17 = vpop.permute.xlu0 %14467  ;;  %13395 = vmatpush3.bf16.msra.mxu0 %v13392_v13  ;;  %v7025_v19 = vsel %vm1217_vm9, %v14599_v15, %v14600_v14  ;;  %12779 = vmatprep.mubr.msk.f32.mxu1 %vm87_vm3, %v6920_v4  ;;  %v7482_v14 = vld [vmem:[#allocation3 + $0x278] sm:$0xff] }
 0x5b1   :  { %v14470_v20 = vunpack.i.h.bf16 %v14468_v17  ;;  %v14469_v21 = vunpack.i.l.bf16 %v14468_v17  ;;  %v14603_v22 = vpop.permute.xlu1 %14602  ;;  %v13396_v23 = vpack.c.bf16 %v7026_v16, %v7025_v19 }
 0x5b2   :  { %v14605_v25 = vunpack.i.h.bf16 %v14603_v22  ;;  %v14604_v26 = vunpack.i.l.bf16 %v14603_v22 }
 0x5b3   :  { %12773 = vmatmul.mubr.msk.f32.vlgmr.msra.gmra.mrb[4].mxu0 %vm87_vm3, %v6921_v18  ;;  %13397 = vmatprep.subr.bf16.mxu1 %v13396_v23  ;;  %v7118_v27 = vsel %vm1405_vm10, %v14469_v21, %v14470_v20  ;;  %v7668_v20 = vld [vmem:[#allocation3 + $0x280] sm:$0xff] }
 0x5b4   :  { %v14473_v28 = vpop.permute.xlu0 %14472  ;;  %13399 = vmatpush3.bf16.msra.mxu1 %v13396_v23  ;;  %v7117_v29 = vsel %vm1405_vm10, %v14604_v26, %v14605_v25  ;;  %12786 = vmatprep.mubr.msk.f32.mxu0 %vm87_vm3, %v7107_v24 }
 0x5b5   :  { %v14475_v30 = vunpack.i.h.bf16 %v14473_v28  ;;  %v14474_v31 = vunpack.i.l.bf16 %v14473_v28  ;;  %v14608_v32 = vpop.permute.xlu1 %14607  ;;  %v13400_v33 = vpack.c.bf16 %v7118_v27, %v7117_v29 }
 0x5b6   :  { %v14610_v34 = vunpack.i.h.bf16 %v14608_v32  ;;  %v14609_v35 = vunpack.i.l.bf16 %v14608_v32 }
 0x5b7   :  { %12780 = vmatmul.mubr.msk.f32.vlgmr.msra.gmra.mrb[4].mxu1 %vm87_vm3, %v6921_v18  ;;  %13401 = vmatprep.subr.bf16.mxu0 %v13400_v33  ;;  %v7213_v36 = vsel %vm1405_vm10, %v14474_v31, %v14475_v30 }
 0x5b8   :  { %v14478_v37 = vpop.permute.xlu0 %14477  ;;  %13403 = vmatpush3.bf16.msra.mxu0 %v13400_v33  ;;  %v7212_v39 = vsel %vm1405_vm10, %v14609_v35, %v14610_v34  ;;  %12793 = vmatprep.mubr.msk.f32.mxu1 %vm87_vm3, %v7107_v24  ;;  %v7669_v34 = vld [vmem:[#allocation3 + $0x288] sm:$0xff] }
 0x5b9   :  { %v14480_v40 = vunpack.i.h.bf16 %v14478_v37  ;;  %v14479_v41 = vunpack.i.l.bf16 %v14478_v37  ;;  %v14613_v42 = vpop.permute.xlu1 %14612  ;;  %v13404_v43 = vpack.c.bf16 %v7213_v36, %v7212_v39 }
 0x5ba   :  { %v14615_v45 = vunpack.i.h.bf16 %v14613_v42  ;;  %v14614_v46 = vunpack.i.l.bf16 %v14613_v42 }
 0x5bb   :  { %12787 = vmatmul.mubr.msk.f32.vlgmr.msra.gmra.mrb[4].mxu0 %vm87_vm3, %v7108_v38  ;;  %13405 = vmatprep.subr.bf16.mxu1 %v13404_v43  ;;  %v7305_v47 = vsel %vm1593_vm11, %v14479_v41, %v14480_v40  ;;  %v7855_v40 = vld [vmem:[#allocation3 + $0x290] sm:$0xff] }
 0x5bc   :  { %v14483_v48 = vpop.permute.xlu0 %14482  ;;  %13407 = vmatpush3.bf16.msra.mxu1 %v13404_v43  ;;  %v7304_v49 = vsel %vm1593_vm11, %v14614_v46, %v14615_v45  ;;  %12800 = vmatprep.mubr.msk.f32.mxu0 %vm87_vm3, %v7294_v44 }
 0x5bd   :  { %v14485_v50 = vunpack.i.h.bf16 %v14483_v48  ;;  %v14484_v51 = vunpack.i.l.bf16 %v14483_v48  ;;  %v14618_v52 = vpop.permute.xlu1 %14617  ;;  %v13408_v53 = vpack.c.bf16 %v7305_v47, %v7304_v49 }
 0x5be   :  { %v14620_v54 = vunpack.i.h.bf16 %v14618_v52  ;;  %v14619_v55 = vunpack.i.l.bf16 %v14618_v52 }
 0x5bf   :  { %12794 = vmatmul.mubr.msk.f32.vlgmr.msra.gmra.mrb[4].mxu1 %vm87_vm3, %v7108_v38  ;;  %13409 = vmatprep.subr.bf16.mxu0 %v13408_v53  ;;  %v7400_v56 = vsel %vm1593_vm11, %v14484_v51, %v14485_v50 }
 0x5c0   :  { %v14488_v57 = vpop.permute.xlu0 %14487  ;;  %13411 = vmatpush3.bf16.msra.mxu0 %v13408_v53  ;;  %v7399_v59 = vsel %vm1593_vm11, %v14619_v55, %v14620_v54  ;;  %12807 = vmatprep.mubr.msk.f32.mxu1 %vm87_vm3, %v7294_v44  ;;  %v7856_v54 = vld [vmem:[#allocation3 + $0x298] sm:$0xff] }
 0x5c1   :  { %v14490_v60 = vunpack.i.h.bf16 %v14488_v57  ;;  %v14489_v61 = vunpack.i.l.bf16 %v14488_v57  ;;  %v14623_v62 = vpop.permute.xlu1 %14622  ;;  %v13412_v63 = vpack.c.bf16 %v7400_v56, %v7399_v59 }
 0x5c2   :  { %v14625_v1 = vunpack.i.h.bf16 %v14623_v62  ;;  %v14624_v2 = vunpack.i.l.bf16 %v14623_v62 }
 0x5c3   :  { %12801 = vmatmul.mubr.msk.f32.vlgmr.msra.gmra.mrb[4].mxu0 %vm87_vm3, %v7295_v58  ;;  %13413 = vmatprep.subr.bf16.mxu1 %v13412_v63  ;;  %v7492_v3 = vsel %vm1781_vm12, %v14489_v61, %v14490_v60  ;;  %v8042_v60 = vld [vmem:[#allocation3 + $0x2a0] sm:$0xff] }
 0x5c4   :  { %v14493_v4 = vpop.permute.xlu0 %14492  ;;  %13415 = vmatpush3.bf16.msra.mxu1 %v13412_v63  ;;  %v7491_v5 = vsel %vm1781_vm12, %v14624_v2, %v14625_v1  ;;  %12814 = vmatprep.mubr.msk.f32.mxu0 %vm87_vm3, %v7481_v0 }
 0x5c5   :  { %v14495_v6 = vunpack.i.h.bf16 %v14493_v4  ;;  %v14494_v7 = vunpack.i.l.bf16 %v14493_v4  ;;  %v14628_v8 = vpop.permute.xlu1 %14627  ;;  %v13416_v9 = vpack.c.bf16 %v7492_v3, %v7491_v5 }
 0x5c6   :  { %v14630_v10 = vunpack.i.h.bf16 %v14628_v8  ;;  %v14629_v11 = vunpack.i.l.bf16 %v14628_v8 }
 0x5c7   :  { %12808 = vmatmul.mubr.msk.f32.vlgmr.msra.gmra.mrb[4].mxu1 %vm87_vm3, %v7295_v58  ;;  %13417 = vmatprep.subr.bf16.mxu0 %v13416_v9  ;;  %v7587_v12 = vsel %vm1781_vm12, %v14494_v7, %v14495_v6 }
 0x5c8   :  { %v14498_v13 = vpop.permute.xlu0 %14497  ;;  %13419 = vmatpush3.bf16.msra.mxu0 %v13416_v9  ;;  %v7586_v15 = vsel %vm1781_vm12, %v14629_v11, %v14630_v10  ;;  %12821 = vmatprep.mubr.msk.f32.mxu1 %vm87_vm3, %v7481_v0  ;;  %v8043_v10 = vld [vmem:[#allocation3 + $0x2a8] sm:$0xff] }
 0x5c9   :  { %v14500_v16 = vunpack.i.h.bf16 %v14498_v13  ;;  %v14499_v17 = vunpack.i.l.bf16 %v14498_v13  ;;  %v14633_v18 = vpop.permute.xlu1 %14632  ;;  %v13420_v19 = vpack.c.bf16 %v7587_v12, %v7586_v15 }
 0x5ca   :  { %v14635_v21 = vunpack.i.h.bf16 %v14633_v18  ;;  %v14634_v22 = vunpack.i.l.bf16 %v14633_v18 }
 0x5cb   :  { %12815 = vmatmul.mubr.msk.f32.vlgmr.msra.gmra.mrb[4].mxu0 %vm87_vm3, %v7482_v14  ;;  %13421 = vmatprep.subr.bf16.mxu1 %v13420_v19  ;;  %v7679_v23 = vsel %vm16103_vm13, %v14499_v17, %v14500_v16  ;;  %vm16107_vm13 = vcmask 957440   ;;  %v8229_v16 = vld [vmem:[#allocation3 + $0x2b0] sm:$0xff] }
 0x5cc   :  { %v14503_v24 = vpop.permute.xlu0 %14502  ;;  %13423 = vmatpush3.bf16.msra.mxu1 %v13420_v19  ;;  %v7678_v25 = vsel %vm16104_vm14, %v14634_v22, %v14635_v21  ;;  %12828 = vmatprep.mubr.msk.f32.mxu0 %vm87_vm3, %v7668_v20  ;;  %vm16108_vm14 = vmmov %vm16107_vm13 }
 0x5cd   :  { %v14505_v26 = vunpack.i.h.bf16 %v14503_v24  ;;  %v14504_v27 = vunpack.i.l.bf16 %v14503_v24  ;;  %v14638_v28 = vpop.permute.xlu1 %14637  ;;  %v13424_v29 = vpack.c.bf16 %v7679_v23, %v7678_v25 }
 0x5ce   :  { %v14640_v30 = vunpack.i.h.bf16 %v14638_v28  ;;  %v14639_v31 = vunpack.i.l.bf16 %v14638_v28 }
 0x5cf   :  { %12822 = vmatmul.mubr.msk.f32.vlgmr.msra.gmra.mrb[4].mxu1 %vm87_vm3, %v7482_v14  ;;  %13425 = vmatprep.subr.bf16.mxu0 %v13424_v29  ;;  %v7774_v32 = vsel %vm16105_vm15, %v14504_v27, %v14505_v26  ;;  %vm16109_vm15 = vmmov %vm16107_vm13 }
 0x5d0   :  { %v14508_v33 = vpop.permute.xlu0 %14507  ;;  %13427 = vmatpush3.bf16.msra.mxu0 %v13424_v29  ;;  %v7773_v35 = vsel %vm16106_vm1, %v14639_v31, %v14640_v30  ;;  %12835 = vmatprep.mubr.msk.f32.mxu1 %vm87_vm3, %v7668_v20  ;;  %vm16110_vm1 = vmmov %vm16107_vm13  ;;  %v8230_v30 = vld [vmem:[#allocation3 + $0x2b8] sm:$0xff] }
 0x5d1   :  { %v14510_v36 = vunpack.i.h.bf16 %v14508_v33  ;;  %v14509_v37 = vunpack.i.l.bf16 %v14508_v33  ;;  %v14643_v38 = vpop.permute.xlu1 %14642  ;;  %v13428_v39 = vpack.c.bf16 %v7774_v32, %v7773_v35 }
 0x5d2   :  { %v14645_v41 = vunpack.i.h.bf16 %v14643_v38  ;;  %v14644_v42 = vunpack.i.l.bf16 %v14643_v38 }
 0x5d3   :  { %12829 = vmatmul.mubr.msk.f32.vlgmr.msra.gmra.mrb[4].mxu0 %vm87_vm3, %v7669_v34  ;;  %13429 = vmatprep.subr.bf16.mxu1 %v13428_v39  ;;  %v7866_v43 = vsel %vm16107_vm13, %v14509_v37, %v14510_v36  ;;  %vm16111_vm13 = vcmask 949248   ;;  %v8416_v36 = vld [vmem:[#allocation3 + $0x2c0] sm:$0xff] }
 0x5d4   :  { %v14513_v44 = vpop.permute.xlu0 %14512  ;;  %13431 = vmatpush3.bf16.msra.mxu1 %v13428_v39  ;;  %v7865_v45 = vsel %vm16108_vm14, %v14644_v42, %v14645_v41  ;;  %12842 = vmatprep.mubr.msk.f32.mxu0 %vm87_vm3, %v7855_v40  ;;  %vm16112_vm14 = vmmov %vm16111_vm13 }
 0x5d5   :  { %v14515_v46 = vunpack.i.h.bf16 %v14513_v44  ;;  %v14514_v47 = vunpack.i.l.bf16 %v14513_v44  ;;  %v14648_v48 = vpop.permute.xlu1 %14647  ;;  %v13432_v49 = vpack.c.bf16 %v7866_v43, %v7865_v45 }
 0x5d6   :  { %v14650_v50 = vunpack.i.h.bf16 %v14648_v48  ;;  %v14649_v51 = vunpack.i.l.bf16 %v14648_v48 }
 0x5d7   :  { %12836 = vmatmul.mubr.msk.f32.vlgmr.msra.gmra.mrb[4].mxu1 %vm87_vm3, %v7669_v34  ;;  %13433 = vmatprep.subr.bf16.mxu0 %v13432_v49  ;;  %v7961_v52 = vsel %vm16109_vm15, %v14514_v47, %v14515_v46  ;;  %vm16113_vm15 = vmmov %vm16111_vm13 }
 0x5d8   :  { %v14518_v53 = vpop.permute.xlu0 %14517  ;;  %13435 = vmatpush3.bf16.msra.mxu0 %v13432_v49  ;;  %v7960_v55 = vsel %vm16110_vm1, %v14649_v51, %v14650_v50  ;;  %12849 = vmatprep.mubr.msk.f32.mxu1 %vm87_vm3, %v7855_v40  ;;  %vm16114_vm1 = vmmov %vm16111_vm13  ;;  %v8417_v49 = vld [vmem:[#allocation3 + $0x2c8] sm:$0xff] }
 0x5d9   :  { %v14520_v56 = vunpack.i.h.bf16 %v14518_v53  ;;  %v14519_v57 = vunpack.i.l.bf16 %v14518_v53  ;;  %v14653_v58 = vpop.permute.xlu1 %14652  ;;  %v13436_v59 = vpack.c.bf16 %v7961_v52, %v7960_v55 }
 0x5da   :  { %v14655_v61 = vunpack.i.h.bf16 %v14653_v58  ;;  %v14654_v62 = vunpack.i.l.bf16 %v14653_v58 }
 0x5db   :  { %12843 = vmatmul.mubr.msk.f32.vlgmr.msra.gmra.mrb[4].mxu0 %vm87_vm3, %v7856_v54  ;;  %13437 = vmatprep.subr.bf16.mxu1 %v13436_v59  ;;  %v8053_v63 = vsel %vm16111_vm13, %v14519_v57, %v14520_v56  ;;  %vm16115_vm13 = vcmask 941056  }
 0x5dc   :  { %v14523_v0 = vpop.permute.xlu0 %14522  ;;  %13439 = vmatpush3.bf16.msra.mxu1 %v13436_v59  ;;  %v8052_v1 = vsel %vm16112_vm14, %v14654_v62, %v14655_v61  ;;  %12856 = vmatprep.mubr.msk.f32.mxu0 %vm87_vm3, %v8042_v60  ;;  %vm16116_vm14 = vmmov %vm16115_vm13 }
 0x5dd   :  { %v14525_v2 = vunpack.i.h.bf16 %v14523_v0  ;;  %v14524_v3 = vunpack.i.l.bf16 %v14523_v0  ;;  %v14658_v4 = vpop.permute.xlu1 %14657  ;;  %v13440_v5 = vpack.c.bf16 %v8053_v63, %v8052_v1 }
 0x5de   :  { %v14660_v6 = vunpack.i.h.bf16 %v14658_v4  ;;  %v14659_v7 = vunpack.i.l.bf16 %v14658_v4 }
 0x5df   :  { %12850 = vmatmul.mubr.msk.f32.vlgmr.msra.gmra.mrb[4].mxu1 %vm87_vm3, %v7856_v54  ;;  %13441 = vmatprep.subr.bf16.mxu0 %v13440_v5  ;;  %v8148_v8 = vsel %vm16113_vm15, %v14524_v3, %v14525_v2  ;;  %vm16117_vm15 = vmmov %vm16115_vm13 }
 0x5e0   :  { %v14528_v9 = vpop.permute.xlu0 %14527  ;;  %13443 = vmatpush3.bf16.msra.mxu0 %v13440_v5  ;;  %v8147_v11 = vsel %vm16114_vm1, %v14659_v7, %v14660_v6  ;;  %12863 = vmatprep.mubr.msk.f32.mxu1 %vm87_vm3, %v8042_v60  ;;  %vm16118_vm1 = vmmov %vm16115_vm13  ;;  %v8654_v6 = vld [vmem:[#allocation3 + $0x2d0] sm:$0xff] }
 0x5e1   :  { %v14530_v12 = vunpack.i.h.bf16 %v14528_v9  ;;  %v14529_v13 = vunpack.i.l.bf16 %v14528_v9  ;;  %v14663_v14 = vpop.permute.xlu1 %14662  ;;  %v13444_v15 = vpack.c.bf16 %v8148_v8, %v8147_v11 }
 0x5e2   :  { %v14665_v17 = vunpack.i.h.bf16 %v14663_v14  ;;  %v14664_v18 = vunpack.i.l.bf16 %v14663_v14 }
 0x5e3   :  { %12857 = vmatmul.mubr.msk.f32.vlgmr.msra.gmra.mrb[4].mxu0 %vm87_vm3, %v8043_v10  ;;  %13445 = vmatprep.subr.bf16.mxu1 %v13444_v15  ;;  %v8240_v19 = vsel %vm16115_vm13, %v14529_v13, %v14530_v12  ;;  %vm16119_vm13 = vcmask 932864  }
 0x5e4   :  { %v14533_v20 = vpop.permute.xlu0 %14532  ;;  %13447 = vmatpush3.bf16.msra.mxu1 %v13444_v15  ;;  %v8239_v21 = vsel %vm16116_vm14, %v14664_v18, %v14665_v17  ;;  %12870 = vmatprep.mubr.msk.f32.mxu0 %vm87_vm3, %v8229_v16  ;;  %vm16120_vm14 = vmmov %vm16119_vm13 }
 0x5e5   :  { %v14535_v22 = vunpack.i.h.bf16 %v14533_v20  ;;  %v14534_v23 = vunpack.i.l.bf16 %v14533_v20  ;;  %v14668_v24 = vpop.permute.xlu1 %14667  ;;  %v13448_v25 = vpack.c.bf16 %v8240_v19, %v8239_v21 }
 0x5e6   :  { %v14670_v26 = vunpack.i.h.bf16 %v14668_v24  ;;  %v14669_v27 = vunpack.i.l.bf16 %v14668_v24 }
 0x5e7   :  { %12864 = vmatmul.mubr.msk.f32.vlgmr.msra.gmra.mrb[4].mxu1 %vm87_vm3, %v8043_v10  ;;  %13449 = vmatprep.subr.bf16.mxu0 %v13448_v25  ;;  %v8335_v28 = vsel %vm16117_vm15, %v14534_v23, %v14535_v22  ;;  %vm16121_vm15 = vmmov %vm16119_vm13 }
 0x5e8   :  { %v14538_v29 = vpop.permute.xlu0 %14537  ;;  %13451 = vmatpush3.bf16.msra.mxu0 %v13448_v25  ;;  %v8334_v31 = vsel %vm16118_vm1, %v14669_v27, %v14670_v26  ;;  %12877 = vmatprep.mubr.msk.f32.mxu1 %vm87_vm3, %v8229_v16  ;;  %vm16122_vm1 = vmmov %vm16119_vm13  ;;  %v8655_v25 = vld [vmem:[#allocation3 + $0x2d8] sm:$0xff]  ;;  %v8821_v26 = vld [vmem:[#allocation3 + $0x2e0] sm:$0xff] }
 0x5e9   :  { %v14540_v32 = vunpack.i.h.bf16 %v14538_v29  ;;  %v14539_v33 = vunpack.i.l.bf16 %v14538_v29  ;;  %v14673_v34 = vpop.permute.xlu1 %14672  ;;  %v13452_v35 = vpack.c.bf16 %v8335_v28, %v8334_v31  ;;  %v11705_v27 = vld [vmem:[%s16076_s2 + $0x38] sm:$0xff]  ;;  %v11704_v28 = vld [vmem:[%s16076_s2 + $0x30] sm:$0xff] }
 0x5ea   :  { %v14675_v37 = vunpack.i.h.bf16 %v14673_v34  ;;  %v14674_v38 = vunpack.i.l.bf16 %v14673_v34 }
 0x5eb   :  { %12871 = vmatmul.mubr.msk.f32.vlgmr.msra.gmra.mrb[4].mxu0 %vm87_vm3, %v8230_v30  ;;  %13453 = vmatprep.subr.bf16.mxu1 %v13452_v35  ;;  %v8427_v39 = vsel %vm16119_vm13, %v14539_v33, %v14540_v32 }
 0x5ec   :  { %v14683_v40 = vpop.permute.xlu0 %14682  ;;  %13455 = vmatpush3.bf16.msra.mxu1 %v13452_v35  ;;  %v8426_v41 = vsel %vm16120_vm14, %v14674_v38, %v14675_v37  ;;  %12884 = vmatprep.mubr.msk.f32.mxu0 %vm87_vm3, %v8416_v36 }
 0x5ed   :  { %v14685_v42 = vunpack.i.h.bf16 %v14683_v40  ;;  %v14684_v43 = vunpack.i.l.bf16 %v14683_v40  ;;  %v14678_v44 = vpop.permute.xlu1 %14677  ;;  %v13456_v45 = vpack.c.bf16 %v8427_v39, %v8426_v41 }
 0x5ee   :  { %v14680_v46 = vunpack.i.h.bf16 %v14678_v44  ;;  %v14679_v47 = vunpack.i.l.bf16 %v14678_v44 }
 0x5ef   :  { %12878 = vmatmul.mubr.msk.f32.vlgmr.msra.gmra.mrb[4].mxu1 %vm87_vm3, %v8230_v30  ;;  %13457 = vmatprep.subr.bf16.mxu0 %v13456_v45  ;;  %v8522_v48 = vsel %vm16121_vm15, %v14684_v43, %v14685_v42 }
 0x5f0   :  { %13459 = vmatpush3.bf16.msra.mxu0 %v13456_v45  ;;  %v8521_v50 = vsel %vm16122_vm1, %v14679_v47, %v14680_v46  ;;  %12891 = vmatprep.mubr.msk.f32.mxu1 %vm87_vm3, %v8416_v36  ;;  %v8822_v46 = vld [vmem:[#allocation3 + $0x2e8] sm:$0xff] }
 0x5f1   :  { %v13460_v51 = vpack.c.bf16 %v8522_v48, %v8521_v50 }
 0x5f3   :  { %12885 = vmatmul.mubr.msk.f32.vlgmr.msra.gmra.mrb[4].mxu0 %vm87_vm3, %v8417_v49  ;;  %13461 = vmatprep.subr.bf16.mxu1 %v13460_v51 }
 0x5f4   :  { %13463 = vmatpush3.bf16.msra.mxu1 %v13460_v51  ;;  %12898 = vmatprep.mubr.msk.f32.mxu0 %vm87_vm3, %v8654_v6 }
 0x5f7   :  { %12892 = vmatmul.mubr.msk.f32.vlgmr.msra.gmra.mrb[4].mxu1 %vm87_vm3, %v8417_v49 }
 0x5f8   :  { %12905 = vmatprep.mubr.msk.f32.mxu1 %vm87_vm3, %v8654_v6  ;;  %v9025_v6 = vld [vmem:[#allocation3 + $0x2f8] sm:$0xff] }
 0x5fd   :  { %v5797_v52 = vpop.permute.xlu0 %5796 }
 0x5fe   :  { %v5792_v54 = vpop.permute.xlu1 %5791 }
 0x6c6   :  { %v12886_v53 = vpop.f32.mrb[4].mxu0 }
 0x6c7   :  { %v13592_v55 = vadd.f32 %v12886_v53, %v5797_v52  ;;  %v8502_v56 = vpop.f32.mrb[5].mxu0 }
 0x6c8   :  { %v13593_v57 = vadd.f32 %v8502_v56, %v5792_v54 }
 0x6c9   :  { %vm8603_vm13 = vcmp.gt.f32.partialorder %v13592_v55, 0.0  ;;  %v8605_v58 = vmul.f32 0.2, %v13592_v55 }
 0x6ca   :  { %vm8602_vm14 = vcmp.gt.f32.partialorder %v13593_v57, 0.0  ;;  %v8604_v59 = vmul.f32 0.2, %v13593_v57  ;;  %v12893_v60 = vpop.f32.mrb[4].mxu1 }
 0x6cb   :  { %v13594_v61 = vadd.f32 %v12893_v60, %v5797_v52  ;;  %v8591_v62 = vpop.f32.mrb[5].mxu1  ;;  %v15776_v63 = vsel %vm8603_vm13, %v13592_v55, %v8605_v58  ;;  %v9024_v52 = vld [vmem:[#allocation3 + $0x2f0] sm:$0xff] }
 0x6cc   :  { %v13595_v0 = vadd.f32 %v8591_v62, %v5792_v54  ;;  %8618 = vrot.lane.b32.xlu0 %v15776_v63, %s15014_s29  ;;  %v15780_v1 = vsel %vm8602_vm14, %v13593_v57, %v8604_v59  ;;  %vm16135_vm14 = vcmask 941056  }
 0x6cd   :  { %vm8609_vm15 = vcmp.gt.f32.partialorder %v13594_v61, 0.0  ;;  %v8611_v2 = vmul.f32 0.2, %v13594_v61  ;;  %8616 = vrot.lane.b32.xlu1 %v15780_v1, %s15014_s29 }
 0x6ce   :  { %vm8608_vm1 = vcmp.gt.f32.partialorder %v13595_v0, 0.0  ;;  %v8610_v3 = vmul.f32 0.2, %v13595_v0 }
 0x6cf   :  { %v15784_v4 = vsel %vm8609_vm15, %v13594_v61, %v8611_v2  ;;  %vm16136_vm15 = vmmov %vm16135_vm14 }
 0x6d0   :  { %8630 = vrot.lane.b32.xlu0 %v15784_v4, %s15014_s29  ;;  %v15788_v5 = vsel %vm8608_vm1, %v13595_v0, %v8610_v3  ;;  %vm16137_vm1 = vmmov %vm16135_vm14 }
 0x6d1   :  { %8628 = vrot.lane.b32.xlu1 %v15788_v5, %s15014_s29 }
 0x73e   :  { %v8619_v7 = vpop.permute.xlu0 %8618 }
 0x73f   :  { %8624 = vst.msk [vmem:[#allocation2 + $0x10] sm:$0xff] %vm52_vm2, %v8619_v7  ;;  %v8617_v8 = vpop.permute.xlu1 %8616 }
 0x740   :  { %8625 = vst.msk [vmem:[#allocation2 + $0x18] sm:$0xff] %vm28_vm0, %v8619_v7  ;;  %8623 = vst.msk [vmem:[#allocation2 + $0x8] sm:$0xff] %vm28_vm0, %v8617_v8 }
 0x741   :  { %8622 = vst.msk [vmem:[#allocation2] sm:$0xff] %vm52_vm2, %v8617_v8 }
 0x742   :  { %v8631_v9 = vpop.permute.xlu0 %8630 }
 0x743   :  { %8636 = vst.msk [vmem:[#allocation2 + $0x30] sm:$0xff] %vm52_vm2, %v8631_v9  ;;  %v8629_v10 = vpop.permute.xlu1 %8628 }
 0x744   :  { %8637 = vst.msk [vmem:[#allocation2 + $0x38] sm:$0xff] %vm28_vm0, %v8631_v9  ;;  %8635 = vst.msk [vmem:[#allocation2 + $0x28] sm:$0xff] %vm28_vm0, %v8629_v10  ;;  %vm16123_vm0 = vcmask 965632  }
 0x745   :  { %8634 = vst.msk [vmem:[#allocation2 + $0x20] sm:$0xff] %vm52_vm2, %v8629_v10  ;;  %vm16124_vm2 = vmmov %vm16123_vm0 }
 0x746   :  { %v8825_v11 = vld [vmem:[#allocation2 + $0x10] sm:$0xff] }
 0x747   :  { %v8826_v12 = vld [vmem:[#allocation2 + $0x18] sm:$0xff]  ;;  %v8824_v14 = vld [vmem:[#allocation2 + $0x8] sm:$0xff] }
 0x748   :  { %v8823_v13 = vld [vmem:[#allocation2] sm:$0xff]  ;;  %v15802_v15 = vpack.i.bf16 %v8826_v12, %v8825_v11 }
 0x749   :  { %v15804_v16 = vpack.i.bf16 %v8824_v14, %v8823_v13  ;;  %v13464_v17 = vpack.c.bf16 %v8825_v11, %v8823_v13  ;;  %v9211_v12 = vld [vmem:[#allocation3 + $0x300] sm:$0xff] }
 0x74a   :  { %14687 = vrot.lane.b32.xlu0 %v15802_v15, %s15015_s7  ;;  %v8928_v18 = vld [vmem:[#allocation2 + $0x30] sm:$0xff] }
 0x74b   :  { %v8929_v19 = vld [vmem:[#allocation2 + $0x38] sm:$0xff]  ;;  %14822 = vrot.lane.b32.xlu1 %v15804_v16, %s15015_s7  ;;  %13465 = vmatprep.subr.bf16.mxu0 %v13464_v17  ;;  %v8927_v21 = vld [vmem:[#allocation2 + $0x28] sm:$0xff] }
 0x74c   :  { %v8926_v20 = vld [vmem:[#allocation2 + $0x20] sm:$0xff]  ;;  %13467 = vmatpush3.bf16.msra.mxu0 %v13464_v17  ;;  %v14691_v22 = vpack.i.bf16 %v8929_v19, %v8928_v18 }
 0x74d   :  { %v14826_v23 = vpack.i.bf16 %v8927_v21, %v8926_v20  ;;  %v13468_v24 = vpack.c.bf16 %v8928_v18, %v8926_v20 }
 0x74e   :  { %14692 = vrot.lane.b32.xlu0 %v14691_v22, %s15015_s7 }
 0x74f   :  { %14827 = vrot.lane.b32.xlu1 %v14826_v23, %s15015_s7  ;;  %13469 = vmatprep.subr.bf16.mxu1 %v13468_v24 }
 0x750   :  { %13471 = vmatpush3.bf16.msra.mxu1 %v13468_v24  ;;  %12899 = vmatmul.mubr.msk.f32.vlgmr.msra.gmra.mrb[6].mxu0 %vm87_vm3, %v8655_v25 }
 0x751   :  { %12912 = vmatprep.mubr.msk.f32.mxu0 %vm87_vm3, %v8821_v26 }
 0x752   :  { %14697 = vrot.lane.b32.xlu0 %v15802_v15, %s15016_s8 }
 0x753   :  { %14832 = vrot.lane.b32.xlu1 %v15804_v16, %s15016_s8  ;;  %12906 = vmatmul.mubr.msk.f32.vlgmr.msra.gmra.mrb[6].mxu1 %vm87_vm3, %v8655_v25 }
 0x754   :  { %12919 = vmatprep.mubr.msk.f32.mxu1 %vm87_vm3, %v8821_v26  ;;  %v9212_v26 = vld [vmem:[#allocation3 + $0x308] sm:$0xff] }
 0x756   :  { %14702 = vrot.lane.b32.xlu0 %v14691_v22, %s15016_s8 }
 0x757   :  { %14837 = vrot.lane.b32.xlu1 %v14826_v23, %s15016_s8 }
 0x75a   :  { %14707 = vrot.lane.b32.xlu0 %v15802_v15, %s15017_s9 }
 0x75b   :  { %14842 = vrot.lane.b32.xlu1 %v15804_v16, %s15017_s9 }
 0x75e   :  { %14712 = vrot.lane.b32.xlu0 %v14691_v22, %s15017_s9 }
 0x75f   :  { %14847 = vrot.lane.b32.xlu1 %v14826_v23, %s15017_s9 }
 0x762   :  { %14717 = vrot.lane.b32.xlu0 %v15802_v15, %s15018_s10 }
 0x763   :  { %14852 = vrot.lane.b32.xlu1 %v15804_v16, %s15018_s10 }
 0x766   :  { %14722 = vrot.lane.b32.xlu0 %v14691_v22, %s15018_s10 }
 0x767   :  { %14857 = vrot.lane.b32.xlu1 %v14826_v23, %s15018_s10 }
 0x76a   :  { %14727 = vrot.lane.b32.xlu0 %v15802_v15, %s15019_s11 }
 0x76b   :  { %14862 = vrot.lane.b32.xlu1 %v15804_v16, %s15019_s11 }
 0x76e   :  { %14732 = vrot.lane.b32.xlu0 %v14691_v22, %s15019_s11 }
 0x76f   :  { %14867 = vrot.lane.b32.xlu1 %v14826_v23, %s15019_s11 }
 0x772   :  { %14737 = vrot.lane.b32.xlu0 %v15802_v15, %s15020_s12 }
 0x773   :  { %14872 = vrot.lane.b32.xlu1 %v15804_v16, %s15020_s12 }
 0x776   :  { %14742 = vrot.lane.b32.xlu0 %v14691_v22, %s15020_s12 }
 0x777   :  { %14877 = vrot.lane.b32.xlu1 %v14826_v23, %s15020_s12 }
 0x77a   :  { %14747 = vrot.lane.b32.xlu0 %v15802_v15, %s15021_s13 }
 0x77b   :  { %14882 = vrot.lane.b32.xlu1 %v15804_v16, %s15021_s13 }
 0x77e   :  { %14752 = vrot.lane.b32.xlu0 %v14691_v22, %s15021_s13 }
 0x77f   :  { %14887 = vrot.lane.b32.xlu1 %v14826_v23, %s15021_s13 }
 0x782   :  { %14757 = vrot.lane.b32.xlu0 %v15802_v15, %s15022_s14 }
 0x783   :  { %14892 = vrot.lane.b32.xlu1 %v15804_v16, %s15022_s14 }
 0x786   :  { %14762 = vrot.lane.b32.xlu0 %v14691_v22, %s15022_s14 }
 0x787   :  { %14897 = vrot.lane.b32.xlu1 %v14826_v23, %s15022_s14 }
 0x78a   :  { %14767 = vrot.lane.b32.xlu0 %v15802_v15, %s15023_s15 }
 0x78b   :  { %14902 = vrot.lane.b32.xlu1 %v15804_v16, %s15023_s15 }
 0x78e   :  { %14772 = vrot.lane.b32.xlu0 %v14691_v22, %s15023_s15 }
 0x78f   :  { %14907 = vrot.lane.b32.xlu1 %v14826_v23, %s15023_s15 }
 0x792   :  { %14777 = vrot.lane.b32.xlu0 %v15802_v15, %s15024_s16 }
 0x793   :  { %14912 = vrot.lane.b32.xlu1 %v15804_v16, %s15024_s16 }
 0x796   :  { %14782 = vrot.lane.b32.xlu0 %v14691_v22, %s15024_s16 }
 0x797   :  { %14917 = vrot.lane.b32.xlu1 %v14826_v23, %s15024_s16 }
 0x79a   :  { %14787 = vrot.lane.b32.xlu0 %v15802_v15, %s15025_s17 }
 0x79b   :  { %14922 = vrot.lane.b32.xlu1 %v15804_v16, %s15025_s17 }
 0x79e   :  { %14792 = vrot.lane.b32.xlu0 %v14691_v22, %s15025_s17 }
 0x79f   :  { %14927 = vrot.lane.b32.xlu1 %v14826_v23, %s15025_s17 }
 0x7a2   :  { %14797 = vrot.lane.b32.xlu0 %v15802_v15, %s15026_s18 }
 0x7a3   :  { %14932 = vrot.lane.b32.xlu1 %v15804_v16, %s15026_s18 }
 0x7a6   :  { %14802 = vrot.lane.b32.xlu0 %v14691_v22, %s15026_s18 }
 0x7a7   :  { %14937 = vrot.lane.b32.xlu1 %v14826_v23, %s15026_s18 }
 0x7aa   :  { %14807 = vrot.lane.b32.xlu0 %v15802_v15, %s15027_s19 }
 0x7ab   :  { %14942 = vrot.lane.b32.xlu1 %v15804_v16, %s15027_s19 }
 0x7ae   :  { %14812 = vrot.lane.b32.xlu0 %v14691_v22, %s15027_s19 }
 0x7af   :  { %14947 = vrot.lane.b32.xlu1 %v14826_v23, %s15027_s19 }
 0x7b2   :  { %14817 = vrot.lane.b32.xlu0 %v15802_v15, %s15028_s20 }
 0x7b3   :  { %14952 = vrot.lane.b32.xlu1 %v15804_v16, %s15028_s20 }
 0x7b6   :  { %14962 = vrot.lane.b32.xlu0 %v14691_v22, %s15028_s20 }
 0x7b7   :  { %14957 = vrot.lane.b32.xlu1 %v14826_v23, %s15028_s20 }
 0x7ba   :  { %8648 = vperm.xlu0 %14124, %v11705_v27  }
 0x7bb   :  { %8643 = vperm.xlu1 %14125, %v11704_v28  }
 0x7bc   :  { %v14688_v29 = vpop.permute.xlu0 %14687 }
 0x7bd   :  { %v14690_v30 = vunpack.i.h.bf16 %v14688_v29  ;;  %v14689_v31 = vunpack.i.l.bf16 %v14688_v29  ;;  %v14823_v32 = vpop.permute.xlu1 %14822 }
 0x7be   :  { %v14825_v33 = vunpack.i.h.bf16 %v14823_v32  ;;  %v14824_v34 = vunpack.i.l.bf16 %v14823_v32  ;;  %v9398_v32 = vld [vmem:[#allocation3 + $0x310] sm:$0xff] }
 0x7bf   :  { %v8840_v35 = vsel %vm269_vm4, %v14689_v31, %v14690_v30 }
 0x7c0   :  { %v14693_v36 = vpop.permute.xlu0 %14692  ;;  %v8839_v37 = vsel %vm269_vm4, %v14824_v34, %v14825_v33 }
 0x7c1   :  { %v14695_v38 = vunpack.i.h.bf16 %v14693_v36  ;;  %v14694_v39 = vunpack.i.l.bf16 %v14693_v36  ;;  %v14828_v40 = vpop.permute.xlu1 %14827  ;;  %v13472_v41 = vpack.c.bf16 %v8840_v35, %v8839_v37 }
 0x7c2   :  { %v14830_v42 = vunpack.i.h.bf16 %v14828_v40  ;;  %v14829_v43 = vunpack.i.l.bf16 %v14828_v40 }
 0x7c3   :  { %13473 = vmatprep.subr.bf16.mxu0 %v13472_v41  ;;  %v8943_v44 = vsel %vm269_vm4, %v14694_v39, %v14695_v38 }
 0x7c4   :  { %v14698_v45 = vpop.permute.xlu0 %14697  ;;  %13475 = vmatpush3.bf16.msra.mxu0 %v13472_v41  ;;  %v8942_v47 = vsel %vm269_vm4, %v14829_v43, %v14830_v42  ;;  %vm16125_vm4 = vmmov %vm16123_vm0 }
 0x7c5   :  { %v14700_v48 = vunpack.i.h.bf16 %v14698_v45  ;;  %v14699_v49 = vunpack.i.l.bf16 %v14698_v45  ;;  %v14833_v50 = vpop.permute.xlu1 %14832  ;;  %v13476_v51 = vpack.c.bf16 %v8943_v44, %v8942_v47 }
 0x7c6   :  { %v14835_v53 = vunpack.i.h.bf16 %v14833_v50  ;;  %v14834_v54 = vunpack.i.l.bf16 %v14833_v50 }
 0x7c7   :  { %12913 = vmatmul.mubr.msk.f32.vlgmr.msra.gmra.mrb[6].mxu0 %vm87_vm3, %v8822_v46  ;;  %13477 = vmatprep.subr.bf16.mxu1 %v13476_v51  ;;  %v9035_v55 = vsel %vm465_vm5, %v14699_v49, %v14700_v48 }
 0x7c8   :  { %v14703_v56 = vpop.permute.xlu0 %14702  ;;  %13479 = vmatpush3.bf16.msra.mxu1 %v13476_v51  ;;  %v9034_v57 = vsel %vm465_vm5, %v14834_v54, %v14835_v53  ;;  %12926 = vmatprep.mubr.msk.f32.mxu0 %vm87_vm3, %v9024_v52 }
 0x7c9   :  { %v14705_v58 = vunpack.i.h.bf16 %v14703_v56  ;;  %v14704_v59 = vunpack.i.l.bf16 %v14703_v56  ;;  %v14838_v60 = vpop.permute.xlu1 %14837  ;;  %v13480_v61 = vpack.c.bf16 %v9035_v55, %v9034_v57 }
 0x7ca   :  { %v14840_v62 = vunpack.i.h.bf16 %v14838_v60  ;;  %v14839_v0 = vunpack.i.l.bf16 %v14838_v60 }
 0x7cb   :  { %12920 = vmatmul.mubr.msk.f32.vlgmr.msra.gmra.mrb[6].mxu1 %vm87_vm3, %v8822_v46  ;;  %13481 = vmatprep.subr.bf16.mxu0 %v13480_v61  ;;  %v9130_v2 = vsel %vm465_vm5, %v14704_v59, %v14705_v58  ;;  %v9399_v46 = vld [vmem:[#allocation3 + $0x318] sm:$0xff] }
 0x7cc   :  { %v14708_v3 = vpop.permute.xlu0 %14707  ;;  %13483 = vmatpush3.bf16.msra.mxu0 %v13480_v61  ;;  %v9129_v7 = vsel %vm465_vm5, %v14839_v0, %v14840_v62  ;;  %12933 = vmatprep.mubr.msk.f32.mxu1 %vm87_vm3, %v9024_v52  ;;  %v9585_v52 = vld [vmem:[#allocation3 + $0x320] sm:$0xff]  ;;  %vm16126_vm5 = vmmov %vm16123_vm0 }
 0x7cd   :  { %v14710_v8 = vunpack.i.h.bf16 %v14708_v3  ;;  %v14709_v9 = vunpack.i.l.bf16 %v14708_v3  ;;  %v14843_v10 = vpop.permute.xlu1 %14842  ;;  %v13484_v11 = vpack.c.bf16 %v9130_v2, %v9129_v7 }
 0x7ce   :  { %v14845_v13 = vunpack.i.h.bf16 %v14843_v10  ;;  %v14844_v14 = vunpack.i.l.bf16 %v14843_v10 }
 0x7cf   :  { %12927 = vmatmul.mubr.msk.f32.vlgmr.msra.gmra.mrb[6].mxu0 %vm87_vm3, %v9025_v6  ;;  %13485 = vmatprep.subr.bf16.mxu1 %v13484_v11  ;;  %v9222_v15 = vsel %vm653_vm6, %v14709_v9, %v14710_v8 }
 0x7d0   :  { %v14713_v16 = vpop.permute.xlu0 %14712  ;;  %13487 = vmatpush3.bf16.msra.mxu1 %v13484_v11  ;;  %v9221_v17 = vsel %vm653_vm6, %v14844_v14, %v14845_v13  ;;  %12940 = vmatprep.mubr.msk.f32.mxu0 %vm87_vm3, %v9211_v12 }
 0x7d1   :  { %v14715_v18 = vunpack.i.h.bf16 %v14713_v16  ;;  %v14714_v19 = vunpack.i.l.bf16 %v14713_v16  ;;  %v14848_v20 = vpop.permute.xlu1 %14847  ;;  %v13488_v21 = vpack.c.bf16 %v9222_v15, %v9221_v17 }
 0x7d2   :  { %v14850_v22 = vunpack.i.h.bf16 %v14848_v20  ;;  %v14849_v23 = vunpack.i.l.bf16 %v14848_v20 }
 0x7d3   :  { %12934 = vmatmul.mubr.msk.f32.vlgmr.msra.gmra.mrb[6].mxu1 %vm87_vm3, %v9025_v6  ;;  %13489 = vmatprep.subr.bf16.mxu0 %v13488_v21  ;;  %v9317_v24 = vsel %vm653_vm6, %v14714_v19, %v14715_v18  ;;  %v9586_v6 = vld [vmem:[#allocation3 + $0x328] sm:$0xff] }
 0x7d4   :  { %v14718_v25 = vpop.permute.xlu0 %14717  ;;  %13491 = vmatpush3.bf16.msra.mxu0 %v13488_v21  ;;  %v9316_v27 = vsel %vm653_vm6, %v14849_v23, %v14850_v22  ;;  %12947 = vmatprep.mubr.msk.f32.mxu1 %vm87_vm3, %v9211_v12  ;;  %v9772_v12 = vld [vmem:[#allocation3 + $0x330] sm:$0xff]  ;;  %vm16127_vm6 = vcmask 957440  }
 0x7d5   :  { %v14720_v28 = vunpack.i.h.bf16 %v14718_v25  ;;  %v14719_v29 = vunpack.i.l.bf16 %v14718_v25  ;;  %v14853_v30 = vpop.permute.xlu1 %14852  ;;  %v13492_v31 = vpack.c.bf16 %v9317_v24, %v9316_v27 }
 0x7d6   :  { %v14855_v33 = vunpack.i.h.bf16 %v14853_v30  ;;  %v14854_v34 = vunpack.i.l.bf16 %v14853_v30 }
 0x7d7   :  { %12941 = vmatmul.mubr.msk.f32.vlgmr.msra.gmra.mrb[6].mxu0 %vm87_vm3, %v9212_v26  ;;  %13493 = vmatprep.subr.bf16.mxu1 %v13492_v31  ;;  %v9409_v35 = vsel %vm841_vm7, %v14719_v29, %v14720_v28 }
 0x7d8   :  { %v14723_v36 = vpop.permute.xlu0 %14722  ;;  %13495 = vmatpush3.bf16.msra.mxu1 %v13492_v31  ;;  %v9408_v37 = vsel %vm841_vm7, %v14854_v34, %v14855_v33  ;;  %12954 = vmatprep.mubr.msk.f32.mxu0 %vm87_vm3, %v9398_v32 }
 0x7d9   :  { %v14725_v38 = vunpack.i.h.bf16 %v14723_v36  ;;  %v14724_v39 = vunpack.i.l.bf16 %v14723_v36  ;;  %v14858_v40 = vpop.permute.xlu1 %14857  ;;  %v13496_v41 = vpack.c.bf16 %v9409_v35, %v9408_v37 }
 0x7da   :  { %v14860_v42 = vunpack.i.h.bf16 %v14858_v40  ;;  %v14859_v43 = vunpack.i.l.bf16 %v14858_v40 }
 0x7db   :  { %12948 = vmatmul.mubr.msk.f32.vlgmr.msra.gmra.mrb[6].mxu1 %vm87_vm3, %v9212_v26  ;;  %13497 = vmatprep.subr.bf16.mxu0 %v13496_v41  ;;  %v9504_v44 = vsel %vm841_vm7, %v14724_v39, %v14725_v38  ;;  %v9773_v26 = vld [vmem:[#allocation3 + $0x338] sm:$0xff] }
 0x7dc   :  { %v14728_v45 = vpop.permute.xlu0 %14727  ;;  %13499 = vmatpush3.bf16.msra.mxu0 %v13496_v41  ;;  %v9503_v47 = vsel %vm841_vm7, %v14859_v43, %v14860_v42  ;;  %12961 = vmatprep.mubr.msk.f32.mxu1 %vm87_vm3, %v9398_v32  ;;  %v9959_v32 = vld [vmem:[#allocation3 + $0x340] sm:$0xff]  ;;  %vm16128_vm7 = vmmov %vm16127_vm6 }
 0x7dd   :  { %v14730_v48 = vunpack.i.h.bf16 %v14728_v45  ;;  %v14729_v49 = vunpack.i.l.bf16 %v14728_v45  ;;  %v14863_v50 = vpop.permute.xlu1 %14862  ;;  %v13500_v51 = vpack.c.bf16 %v9504_v44, %v9503_v47 }
 0x7de   :  { %v14865_v53 = vunpack.i.h.bf16 %v14863_v50  ;;  %v14864_v54 = vunpack.i.l.bf16 %v14863_v50 }
 0x7df   :  { %12955 = vmatmul.mubr.msk.f32.vlgmr.msra.gmra.mrb[6].mxu0 %vm87_vm3, %v9399_v46  ;;  %13501 = vmatprep.subr.bf16.mxu1 %v13500_v51  ;;  %v9596_v55 = vsel %vm1029_vm8, %v14729_v49, %v14730_v48 }
 0x7e0   :  { %v14733_v56 = vpop.permute.xlu0 %14732  ;;  %13503 = vmatpush3.bf16.msra.mxu1 %v13500_v51  ;;  %v9595_v57 = vsel %vm1029_vm8, %v14864_v54, %v14865_v53  ;;  %12968 = vmatprep.mubr.msk.f32.mxu0 %vm87_vm3, %v9585_v52 }
 0x7e1   :  { %v14735_v58 = vunpack.i.h.bf16 %v14733_v56  ;;  %v14734_v59 = vunpack.i.l.bf16 %v14733_v56  ;;  %v14868_v60 = vpop.permute.xlu1 %14867  ;;  %v13504_v61 = vpack.c.bf16 %v9596_v55, %v9595_v57 }
 0x7e2   :  { %v14870_v62 = vunpack.i.h.bf16 %v14868_v60  ;;  %v14869_v0 = vunpack.i.l.bf16 %v14868_v60 }
 0x7e3   :  { %12962 = vmatmul.mubr.msk.f32.vlgmr.msra.gmra.mrb[6].mxu1 %vm87_vm3, %v9399_v46  ;;  %13505 = vmatprep.subr.bf16.mxu0 %v13504_v61  ;;  %v9691_v2 = vsel %vm1029_vm8, %v14734_v59, %v14735_v58  ;;  %v9960_v46 = vld [vmem:[#allocation3 + $0x348] sm:$0xff] }
 0x7e4   :  { %v14738_v3 = vpop.permute.xlu0 %14737  ;;  %13507 = vmatpush3.bf16.msra.mxu0 %v13504_v61  ;;  %v9690_v7 = vsel %vm1029_vm8, %v14869_v0, %v14870_v62  ;;  %12975 = vmatprep.mubr.msk.f32.mxu1 %vm87_vm3, %v9585_v52  ;;  %v10146_v52 = vld [vmem:[#allocation3 + $0x350] sm:$0xff]  ;;  %vm16129_vm8 = vmmov %vm16127_vm6 }
 0x7e5   :  { %v14740_v8 = vunpack.i.h.bf16 %v14738_v3  ;;  %v14739_v9 = vunpack.i.l.bf16 %v14738_v3  ;;  %v14873_v10 = vpop.permute.xlu1 %14872  ;;  %v13508_v11 = vpack.c.bf16 %v9691_v2, %v9690_v7 }
 0x7e6   :  { %v14875_v13 = vunpack.i.h.bf16 %v14873_v10  ;;  %v14874_v14 = vunpack.i.l.bf16 %v14873_v10 }
 0x7e7   :  { %12969 = vmatmul.mubr.msk.f32.vlgmr.msra.gmra.mrb[6].mxu0 %vm87_vm3, %v9586_v6  ;;  %13509 = vmatprep.subr.bf16.mxu1 %v13508_v11  ;;  %v9783_v15 = vsel %vm1217_vm9, %v14739_v9, %v14740_v8 }
 0x7e8   :  { %v14743_v16 = vpop.permute.xlu0 %14742  ;;  %13511 = vmatpush3.bf16.msra.mxu1 %v13508_v11  ;;  %v9782_v17 = vsel %vm1217_vm9, %v14874_v14, %v14875_v13  ;;  %12982 = vmatprep.mubr.msk.f32.mxu0 %vm87_vm3, %v9772_v12 }
 0x7e9   :  { %v14745_v18 = vunpack.i.h.bf16 %v14743_v16  ;;  %v14744_v19 = vunpack.i.l.bf16 %v14743_v16  ;;  %v14878_v20 = vpop.permute.xlu1 %14877  ;;  %v13512_v21 = vpack.c.bf16 %v9783_v15, %v9782_v17 }
 0x7ea   :  { %v14880_v22 = vunpack.i.h.bf16 %v14878_v20  ;;  %v14879_v23 = vunpack.i.l.bf16 %v14878_v20 }
 0x7eb   :  { %12976 = vmatmul.mubr.msk.f32.vlgmr.msra.gmra.mrb[6].mxu1 %vm87_vm3, %v9586_v6  ;;  %13513 = vmatprep.subr.bf16.mxu0 %v13512_v21  ;;  %v9878_v24 = vsel %vm1217_vm9, %v14744_v19, %v14745_v18  ;;  %v10147_v6 = vld [vmem:[#allocation3 + $0x358] sm:$0xff] }
 0x7ec   :  { %v14748_v25 = vpop.permute.xlu0 %14747  ;;  %13515 = vmatpush3.bf16.msra.mxu0 %v13512_v21  ;;  %v9877_v27 = vsel %vm1217_vm9, %v14879_v23, %v14880_v22  ;;  %12989 = vmatprep.mubr.msk.f32.mxu1 %vm87_vm3, %v9772_v12  ;;  %v10333_v12 = vld [vmem:[#allocation3 + $0x360] sm:$0xff]  ;;  %vm16130_vm9 = vmmov %vm16127_vm6 }
 0x7ed   :  { %v14750_v28 = vunpack.i.h.bf16 %v14748_v25  ;;  %v14749_v29 = vunpack.i.l.bf16 %v14748_v25  ;;  %v14883_v30 = vpop.permute.xlu1 %14882  ;;  %v13516_v31 = vpack.c.bf16 %v9878_v24, %v9877_v27 }
 0x7ee   :  { %v14885_v33 = vunpack.i.h.bf16 %v14883_v30  ;;  %v14884_v34 = vunpack.i.l.bf16 %v14883_v30 }
 0x7ef   :  { %12983 = vmatmul.mubr.msk.f32.vlgmr.msra.gmra.mrb[6].mxu0 %vm87_vm3, %v9773_v26  ;;  %13517 = vmatprep.subr.bf16.mxu1 %v13516_v31  ;;  %v9970_v35 = vsel %vm1405_vm10, %v14749_v29, %v14750_v28 }
 0x7f0   :  { %v14753_v36 = vpop.permute.xlu0 %14752  ;;  %13519 = vmatpush3.bf16.msra.mxu1 %v13516_v31  ;;  %v9969_v37 = vsel %vm1405_vm10, %v14884_v34, %v14885_v33  ;;  %12996 = vmatprep.mubr.msk.f32.mxu0 %vm87_vm3, %v9959_v32 }
 0x7f1   :  { %v14755_v38 = vunpack.i.h.bf16 %v14753_v36  ;;  %v14754_v39 = vunpack.i.l.bf16 %v14753_v36  ;;  %v14888_v40 = vpop.permute.xlu1 %14887  ;;  %v13520_v41 = vpack.c.bf16 %v9970_v35, %v9969_v37 }
 0x7f2   :  { %v14890_v42 = vunpack.i.h.bf16 %v14888_v40  ;;  %v14889_v43 = vunpack.i.l.bf16 %v14888_v40 }
 0x7f3   :  { %12990 = vmatmul.mubr.msk.f32.vlgmr.msra.gmra.mrb[6].mxu1 %vm87_vm3, %v9773_v26  ;;  %13521 = vmatprep.subr.bf16.mxu0 %v13520_v41  ;;  %v10065_v44 = vsel %vm1405_vm10, %v14754_v39, %v14755_v38  ;;  %v10334_v26 = vld [vmem:[#allocation3 + $0x368] sm:$0xff] }
 0x7f4   :  { %v14758_v45 = vpop.permute.xlu0 %14757  ;;  %13523 = vmatpush3.bf16.msra.mxu0 %v13520_v41  ;;  %v10064_v47 = vsel %vm1405_vm10, %v14889_v43, %v14890_v42  ;;  %13003 = vmatprep.mubr.msk.f32.mxu1 %vm87_vm3, %v9959_v32  ;;  %v10520_v32 = vld [vmem:[#allocation3 + $0x370] sm:$0xff]  ;;  %vm16131_vm10 = vcmask 949248  }
 0x7f5   :  { %v14760_v48 = vunpack.i.h.bf16 %v14758_v45  ;;  %v14759_v49 = vunpack.i.l.bf16 %v14758_v45  ;;  %v14893_v50 = vpop.permute.xlu1 %14892  ;;  %v13524_v51 = vpack.c.bf16 %v10065_v44, %v10064_v47  ;;  %vm16134_vm13 = vmmov %vm16131_vm10 }
 0x7f6   :  { %v14895_v53 = vunpack.i.h.bf16 %v14893_v50  ;;  %v14894_v54 = vunpack.i.l.bf16 %v14893_v50 }
 0x7f7   :  { %12997 = vmatmul.mubr.msk.f32.vlgmr.msra.gmra.mrb[6].mxu0 %vm87_vm3, %v9960_v46  ;;  %13525 = vmatprep.subr.bf16.mxu1 %v13524_v51  ;;  %v10157_v55 = vsel %vm1593_vm11, %v14759_v49, %v14760_v48 }
 0x7f8   :  { %v14763_v56 = vpop.permute.xlu0 %14762  ;;  %13527 = vmatpush3.bf16.msra.mxu1 %v13524_v51  ;;  %v10156_v57 = vsel %vm1593_vm11, %v14894_v54, %v14895_v53  ;;  %13010 = vmatprep.mubr.msk.f32.mxu0 %vm87_vm3, %v10146_v52 }
 0x7f9   :  { %v14765_v58 = vunpack.i.h.bf16 %v14763_v56  ;;  %v14764_v59 = vunpack.i.l.bf16 %v14763_v56  ;;  %v14898_v60 = vpop.permute.xlu1 %14897  ;;  %v13528_v61 = vpack.c.bf16 %v10157_v55, %v10156_v57 }
 0x7fa   :  { %v14900_v62 = vunpack.i.h.bf16 %v14898_v60  ;;  %v14899_v0 = vunpack.i.l.bf16 %v14898_v60 }
 0x7fb   :  { %13004 = vmatmul.mubr.msk.f32.vlgmr.msra.gmra.mrb[6].mxu1 %vm87_vm3, %v9960_v46  ;;  %13529 = vmatprep.subr.bf16.mxu0 %v13528_v61  ;;  %v10252_v2 = vsel %vm1593_vm11, %v14764_v59, %v14765_v58  ;;  %v10521_v46 = vld [vmem:[#allocation3 + $0x378] sm:$0xff] }
 0x7fc   :  { %v14768_v3 = vpop.permute.xlu0 %14767  ;;  %13531 = vmatpush3.bf16.msra.mxu0 %v13528_v61  ;;  %v10251_v7 = vsel %vm1593_vm11, %v14899_v0, %v14900_v62  ;;  %13017 = vmatprep.mubr.msk.f32.mxu1 %vm87_vm3, %v10146_v52  ;;  %v10707_v52 = vld [vmem:[#allocation3 + $0x380] sm:$0xff]  ;;  %vm16132_vm11 = vmmov %vm16131_vm10 }
 0x7fd   :  { %v14770_v8 = vunpack.i.h.bf16 %v14768_v3  ;;  %v14769_v9 = vunpack.i.l.bf16 %v14768_v3  ;;  %v14903_v10 = vpop.permute.xlu1 %14902  ;;  %v13532_v11 = vpack.c.bf16 %v10252_v2, %v10251_v7 }
 0x7fe   :  { %v14905_v13 = vunpack.i.h.bf16 %v14903_v10  ;;  %v14904_v14 = vunpack.i.l.bf16 %v14903_v10 }
 0x7ff   :  { %13011 = vmatmul.mubr.msk.f32.vlgmr.msra.gmra.mrb[6].mxu0 %vm87_vm3, %v10147_v6  ;;  %13533 = vmatprep.subr.bf16.mxu1 %v13532_v11  ;;  %v10344_v15 = vsel %vm1781_vm12, %v14769_v9, %v14770_v8 }
 0x800   :  { %v14773_v16 = vpop.permute.xlu0 %14772  ;;  %13535 = vmatpush3.bf16.msra.mxu1 %v13532_v11  ;;  %v10343_v17 = vsel %vm1781_vm12, %v14904_v14, %v14905_v13  ;;  %13024 = vmatprep.mubr.msk.f32.mxu0 %vm87_vm3, %v10333_v12 }
 0x801   :  { %v14775_v18 = vunpack.i.h.bf16 %v14773_v16  ;;  %v14774_v19 = vunpack.i.l.bf16 %v14773_v16  ;;  %v14908_v20 = vpop.permute.xlu1 %14907  ;;  %v13536_v21 = vpack.c.bf16 %v10344_v15, %v10343_v17 }
 0x802   :  { %v14910_v22 = vunpack.i.h.bf16 %v14908_v20  ;;  %v14909_v23 = vunpack.i.l.bf16 %v14908_v20 }
 0x803   :  { %13018 = vmatmul.mubr.msk.f32.vlgmr.msra.gmra.mrb[6].mxu1 %vm87_vm3, %v10147_v6  ;;  %13537 = vmatprep.subr.bf16.mxu0 %v13536_v21  ;;  %v10439_v24 = vsel %vm1781_vm12, %v14774_v19, %v14775_v18  ;;  %v10708_v6 = vld [vmem:[#allocation3 + $0x388] sm:$0xff] }
 0x804   :  { %v14778_v25 = vpop.permute.xlu0 %14777  ;;  %13539 = vmatpush3.bf16.msra.mxu0 %v13536_v21  ;;  %v10438_v27 = vsel %vm1781_vm12, %v14909_v23, %v14910_v22  ;;  %13031 = vmatprep.mubr.msk.f32.mxu1 %vm87_vm3, %v10333_v12  ;;  %v10894_v12 = vld [vmem:[#allocation3 + $0x390] sm:$0xff]  ;;  %vm16133_vm12 = vmmov %vm16131_vm10 }
 0x805   :  { %v14780_v28 = vunpack.i.h.bf16 %v14778_v25  ;;  %v14779_v29 = vunpack.i.l.bf16 %v14778_v25  ;;  %v14913_v30 = vpop.permute.xlu1 %14912  ;;  %v13540_v31 = vpack.c.bf16 %v10439_v24, %v10438_v27 }
 0x806   :  { %v14915_v33 = vunpack.i.h.bf16 %v14913_v30  ;;  %v14914_v34 = vunpack.i.l.bf16 %v14913_v30 }
 0x807   :  { %13025 = vmatmul.mubr.msk.f32.vlgmr.msra.gmra.mrb[6].mxu0 %vm87_vm3, %v10334_v26  ;;  %13541 = vmatprep.subr.bf16.mxu1 %v13540_v31  ;;  %v10531_v35 = vsel %vm16123_vm0, %v14779_v29, %v14780_v28  ;;  %vm16138_vm0 = vmmov %vm16137_vm1 }
 0x808   :  { %v14783_v36 = vpop.permute.xlu0 %14782  ;;  %13543 = vmatpush3.bf16.msra.mxu1 %v13540_v31  ;;  %v10530_v37 = vsel %vm16124_vm2, %v14914_v34, %v14915_v33  ;;  %13038 = vmatprep.mubr.msk.f32.mxu0 %vm87_vm3, %v10520_v32  ;;  %vm16139_vm2 = vcmask 932864  }
 0x809   :  { %v14785_v38 = vunpack.i.h.bf16 %v14783_v36  ;;  %v14784_v39 = vunpack.i.l.bf16 %v14783_v36  ;;  %v14918_v40 = vpop.permute.xlu1 %14917  ;;  %v13544_v41 = vpack.c.bf16 %v10531_v35, %v10530_v37 }
 0x80a   :  { %v14920_v42 = vunpack.i.h.bf16 %v14918_v40  ;;  %v14919_v43 = vunpack.i.l.bf16 %v14918_v40 }
 0x80b   :  { %13032 = vmatmul.mubr.msk.f32.vlgmr.msra.gmra.mrb[6].mxu1 %vm87_vm3, %v10334_v26  ;;  %13545 = vmatprep.subr.bf16.mxu0 %v13544_v41  ;;  %v10626_v44 = vsel %vm16125_vm4, %v14784_v39, %v14785_v38  ;;  %v10895_v26 = vld [vmem:[#allocation3 + $0x398] sm:$0xff]  ;;  %vm16140_vm4 = vmmov %vm16139_vm2 }
 0x80c   :  { %v14788_v45 = vpop.permute.xlu0 %14787  ;;  %13547 = vmatpush3.bf16.msra.mxu0 %v13544_v41  ;;  %v10625_v47 = vsel %vm16126_vm5, %v14919_v43, %v14920_v42  ;;  %13045 = vmatprep.mubr.msk.f32.mxu1 %vm87_vm3, %v10520_v32  ;;  %v11081_v32 = vld [vmem:[#allocation3 + $0x3a0] sm:$0xff]  ;;  %vm16141_vm5 = vmmov %vm16139_vm2 }
 0x80d   :  { %v14790_v48 = vunpack.i.h.bf16 %v14788_v45  ;;  %v14789_v49 = vunpack.i.l.bf16 %v14788_v45  ;;  %v14923_v50 = vpop.permute.xlu1 %14922  ;;  %v13548_v51 = vpack.c.bf16 %v10626_v44, %v10625_v47 }
 0x80e   :  { %v14925_v53 = vunpack.i.h.bf16 %v14923_v50  ;;  %v14924_v54 = vunpack.i.l.bf16 %v14923_v50 }
 0x80f   :  { %13039 = vmatmul.mubr.msk.f32.vlgmr.msra.gmra.mrb[6].mxu0 %vm87_vm3, %v10521_v46  ;;  %13549 = vmatprep.subr.bf16.mxu1 %v13548_v51  ;;  %v10718_v55 = vsel %vm16127_vm6, %v14789_v49, %v14790_v48  ;;  %vm16142_vm6 = vmmov %vm16139_vm2 }
 0x810   :  { %v14793_v56 = vpop.permute.xlu0 %14792  ;;  %13551 = vmatpush3.bf16.msra.mxu1 %v13548_v51  ;;  %v10717_v57 = vsel %vm16128_vm7, %v14924_v54, %v14925_v53  ;;  %13052 = vmatprep.mubr.msk.f32.mxu0 %vm87_vm3, %v10707_v52 }
 0x811   :  { %v14795_v58 = vunpack.i.h.bf16 %v14793_v56  ;;  %v14794_v59 = vunpack.i.l.bf16 %v14793_v56  ;;  %v14928_v60 = vpop.permute.xlu1 %14927  ;;  %v13552_v61 = vpack.c.bf16 %v10718_v55, %v10717_v57 }
 0x812   :  { %v14930_v62 = vunpack.i.h.bf16 %v14928_v60  ;;  %v14929_v0 = vunpack.i.l.bf16 %v14928_v60 }
 0x813   :  { %13046 = vmatmul.mubr.msk.f32.vlgmr.msra.gmra.mrb[6].mxu1 %vm87_vm3, %v10521_v46  ;;  %13553 = vmatprep.subr.bf16.mxu0 %v13552_v61  ;;  %v10813_v2 = vsel %vm16129_vm8, %v14794_v59, %v14795_v58  ;;  %v11082_v46 = vld [vmem:[#allocation3 + $0x3a8] sm:$0xff] }
 0x814   :  { %v14798_v3 = vpop.permute.xlu0 %14797  ;;  %13555 = vmatpush3.bf16.msra.mxu0 %v13552_v61  ;;  %v10812_v7 = vsel %vm16130_vm9, %v14929_v0, %v14930_v62  ;;  %13059 = vmatprep.mubr.msk.f32.mxu1 %vm87_vm3, %v10707_v52  ;;  %v11268_v52 = vld [vmem:[#allocation3 + $0x3b0] sm:$0xff] }
 0x815   :  { %v14800_v8 = vunpack.i.h.bf16 %v14798_v3  ;;  %v14799_v9 = vunpack.i.l.bf16 %v14798_v3  ;;  %v14933_v10 = vpop.permute.xlu1 %14932  ;;  %v13556_v11 = vpack.c.bf16 %v10813_v2, %v10812_v7  ;;  %v11269_v3 = vld [vmem:[#allocation3 + $0x3b8] sm:$0xff] }
 0x816   :  { %v14935_v13 = vunpack.i.h.bf16 %v14933_v10  ;;  %v14934_v14 = vunpack.i.l.bf16 %v14933_v10 }
 0x817   :  { %13053 = vmatmul.mubr.msk.f32.vlgmr.msra.gmra.mrb[6].mxu0 %vm87_vm3, %v10708_v6  ;;  %13557 = vmatprep.subr.bf16.mxu1 %v13556_v11  ;;  %v10905_v15 = vsel %vm16131_vm10, %v14799_v9, %v14800_v8 }
 0x818   :  { %v14803_v16 = vpop.permute.xlu0 %14802  ;;  %13559 = vmatpush3.bf16.msra.mxu1 %v13556_v11  ;;  %v10904_v17 = vsel %vm16132_vm11, %v14934_v14, %v14935_v13  ;;  %13066 = vmatprep.mubr.msk.f32.mxu0 %vm87_vm3, %v10894_v12 }
 0x819   :  { %v14805_v18 = vunpack.i.h.bf16 %v14803_v16  ;;  %v14804_v19 = vunpack.i.l.bf16 %v14803_v16  ;;  %v14938_v20 = vpop.permute.xlu1 %14937  ;;  %v13560_v21 = vpack.c.bf16 %v10905_v15, %v10904_v17 }
 0x81a   :  { %v14940_v22 = vunpack.i.h.bf16 %v14938_v20  ;;  %v14939_v23 = vunpack.i.l.bf16 %v14938_v20 }
 0x81b   :  { %13060 = vmatmul.mubr.msk.f32.vlgmr.msra.gmra.mrb[6].mxu1 %vm87_vm3, %v10708_v6  ;;  %13561 = vmatprep.subr.bf16.mxu0 %v13560_v21  ;;  %v11000_v24 = vsel %vm16133_vm12, %v14804_v19, %v14805_v18 }
 0x81c   :  { %v14808_v25 = vpop.permute.xlu0 %14807  ;;  %13563 = vmatpush3.bf16.msra.mxu0 %v13560_v21  ;;  %v10999_v27 = vsel %vm16134_vm13, %v14939_v23, %v14940_v22  ;;  %13073 = vmatprep.mubr.msk.f32.mxu1 %vm87_vm3, %v10894_v12 }
 0x81d   :  { %v14810_v28 = vunpack.i.h.bf16 %v14808_v25  ;;  %v14809_v29 = vunpack.i.l.bf16 %v14808_v25  ;;  %v14943_v30 = vpop.permute.xlu1 %14942  ;;  %v13564_v31 = vpack.c.bf16 %v11000_v24, %v10999_v27 }
 0x81e   :  { %v14945_v33 = vunpack.i.h.bf16 %v14943_v30  ;;  %v14944_v34 = vunpack.i.l.bf16 %v14943_v30 }
 0x81f   :  { %13067 = vmatmul.mubr.msk.f32.vlgmr.msra.gmra.mrb[6].mxu0 %vm87_vm3, %v10895_v26  ;;  %13565 = vmatprep.subr.bf16.mxu1 %v13564_v31  ;;  %v11092_v35 = vsel %vm16135_vm14, %v14809_v29, %v14810_v28 }
 0x820   :  { %v14813_v36 = vpop.permute.xlu0 %14812  ;;  %13567 = vmatpush3.bf16.msra.mxu1 %v13564_v31  ;;  %v11091_v37 = vsel %vm16136_vm15, %v14944_v34, %v14945_v33  ;;  %13080 = vmatprep.mubr.msk.f32.mxu0 %vm87_vm3, %v11081_v32 }
 0x821   :  { %v14815_v38 = vunpack.i.h.bf16 %v14813_v36  ;;  %v14814_v39 = vunpack.i.l.bf16 %v14813_v36  ;;  %v14948_v40 = vpop.permute.xlu1 %14947  ;;  %v13568_v41 = vpack.c.bf16 %v11092_v35, %v11091_v37 }
 0x822   :  { %v14950_v42 = vunpack.i.h.bf16 %v14948_v40  ;;  %v14949_v43 = vunpack.i.l.bf16 %v14948_v40 }
 0x823   :  { %13074 = vmatmul.mubr.msk.f32.vlgmr.msra.gmra.mrb[6].mxu1 %vm87_vm3, %v10895_v26  ;;  %13569 = vmatprep.subr.bf16.mxu0 %v13568_v41  ;;  %v11187_v44 = vsel %vm16137_vm1, %v14814_v39, %v14815_v38 }
 0x824   :  { %v14818_v45 = vpop.permute.xlu0 %14817  ;;  %13571 = vmatpush3.bf16.msra.mxu0 %v13568_v41  ;;  %v11186_v47 = vsel %vm16138_vm0, %v14949_v43, %v14950_v42  ;;  %13087 = vmatprep.mubr.msk.f32.mxu1 %vm87_vm3, %v11081_v32 }
 0x825   :  { %v14820_v48 = vunpack.i.h.bf16 %v14818_v45  ;;  %v14819_v49 = vunpack.i.l.bf16 %v14818_v45  ;;  %v14953_v50 = vpop.permute.xlu1 %14952  ;;  %v13572_v51 = vpack.c.bf16 %v11187_v44, %v11186_v47 }
 0x826   :  { %v14955_v53 = vunpack.i.h.bf16 %v14953_v50  ;;  %v14954_v54 = vunpack.i.l.bf16 %v14953_v50 }
 0x827   :  { %13081 = vmatmul.mubr.msk.f32.vlgmr.msra.gmra.mrb[6].mxu0 %vm87_vm3, %v11082_v46  ;;  %13573 = vmatprep.subr.bf16.mxu1 %v13572_v51  ;;  %v11279_v55 = vsel %vm16139_vm2, %v14819_v49, %v14820_v48 }
 0x828   :  { %v14963_v56 = vpop.permute.xlu0 %14962  ;;  %13575 = vmatpush3.bf16.msra.mxu1 %v13572_v51  ;;  %v11278_v57 = vsel %vm16140_vm4, %v14954_v54, %v14955_v53  ;;  %13094 = vmatprep.mubr.msk.f32.mxu0 %vm87_vm3, %v11268_v52 }
 0x829   :  { %v14965_v58 = vunpack.i.h.bf16 %v14963_v56  ;;  %v14964_v59 = vunpack.i.l.bf16 %v14963_v56  ;;  %v14958_v60 = vpop.permute.xlu1 %14957  ;;  %v13576_v61 = vpack.c.bf16 %v11279_v55, %v11278_v57 }
 0x82a   :  { %v14960_v62 = vunpack.i.h.bf16 %v14958_v60  ;;  %v14959_v0 = vunpack.i.l.bf16 %v14958_v60 }
 0x82b   :  { %13088 = vmatmul.mubr.msk.f32.vlgmr.msra.gmra.mrb[6].mxu1 %vm87_vm3, %v11082_v46  ;;  %13577 = vmatprep.subr.bf16.mxu0 %v13576_v61  ;;  %v11374_v2 = vsel %vm16141_vm5, %v14964_v59, %v14965_v58 }
 0x82c   :  { %13579 = vmatpush3.bf16.msra.mxu0 %v13576_v61  ;;  %v11373_v6 = vsel %vm16142_vm6, %v14959_v0, %v14960_v62  ;;  %13101 = vmatprep.mubr.msk.f32.mxu1 %vm87_vm3, %v11268_v52 }
 0x82d   :  { %v13580_v7 = vpack.c.bf16 %v11374_v2, %v11373_v6 }
 0x82f   :  { %13095 = vmatmul.mubr.msk.f32.vlgmr.msra.gmra.mrb[6].mxu0 %vm87_vm3, %v11269_v3  ;;  %13581 = vmatprep.subr.bf16.mxu1 %v13580_v7 }
 0x830   :  { %13583 = vmatpush3.bf16.msra.mxu1 %v13580_v7 }
 0x833   :  { %13102 = vmatmul.mubr.msk.f32.vlgmr.msra.gmra.mrb[6].mxu1 %vm87_vm3, %v11269_v3 }
 0x839   :  { %v8649_v8 = vpop.permute.xlu0 %8648 }
 0x83a   :  { %v8644_v10 = vpop.permute.xlu1 %8643 }
 0x902   :  { %v13096_v9 = vpop.f32.mrb[6].mxu0 }
 0x903   :  { %v13596_v11 = vadd.f32 %v13096_v9, %v8649_v8  ;;  %v11354_v12 = vpop.f32.mrb[7].mxu0 }
 0x904   :  { %v13597_v13 = vadd.f32 %v11354_v12, %v8644_v10 }
 0x905   :  { %v11767_v14 = vmul.f32 -1.442695, %v13596_v11 }
 0x906   :  { %v11766_v15 = vmul.f32 -1.442695, %v13597_v13  ;;  %v13103_v16 = vpop.f32.mrb[6].mxu1 }
 0x907   :  { %14966 = vpow2.f32 %v11767_v14  ;;  %v13598_v17 = vadd.f32 %v13103_v16, %v8649_v8  ;;  %v11443_v18 = vpop.f32.mrb[7].mxu1 }
 0x908   :  { %14968 = vpow2.f32 %v11766_v15  ;;  %v13599_v19 = vadd.f32 %v11443_v18, %v8644_v10 }
 0x909   :  { %v11775_v20 = vmul.f32 -1.442695, %v13598_v17 }
 0x90a   :  { %v11774_v21 = vmul.f32 -1.442695, %v13599_v19 }
 0x90b   :  { %14970 = vpow2.f32 %v11775_v20 }
 0x90c   :  { %14972 = vpow2.f32 %v11774_v21 }
 0x911   :  { %v14967_v22 = vpop.eup %14966 }
 0x912   :  { %v14969_v23 = vpop.eup %14968  ;;  %v11461_v24 = vadd.f32 1.0, %v14967_v22 }
 0x913   :  { %v11460_v25 = vadd.f32 1.0, %v14969_v23 }
 0x914   :  { %14974 = vrcp.f32 %v11461_v24 }
 0x915   :  { %v14971_v26 = vpop.eup %14970  ;;  %14976 = vrcp.f32 %v11460_v25 }
 0x916   :  { %v14973_v27 = vpop.eup %14972  ;;  %v11490_v28 = vadd.f32 1.0, %v14971_v26 }
 0x917   :  { %v11489_v29 = vadd.f32 1.0, %v14973_v27 }
 0x918   :  { %14978 = vrcp.f32 %v11490_v28 }
 0x919   :  { %14980 = vrcp.f32 %v11489_v29 }
 0x91e   :  { %v14975_v30 = vpop.eup %14974 }
 0x91f   :  { %v14977_v31 = vpop.eup %14976  ;;  %v11467_v32 = vmul.f32 %v14975_v30, %v15776_v63  ;;  %11771 = vst [vmem:[%s16077_s3 + $0x48] sm:$0xff] %v14975_v30  ;;  %v11479_v33 = vsub.f32 1.0, %v14975_v30  ;;  %v14982_v63 = vld [vmem:[%s16074_s0 + $0x8] sm:$0xff] }
 0x920   :  { %v11466_v34 = vmul.f32 %v14977_v31, %v15780_v1  ;;  %11770 = vst [vmem:[%s16077_s3 + $0x40] sm:$0xff] %v14977_v31  ;;  %v11478_v35 = vsub.f32 1.0, %v14977_v31  ;;  %v14983_v1 = vld [vmem:[%s16074_s0] sm:$0xff] }
 0x921   :  { %11469 = vst [vmem:[%s16077_s3 + $0x8] sm:$0xff] %v11467_v32  ;;  %v11471_v36 = vsub.f32 %v14982_v63, %v11467_v32  ;;  %11773 = vst [vmem:[%s16077_s3 + $0x68] sm:$0xff] %v11479_v33 }
 0x922   :  { %v14979_v37 = vpop.eup %14978  ;;  %11468 = vst [vmem:[%s16077_s3] sm:$0xff] %v11466_v34  ;;  %v11470_v38 = vsub.f32 %v14983_v1, %v11466_v34  ;;  %11772 = vst [vmem:[%s16077_s3 + $0x60] sm:$0xff] %v11478_v35 }
 0x923   :  { %v14981_v39 = vpop.eup %14980  ;;  %11769 = vst [vmem:[%s16077_s3 + $0x28] sm:$0xff] %v11471_v36  ;;  %v11496_v40 = vmul.f32 %v14979_v37, %v15784_v4  ;;  %11781 = vst [vmem:[%s16077_s3 + $0x58] sm:$0xff] %v14979_v37  ;;  %v11509_v41 = vsub.f32 1.0, %v14979_v37  ;;  %v14984_v4 = vld [vmem:[%s16074_s0 + $0x18] sm:$0xff] }
 0x924   :  { %11768 = vst [vmem:[%s16077_s3 + $0x20] sm:$0xff] %v11470_v38  ;;  %v11495_v42 = vmul.f32 %v14981_v39, %v15788_v5  ;;  %11780 = vst [vmem:[%s16077_s3 + $0x50] sm:$0xff] %v14981_v39  ;;  %v11508_v43 = vsub.f32 1.0, %v14981_v39  ;;  %v14985_v5 = vld [vmem:[%s16074_s0 + $0x10] sm:$0xff] }
 0x925   :  { %11777 = vst [vmem:[%s16077_s3 + $0x18] sm:$0xff] %v11496_v40  ;;  %v11501_v44 = vsub.f32 %v14984_v4, %v11496_v40  ;;  %11783 = vst [vmem:[%s16077_s3 + $0x78] sm:$0xff] %v11509_v41 }
 0x926   :  { %11776 = vst [vmem:[%s16077_s3 + $0x10] sm:$0xff] %v11495_v42  ;;  %v11500_v45 = vsub.f32 %v14985_v5, %v11495_v42  ;;  %11782 = vst [vmem:[%s16077_s3 + $0x70] sm:$0xff] %v11508_v43 }
 0x927   :  { %11779 = vst [vmem:[%s16077_s3 + $0x38] sm:$0xff] %v11501_v44 }
 0x928   :  { %11778 = vst [vmem:[%s16077_s3 + $0x30] sm:$0xff] %v11500_v45 }
 0x929   :  { %11517 = vsyncpa [#allocation4], 1 }

</bundles_post_ra>
